<compile_context>
chip_gen: v5e
topology: v5e:2x2
jax: 0.10.0
libtpu: 0.0.40
codegen_flags: <defaults>
</compile_context>

<pallas_src>
import jax
import jax.numpy as jnp
from jax.experimental import pallas as pl
from jax.experimental.pallas import tpu as pltpu

HW = 16        # 4*4 pooled spatial positions
N_PAD = 8      # batch padded to one sublane group
N_SPLIT = 2    # leading "parallel" grid axis (v7x: one half of w1/w2 per TC)


def auxl_kernel(x_ref, wc_ref, bc_ref, w1_ref, b1_ref, w2_ref,
                out_ref, h2_ref, acc_ref):
    k = pl.program_id(1)
    n_mid = wc_ref.shape[1]                      # 128 conv output channels

    @pl.when(k == 0)
    def _():
        # conv1 (1x1) + ReLU on the pre-pooled input; computed once per core
        # sweep and written lane-major (columns = hw*128 + oc) so fc1 below is
        # a single 2-D MXU contraction over K = HW*128.
        for hw in range(HW):                     # static unroll (tiny matmuls)
            h = jnp.dot(x_ref[hw], wc_ref[...],
                        preferred_element_type=jnp.float32)      # (N_PAD, 128)
            h = jnp.maximum(h + bc_ref[...], 0.0)
            h2_ref[:, hw * n_mid:(hw + 1) * n_mid] = h.astype(h2_ref.dtype)
        acc_ref[...] = jnp.zeros_like(acc_ref)

    # fc1 tile: (N_PAD, HW*128) @ (HW*128, tn) single MXU matmul + bias + ReLU
    y1 = jnp.dot(h2_ref[...], w1_ref[...], preferred_element_type=jnp.float32)
    y1 = jnp.maximum(y1 + b1_ref[...], 0.0)
    # TODO(synk): F.dropout(p=0.2) is identity in eval mode; training-mode
    # dropout would use pltpu.prng_seed / pltpu.prng_random_bits here.

    # fc2 partial for this n_hid tile, accumulated in f32 scratch
    acc_ref[...] += jnp.dot(y1.astype(w2_ref.dtype), w2_ref[...],
                            preferred_element_type=jnp.float32)

    @pl.when(k == pl.num_programs(1) - 1)
    def _():
        out_ref[...] = acc_ref[...]


def make_auxl_forward(params, tn=256):
    """One-time weight packing + a jitted per-call forward (eval mode)."""
    wc, bc, w1, b1, w2, b2 = params
    n_mid, c_in = int(wc.shape[0]), int(wc.shape[1])   # 128, C
    n_hid = int(w1.shape[0])                            # 1024
    no_c = int(w2.shape[0])
    no_c_pad = ((no_c + 127) // 128) * 128
    assert n_hid % (N_SPLIT * tn) == 0
    tpc = n_hid // tn // N_SPLIT                        # n_hid tiles per core

    # ---- one-time weight packing (hoisted out of the per-call path) ----
    wc_p = jnp.asarray(wc).reshape(n_mid, c_in).T.astype(jnp.bfloat16)   # (C,128)
    bc_p = jnp.asarray(bc).reshape(1, n_mid).astype(jnp.float32)
    # torch fc1.weight column index is oc*16 + hw; repack rows as hw*128 + oc.
    w1_p = (jnp.transpose(jnp.asarray(w1).reshape(n_hid, n_mid, HW), (2, 1, 0))
            .reshape(HW * n_mid, n_hid).astype(jnp.bfloat16))            # (2048, n_hid)
    b1_p = jnp.asarray(b1).reshape(1, n_hid).astype(jnp.float32)
    w2_p = (jnp.zeros((n_hid, no_c_pad), jnp.float32)
            .at[:, :no_c].set(jnp.asarray(w2).T).astype(jnp.bfloat16))   # (n_hid, 128)
    b2_p = (jnp.zeros((1, no_c_pad), jnp.float32)
            .at[:, :no_c].set(jnp.asarray(b2).reshape(1, no_c)))

    flops = (2 * HW * N_PAD * c_in * n_mid
             + 2 * N_PAD * (HW * n_mid) * n_hid
             + 2 * N_PAD * n_hid * no_c_pad)
    bytes_accessed = (HW * N_PAD * c_in * 2 + c_in * n_mid * 2 + n_mid * 4
                      + HW * n_mid * n_hid * 2 + n_hid * 4
                      + n_hid * no_c_pad * 2
                      + N_SPLIT * N_PAD * no_c_pad * 4)

    grid_spec = pltpu.PrefetchScalarGridSpec(
        num_scalar_prefetch=0,
        grid=(N_SPLIT, tpc),
        in_specs=[
            pl.BlockSpec((HW, N_PAD, c_in), lambda p, k: (0, 0, 0)),   # x (pooled)
            pl.BlockSpec((c_in, n_mid), lambda p, k: (0, 0)),          # conv weight
            pl.BlockSpec((1, n_mid), lambda p, k: (0, 0)),             # conv bias
            pl.BlockSpec((HW * n_mid, tn),
                         lambda p, k: (0, p * tpc + k)),               # fc1 weight tile
            pl.BlockSpec((1, tn), lambda p, k: (0, p * tpc + k)),      # fc1 bias tile
            pl.BlockSpec((tn, no_c_pad), lambda p, k: (p * tpc + k, 0)),  # fc2 w tile
        ],
        out_specs=pl.BlockSpec((N_PAD, no_c_pad), lambda p, k: (p, 0)),
        scratch_shapes=[
            pltpu.VMEM((N_PAD, HW * n_mid), jnp.bfloat16),   # conv+relu activations
            pltpu.VMEM((N_PAD, no_c_pad), jnp.float32),      # fc2 accumulator
        ])

    kernel_call = pl.pallas_call(
        auxl_kernel,
        grid_spec=grid_spec,
        out_shape=jax.ShapeDtypeStruct((N_SPLIT * N_PAD, no_c_pad), jnp.float32),
        compiler_params=pltpu.CompilerParams(
            dimension_semantics=("parallel", "arbitrary")),
        cost_estimate=pl.CostEstimate(flops=flops, transcendentals=0,
                                      bytes_accessed=bytes_accessed),
    )

    @jax.jit
    def forward(x, wc_p, bc_p, w1_p, b1_p, w2_p, b2_p):
        n, c, h, w = x.shape
        assert c == c_in and n <= N_PAD
        # AdaptiveAvgPool2d((4,4)) with uniform windows (H, W divisible by 4).
        # TODO(synk): uneven adaptive-pool windows (e.g. 14x14 input) are not
        # implemented.
        assert h % 4 == 0 and w % 4 == 0
        xp = x.reshape(n, c, 4, h // 4, 4, w // 4).mean(axis=(3, 5))   # (N,C,4,4)
        xr = jnp.transpose(xp, (2, 3, 0, 1)).reshape(HW, n, c)         # rows (hw,n)
        xr = (jnp.zeros((HW, N_PAD, c), jnp.float32).at[:, :n, :].set(xr)
              .astype(jnp.bfloat16))
        parts = kernel_call(xr, wc_p, bc_p, w1_p, b1_p, w2_p)          # (2*N_PAD, 128)
        y = parts[:N_PAD] + parts[N_PAD:] + b2_p                       # sum TC halves
        return y[:n, :no_c]

    def run(x):
        return forward(x, wc_p, bc_p, w1_p, b1_p, w2_p, b2_p)

    return run


def auxl_reference(x, params):
    """Pure-JAX f32 reference reproducing the PyTorch forward (eval mode)."""
    wc, bc, w1, b1, w2, b2 = params
    n, c, h, w = x.shape
    xp = x.reshape(n, c, 4, h // 4, 4, w // 4).mean(axis=(3, 5))       # (N,C,4,4)
    hh = jnp.einsum('nchw,oc->nohw', xp, wc.reshape(wc.shape[0], c)) \
        + bc[None, :, None, None]
    hh = jnp.maximum(hh, 0.0)
    hf = hh.reshape(n, -1)
    y1 = jnp.maximum(hf @ w1.T + b1, 0.0)
    return y1 @ w2.T + b2


if __name__ == "__main__":
    N, C, H, W, no_c = 2, 4, 16, 16, 10

    key = jax.random.PRNGKey(0)
    ks = jax.random.split(key, 7)
    x = jax.random.normal(ks[0], (N, C, H, W), jnp.float32)
    # deterministic synthetic parameters (shapes from auxl.__init__)
    wc = jax.random.normal(ks[1], (128, C, 1, 1), jnp.float32) * 0.1        # conv1.weight
    bc = jax.random.normal(ks[2], (128,), jnp.float32) * 0.1                # conv1.bias
    w1 = jax.random.normal(ks[3], (1024, 128 * 4 * 4), jnp.float32) * 0.02  # fc1.weight
    b1 = jax.random.normal(ks[4], (1024,), jnp.float32) * 0.1               # fc1.bias
    w2 = jax.random.normal(ks[5], (no_c, 1024), jnp.float32) * 0.02         # fc2.weight
    b2 = jax.random.normal(ks[6], (no_c,), jnp.float32) * 0.1               # fc2.bias
    params = (wc, bc, w1, b1, w2, b2)

    auxl_forward = make_auxl_forward(params)            # one-time weight packing
    out = jax.block_until_ready(auxl_forward(x))
    ref = auxl_reference(x, params)

    assert out.shape == (N, no_c), out.shape
    err = float(jnp.max(jnp.abs(out - ref)))
    # bf16 MXU operands (f32 accumulation) => slightly relaxed tolerance
    assert jnp.allclose(out, ref, atol=2e-2, rtol=2e-2), err
    print("KERNEL_OK")
</pallas_src>

<mosaic_0001>
module attributes {stable_mosaic.version = 11 : i64} {
  func.func @auxl_kernel(%arg0: i32, %arg1: i32, %arg2: memref<16x8x4xbf16, #tpu.memory_space<vmem>>, %arg3: memref<4x128xbf16, #tpu.memory_space<vmem>>, %arg4: memref<1x128xf32, #tpu.memory_space<vmem>>, %arg5: memref<2048x256xbf16, #tpu.memory_space<vmem>>, %arg6: memref<1x256xf32, #tpu.memory_space<vmem>>, %arg7: memref<256x128xbf16, #tpu.memory_space<vmem>>, %arg8: memref<8x128xf32, #tpu.memory_space<vmem>>, %arg9: memref<8x2048xbf16, #tpu.memory_space<vmem>>, %arg10: memref<8x128xf32, #tpu.memory_space<vmem>>) attributes {dimension_semantics = [#tpu.dimension_semantics<parallel>, #tpu.dimension_semantics<arbitrary>], iteration_bounds = array<i64: 2, 2>, scalar_prefetch = 0 : i64, scratch_operands = 2 : i64, tpu.core_type = #tpu.core_type<tc>, window_params = [{pipeline_mode = #tpu.pipeline_mode<synchronous>, transform_indices = @transform_0, window_bounds = array<i64: 16, 8, 4>}, {pipeline_mode = #tpu.pipeline_mode<synchronous>, transform_indices = @transform_1, window_bounds = array<i64: 4, 128>}, {pipeline_mode = #tpu.pipeline_mode<synchronous>, transform_indices = @transform_2, window_bounds = array<i64: 1, 128>}, {transform_indices = @transform_3, window_bounds = array<i64: 2048, 256>}, {transform_indices = @transform_4, window_bounds = array<i64: 1, 256>}, {transform_indices = @transform_5, window_bounds = array<i64: 256, 128>}, {transform_indices = @transform_6, window_bounds = array<i64: 8, 128>}]} {
    %c0_i32 = arith.constant 0 : i32
    %0 = arith.cmpi eq, %arg1, %c0_i32 : i32
    %1 = arith.extui %0 : i1 to i32
    %c0_i32_0 = arith.constant 0 : i32
    %2 = arith.cmpi ne, %1, %c0_i32_0 : i32
    scf.if %2 {
      %c0_15 = arith.constant 0 : index
      %c0_16 = arith.constant 0 : index
      %c0_17 = arith.constant 0 : index
      %20 = vector.load %arg2[%c0_15, %c0_16, %c0_17] : memref<16x8x4xbf16, #tpu.memory_space<vmem>>, vector<1x8x4xbf16>
      %21 = vector.shape_cast %20 : vector<1x8x4xbf16> to vector<8x4xbf16>
      %c0_18 = arith.constant 0 : index
      %c0_19 = arith.constant 0 : index
      %22 = vector.load %arg3[%c0_18, %c0_19] : memref<4x128xbf16, #tpu.memory_space<vmem>>, vector<4x128xbf16>
      %cst_20 = arith.constant dense<0.000000e+00> : vector<8x128xf32>
      %23 = tpu.matmul %21, %22, %cst_20 {dimension_numbers = #tpu.dot_dimension_numbers<[1], [0], [0], [1], [0, 0, 1, 1], [], []>} : vector<8x4xbf16>, vector<4x128xbf16>, vector<8x128xf32> -> vector<8x128xf32>
      %c0_21 = arith.constant 0 : index
      %c0_22 = arith.constant 0 : index
      %24 = vector.load %arg4[%c0_21, %c0_22] : memref<1x128xf32, #tpu.memory_space<vmem>>, vector<1x128xf32>
      %25 = vector.broadcast %24 : vector<1x128xf32> to vector<8x128xf32>
      %26 = arith.addf %23, %25 : vector<8x128xf32>
      %cst_23 = arith.constant 0.000000e+00 : f32
      %27 = vector.broadcast %cst_23 : f32 to vector<8x128xf32>
      %28 = arith.maximumf %26, %27 : vector<8x128xf32>
      %29 = arith.truncf %28 : vector<8x128xf32> to vector<8x128xbf16>
      %c0_24 = arith.constant 0 : index
      %c0_25 = arith.constant 0 : index
      %30 = vector.load %arg9[%c0_24, %c0_25] : memref<8x2048xbf16, #tpu.memory_space<vmem>>, vector<8x128xbf16>
      tpu.vector_store %arg9[%c0_24, %c0_25], %29 {strides = array<i32>} : memref<8x2048xbf16, #tpu.memory_space<vmem>>, vector<8x128xbf16>,
      %c1 = arith.constant 1 : index
      %c0_26 = arith.constant 0 : index
      %c0_27 = arith.constant 0 : index
      %31 = vector.load %arg2[%c1, %c0_26, %c0_27] : memref<16x8x4xbf16, #tpu.memory_space<vmem>>, vector<1x8x4xbf16>
      %32 = vector.shape_cast %31 : vector<1x8x4xbf16> to vector<8x4xbf16>
      %c0_28 = arith.constant 0 : index
      %c0_29 = arith.constant 0 : index
      %33 = vector.load %arg3[%c0_28, %c0_29] : memref<4x128xbf16, #tpu.memory_space<vmem>>, vector<4x128xbf16>
      %cst_30 = arith.constant dense<0.000000e+00> : vector<8x128xf32>
      %34 = tpu.matmul %32, %33, %cst_30 {dimension_numbers = #tpu.dot_dimension_numbers<[1], [0], [0], [1], [0, 0, 1, 1], [], []>} : vector<8x4xbf16>, vector<4x128xbf16>, vector<8x128xf32> -> vector<8x128xf32>
      %c0_31 = arith.constant 0 : index
      %c0_32 = arith.constant 0 : index
      %35 = vector.load %arg4[%c0_31, %c0_32] : memref<1x128xf32, #tpu.memory_space<vmem>>, vector<1x128xf32>
      %36 = vector.broadcast %35 : vector<1x128xf32> to vector<8x128xf32>
      %37 = arith.addf %34, %36 : vector<8x128xf32>
      %cst_33 = arith.constant 0.000000e+00 : f32
      %38 = vector.broadcast %cst_33 : f32 to vector<8x128xf32>
      %39 = arith.maximumf %37, %38 : vector<8x128xf32>
      %40 = arith.truncf %39 : vector<8x128xf32> to vector<8x128xbf16>
      %c0_34 = arith.constant 0 : index
      %c128 = arith.constant 128 : index
      %41 = vector.load %arg9[%c0_34, %c128] : memref<8x2048xbf16, #tpu.memory_space<vmem>>, vector<8x128xbf16>
      tpu.vector_store %arg9[%c0_34, %c128], %40 {strides = array<i32>} : memref<8x2048xbf16, #tpu.memory_space<vmem>>, vector<8x128xbf16>,
      %c2 = arith.constant 2 : index
      %c0_35 = arith.constant 0 : index
      %c0_36 = arith.constant 0 : index
      %42 = vector.load %arg2[%c2, %c0_35, %c0_36] : memref<16x8x4xbf16, #tpu.memory_space<vmem>>, vector<1x8x4xbf16>
      %43 = vector.shape_cast %42 : vector<1x8x4xbf16> to vector<8x4xbf16>
      %c0_37 = arith.constant 0 : index
      %c0_38 = arith.constant 0 : index
      %44 = vector.load %arg3[%c0_37, %c0_38] : memref<4x128xbf16, #tpu.memory_space<vmem>>, vector<4x128xbf16>
      %cst_39 = arith.constant dense<0.000000e+00> : vector<8x128xf32>
      %45 = tpu.matmul %43, %44, %cst_39 {dimension_numbers = #tpu.dot_dimension_numbers<[1], [0], [0], [1], [0, 0, 1, 1], [], []>} : vector<8x4xbf16>, vector<4x128xbf16>, vector<8x128xf32> -> vector<8x128xf32>
      %c0_40 = arith.constant 0 : index
      %c0_41 = arith.constant 0 : index
      %46 = vector.load %arg4[%c0_40, %c0_41] : memref<1x128xf32, #tpu.memory_space<vmem>>, vector<1x128xf32>
      %47 = vector.broadcast %46 : vector<1x128xf32> to vector<8x128xf32>
      %48 = arith.addf %45, %47 : vector<8x128xf32>
      %cst_42 = arith.constant 0.000000e+00 : f32
      %49 = vector.broadcast %cst_42 : f32 to vector<8x128xf32>
      %50 = arith.maximumf %48, %49 : vector<8x128xf32>
      %51 = arith.truncf %50 : vector<8x128xf32> to vector<8x128xbf16>
      %c0_43 = arith.constant 0 : index
      %c256 = arith.constant 256 : index
      %52 = vector.load %arg9[%c0_43, %c256] : memref<8x2048xbf16, #tpu.memory_space<vmem>>, vector<8x128xbf16>
      tpu.vector_store %arg9[%c0_43, %c256], %51 {strides = array<i32>} : memref<8x2048xbf16, #tpu.memory_space<vmem>>, vector<8x128xbf16>,
      %c3 = arith.constant 3 : index
      %c0_44 = arith.constant 0 : index
      %c0_45 = arith.constant 0 : index
      %53 = vector.load %arg2[%c3, %c0_44, %c0_45] : memref<16x8x4xbf16, #tpu.memory_space<vmem>>, vector<1x8x4xbf16>
      %54 = vector.shape_cast %53 : vector<1x8x4xbf16> to vector<8x4xbf16>
      %c0_46 = arith.constant 0 : index
      %c0_47 = arith.constant 0 : index
      %55 = vector.load %arg3[%c0_46, %c0_47] : memref<4x128xbf16, #tpu.memory_space<vmem>>, vector<4x128xbf16>
      %cst_48 = arith.constant dense<0.000000e+00> : vector<8x128xf32>
      %56 = tpu.matmul %54, %55, %cst_48 {dimension_numbers = #tpu.dot_dimension_numbers<[1], [0], [0], [1], [0, 0, 1, 1], [], []>} : vector<8x4xbf16>, vector<4x128xbf16>, vector<8x128xf32> -> vector<8x128xf32>
      %c0_49 = arith.constant 0 : index
      %c0_50 = arith.constant 0 : index
      %57 = vector.load %arg4[%c0_49, %c0_50] : memref<1x128xf32, #tpu.memory_space<vmem>>, vector<1x128xf32>
      %58 = vector.broadcast %57 : vector<1x128xf32> to vector<8x128xf32>
      %59 = arith.addf %56, %58 : vector<8x128xf32>
      %cst_51 = arith.constant 0.000000e+00 : f32
      %60 = vector.broadcast %cst_51 : f32 to vector<8x128xf32>
      %61 = arith.maximumf %59, %60 : vector<8x128xf32>
      %62 = arith.truncf %61 : vector<8x128xf32> to vector<8x128xbf16>
      %c0_52 = arith.constant 0 : index
      %c384 = arith.constant 384 : index
      %63 = vector.load %arg9[%c0_52, %c384] : memref<8x2048xbf16, #tpu.memory_space<vmem>>, vector<8x128xbf16>
      tpu.vector_store %arg9[%c0_52, %c384], %62 {strides = array<i32>} : memref<8x2048xbf16, #tpu.memory_space<vmem>>, vector<8x128xbf16>,
      %c4 = arith.constant 4 : index
      %c0_53 = arith.constant 0 : index
      %c0_54 = arith.constant 0 : index
      %64 = vector.load %arg2[%c4, %c0_53, %c0_54] : memref<16x8x4xbf16, #tpu.memory_space<vmem>>, vector<1x8x4xbf16>
      %65 = vector.shape_cast %64 : vector<1x8x4xbf16> to vector<8x4xbf16>
      %c0_55 = arith.constant 0 : index
      %c0_56 = arith.constant 0 : index
      %66 = vector.load %arg3[%c0_55, %c0_56] : memref<4x128xbf16, #tpu.memory_space<vmem>>, vector<4x128xbf16>
      %cst_57 = arith.constant dense<0.000000e+00> : vector<8x128xf32>
      %67 = tpu.matmul %65, %66, %cst_57 {dimension_numbers = #tpu.dot_dimension_numbers<[1], [0], [0], [1], [0, 0, 1, 1], [], []>} : vector<8x4xbf16>, vector<4x128xbf16>, vector<8x128xf32> -> vector<8x128xf32>
      %c0_58 = arith.constant 0 : index
      %c0_59 = arith.constant 0 : index
      %68 = vector.load %arg4[%c0_58, %c0_59] : memref<1x128xf32, #tpu.memory_space<vmem>>, vector<1x128xf32>
      %69 = vector.broadcast %68 : vector<1x128xf32> to vector<8x128xf32>
      %70 = arith.addf %67, %69 : vector<8x128xf32>
      %cst_60 = arith.constant 0.000000e+00 : f32
      %71 = vector.broadcast %cst_60 : f32 to vector<8x128xf32>
      %72 = arith.maximumf %70, %71 : vector<8x128xf32>
      %73 = arith.truncf %72 : vector<8x128xf32> to vector<8x128xbf16>
      %c0_61 = arith.constant 0 : index
      %c512 = arith.constant 512 : index
      %74 = vector.load %arg9[%c0_61, %c512] : memref<8x2048xbf16, #tpu.memory_space<vmem>>, vector<8x128xbf16>
      tpu.vector_store %arg9[%c0_61, %c512], %73 {strides = array<i32>} : memref<8x2048xbf16, #tpu.memory_space<vmem>>, vector<8x128xbf16>,
      %c5 = arith.constant 5 : index
      %c0_62 = arith.constant 0 : index
      %c0_63 = arith.constant 0 : index
      %75 = vector.load %arg2[%c5, %c0_62, %c0_63] : memref<16x8x4xbf16, #tpu.memory_space<vmem>>, vector<1x8x4xbf16>
      %76 = vector.shape_cast %75 : vector<1x8x4xbf16> to vector<8x4xbf16>
      %c0_64 = arith.constant 0 : index
      %c0_65 = arith.constant 0 : index
      %77 = vector.load %arg3[%c0_64, %c0_65] : memref<4x128xbf16, #tpu.memory_space<vmem>>, vector<4x128xbf16>
      %cst_66 = arith.constant dense<0.000000e+00> : vector<8x128xf32>
      %78 = tpu.matmul %76, %77, %cst_66 {dimension_numbers = #tpu.dot_dimension_numbers<[1], [0], [0], [1], [0, 0, 1, 1], [], []>} : vector<8x4xbf16>, vector<4x128xbf16>, vector<8x128xf32> -> vector<8x128xf32>
      %c0_67 = arith.constant 0 : index
      %c0_68 = arith.constant 0 : index
      %79 = vector.load %arg4[%c0_67, %c0_68] : memref<1x128xf32, #tpu.memory_space<vmem>>, vector<1x128xf32>
      %80 = vector.broadcast %79 : vector<1x128xf32> to vector<8x128xf32>
      %81 = arith.addf %78, %80 : vector<8x128xf32>
      %cst_69 = arith.constant 0.000000e+00 : f32
      %82 = vector.broadcast %cst_69 : f32 to vector<8x128xf32>
      %83 = arith.maximumf %81, %82 : vector<8x128xf32>
      %84 = arith.truncf %83 : vector<8x128xf32> to vector<8x128xbf16>
      %c0_70 = arith.constant 0 : index
      %c640 = arith.constant 640 : index
      %85 = vector.load %arg9[%c0_70, %c640] : memref<8x2048xbf16, #tpu.memory_space<vmem>>, vector<8x128xbf16>
      tpu.vector_store %arg9[%c0_70, %c640], %84 {strides = array<i32>} : memref<8x2048xbf16, #tpu.memory_space<vmem>>, vector<8x128xbf16>,
      %c6 = arith.constant 6 : index
      %c0_71 = arith.constant 0 : index
      %c0_72 = arith.constant 0 : index
      %86 = vector.load %arg2[%c6, %c0_71, %c0_72] : memref<16x8x4xbf16, #tpu.memory_space<vmem>>, vector<1x8x4xbf16>
      %87 = vector.shape_cast %86 : vector<1x8x4xbf16> to vector<8x4xbf16>
      %c0_73 = arith.constant 0 : index
      %c0_74 = arith.constant 0 : index
      %88 = vector.load %arg3[%c0_73, %c0_74] : memref<4x128xbf16, #tpu.memory_space<vmem>>, vector<4x128xbf16>
      %cst_75 = arith.constant dense<0.000000e+00> : vector<8x128xf32>
      %89 = tpu.matmul %87, %88, %cst_75 {dimension_numbers = #tpu.dot_dimension_numbers<[1], [0], [0], [1], [0, 0, 1, 1], [], []>} : vector<8x4xbf16>, vector<4x128xbf16>, vector<8x128xf32> -> vector<8x128xf32>
      %c0_76 = arith.constant 0 : index
      %c0_77 = arith.constant 0 : index
      %90 = vector.load %arg4[%c0_76, %c0_77] : memref<1x128xf32, #tpu.memory_space<vmem>>, vector<1x128xf32>
      %91 = vector.broadcast %90 : vector<1x128xf32> to vector<8x128xf32>
      %92 = arith.addf %89, %91 : vector<8x128xf32>
      %cst_78 = arith.constant 0.000000e+00 : f32
      %93 = vector.broadcast %cst_78 : f32 to vector<8x128xf32>
      %94 = arith.maximumf %92, %93 : vector<8x128xf32>
      %95 = arith.truncf %94 : vector<8x128xf32> to vector<8x128xbf16>
      %c0_79 = arith.constant 0 : index
      %c768 = arith.constant 768 : index
      %96 = vector.load %arg9[%c0_79, %c768] : memref<8x2048xbf16, #tpu.memory_space<vmem>>, vector<8x128xbf16>
      tpu.vector_store %arg9[%c0_79, %c768], %95 {strides = array<i32>} : memref<8x2048xbf16, #tpu.memory_space<vmem>>, vector<8x128xbf16>,
      %c7 = arith.constant 7 : index
      %c0_80 = arith.constant 0 : index
      %c0_81 = arith.constant 0 : index
      %97 = vector.load %arg2[%c7, %c0_80, %c0_81] : memref<16x8x4xbf16, #tpu.memory_space<vmem>>, vector<1x8x4xbf16>
      %98 = vector.shape_cast %97 : vector<1x8x4xbf16> to vector<8x4xbf16>
      %c0_82 = arith.constant 0 : index
      %c0_83 = arith.constant 0 : index
      %99 = vector.load %arg3[%c0_82, %c0_83] : memref<4x128xbf16, #tpu.memory_space<vmem>>, vector<4x128xbf16>
      %cst_84 = arith.constant dense<0.000000e+00> : vector<8x128xf32>
      %100 = tpu.matmul %98, %99, %cst_84 {dimension_numbers = #tpu.dot_dimension_numbers<[1], [0], [0], [1], [0, 0, 1, 1], [], []>} : vector<8x4xbf16>, vector<4x128xbf16>, vector<8x128xf32> -> vector<8x128xf32>
      %c0_85 = arith.constant 0 : index
      %c0_86 = arith.constant 0 : index
      %101 = vector.load %arg4[%c0_85, %c0_86] : memref<1x128xf32, #tpu.memory_space<vmem>>, vector<1x128xf32>
      %102 = vector.broadcast %101 : vector<1x128xf32> to vector<8x128xf32>
      %103 = arith.addf %100, %102 : vector<8x128xf32>
      %cst_87 = arith.constant 0.000000e+00 : f32
      %104 = vector.broadcast %cst_87 : f32 to vector<8x128xf32>
      %105 = arith.maximumf %103, %104 : vector<8x128xf32>
      %106 = arith.truncf %105 : vector<8x128xf32> to vector<8x128xbf16>
      %c0_88 = arith.constant 0 : index
      %c896 = arith.constant 896 : index
      %107 = vector.load %arg9[%c0_88, %c896] : memref<8x2048xbf16, #tpu.memory_space<vmem>>, vector<8x128xbf16>
      tpu.vector_store %arg9[%c0_88, %c896], %106 {strides = array<i32>} : memref<8x2048xbf16, #tpu.memory_space<vmem>>, vector<8x128xbf16>,
      %c8 = arith.constant 8 : index
      %c0_89 = arith.constant 0 : index
      %c0_90 = arith.constant 0 : index
      %108 = vector.load %arg2[%c8, %c0_89, %c0_90] : memref<16x8x4xbf16, #tpu.memory_space<vmem>>, vector<1x8x4xbf16>
      %109 = vector.shape_cast %108 : vector<1x8x4xbf16> to vector<8x4xbf16>
      %c0_91 = arith.constant 0 : index
      %c0_92 = arith.constant 0 : index
      %110 = vector.load %arg3[%c0_91, %c0_92] : memref<4x128xbf16, #tpu.memory_space<vmem>>, vector<4x128xbf16>
      %cst_93 = arith.constant dense<0.000000e+00> : vector<8x128xf32>
      %111 = tpu.matmul %109, %110, %cst_93 {dimension_numbers = #tpu.dot_dimension_numbers<[1], [0], [0], [1], [0, 0, 1, 1], [], []>} : vector<8x4xbf16>, vector<4x128xbf16>, vector<8x128xf32> -> vector<8x128xf32>
      %c0_94 = arith.constant 0 : index
      %c0_95 = arith.constant 0 : index
      %112 = vector.load %arg4[%c0_94, %c0_95] : memref<1x128xf32, #tpu.memory_space<vmem>>, vector<1x128xf32>
      %113 = vector.broadcast %112 : vector<1x128xf32> to vector<8x128xf32>
      %114 = arith.addf %111, %113 : vector<8x128xf32>
      %cst_96 = arith.constant 0.000000e+00 : f32
      %115 = vector.broadcast %cst_96 : f32 to vector<8x128xf32>
      %116 = arith.maximumf %114, %115 : vector<8x128xf32>
      %117 = arith.truncf %116 : vector<8x128xf32> to vector<8x128xbf16>
      %c0_97 = arith.constant 0 : index
      %c1024 = arith.constant 1024 : index
      %118 = vector.load %arg9[%c0_97, %c1024] : memref<8x2048xbf16, #tpu.memory_space<vmem>>, vector<8x128xbf16>
      tpu.vector_store %arg9[%c0_97, %c1024], %117 {strides = array<i32>} : memref<8x2048xbf16, #tpu.memory_space<vmem>>, vector<8x128xbf16>,
      %c9 = arith.constant 9 : index
      %c0_98 = arith.constant 0 : index
      %c0_99 = arith.constant 0 : index
      %119 = vector.load %arg2[%c9, %c0_98, %c0_99] : memref<16x8x4xbf16, #tpu.memory_space<vmem>>, vector<1x8x4xbf16>
      %120 = vector.shape_cast %119 : vector<1x8x4xbf16> to vector<8x4xbf16>
      %c0_100 = arith.constant 0 : index
      %c0_101 = arith.constant 0 : index
      %121 = vector.load %arg3[%c0_100, %c0_101] : memref<4x128xbf16, #tpu.memory_space<vmem>>, vector<4x128xbf16>
      %cst_102 = arith.constant dense<0.000000e+00> : vector<8x128xf32>
      %122 = tpu.matmul %120, %121, %cst_102 {dimension_numbers = #tpu.dot_dimension_numbers<[1], [0], [0], [1], [0, 0, 1, 1], [], []>} : vector<8x4xbf16>, vector<4x128xbf16>, vector<8x128xf32> -> vector<8x128xf32>
      %c0_103 = arith.constant 0 : index
      %c0_104 = arith.constant 0 : index
      %123 = vector.load %arg4[%c0_103, %c0_104] : memref<1x128xf32, #tpu.memory_space<vmem>>, vector<1x128xf32>
      %124 = vector.broadcast %123 : vector<1x128xf32> to vector<8x128xf32>
      %125 = arith.addf %122, %124 : vector<8x128xf32>
      %cst_105 = arith.constant 0.000000e+00 : f32
      %126 = vector.broadcast %cst_105 : f32 to vector<8x128xf32>
      %127 = arith.maximumf %125, %126 : vector<8x128xf32>
      %128 = arith.truncf %127 : vector<8x128xf32> to vector<8x128xbf16>
      %c0_106 = arith.constant 0 : index
      %c1152 = arith.constant 1152 : index
      %129 = vector.load %arg9[%c0_106, %c1152] : memref<8x2048xbf16, #tpu.memory_space<vmem>>, vector<8x128xbf16>
      tpu.vector_store %arg9[%c0_106, %c1152], %128 {strides = array<i32>} : memref<8x2048xbf16, #tpu.memory_space<vmem>>, vector<8x128xbf16>,
      %c10 = arith.constant 10 : index
      %c0_107 = arith.constant 0 : index
      %c0_108 = arith.constant 0 : index
      %130 = vector.load %arg2[%c10, %c0_107, %c0_108] : memref<16x8x4xbf16, #tpu.memory_space<vmem>>, vector<1x8x4xbf16>
      %131 = vector.shape_cast %130 : vector<1x8x4xbf16> to vector<8x4xbf16>
      %c0_109 = arith.constant 0 : index
      %c0_110 = arith.constant 0 : index
      %132 = vector.load %arg3[%c0_109, %c0_110] : memref<4x128xbf16, #tpu.memory_space<vmem>>, vector<4x128xbf16>
      %cst_111 = arith.constant dense<0.000000e+00> : vector<8x128xf32>
      %133 = tpu.matmul %131, %132, %cst_111 {dimension_numbers = #tpu.dot_dimension_numbers<[1], [0], [0], [1], [0, 0, 1, 1], [], []>} : vector<8x4xbf16>, vector<4x128xbf16>, vector<8x128xf32> -> vector<8x128xf32>
      %c0_112 = arith.constant 0 : index
      %c0_113 = arith.constant 0 : index
      %134 = vector.load %arg4[%c0_112, %c0_113] : memref<1x128xf32, #tpu.memory_space<vmem>>, vector<1x128xf32>
      %135 = vector.broadcast %134 : vector<1x128xf32> to vector<8x128xf32>
      %136 = arith.addf %133, %135 : vector<8x128xf32>
      %cst_114 = arith.constant 0.000000e+00 : f32
      %137 = vector.broadcast %cst_114 : f32 to vector<8x128xf32>
      %138 = arith.maximumf %136, %137 : vector<8x128xf32>
      %139 = arith.truncf %138 : vector<8x128xf32> to vector<8x128xbf16>
      %c0_115 = arith.constant 0 : index
      %c1280 = arith.constant 1280 : index
      %140 = vector.load %arg9[%c0_115, %c1280] : memref<8x2048xbf16, #tpu.memory_space<vmem>>, vector<8x128xbf16>
      tpu.vector_store %arg9[%c0_115, %c1280], %139 {strides = array<i32>} : memref<8x2048xbf16, #tpu.memory_space<vmem>>, vector<8x128xbf16>,
      %c11 = arith.constant 11 : index
      %c0_116 = arith.constant 0 : index
      %c0_117 = arith.constant 0 : index
      %141 = vector.load %arg2[%c11, %c0_116, %c0_117] : memref<16x8x4xbf16, #tpu.memory_space<vmem>>, vector<1x8x4xbf16>
      %142 = vector.shape_cast %141 : vector<1x8x4xbf16> to vector<8x4xbf16>
      %c0_118 = arith.constant 0 : index
      %c0_119 = arith.constant 0 : index
      %143 = vector.load %arg3[%c0_118, %c0_119] : memref<4x128xbf16, #tpu.memory_space<vmem>>, vector<4x128xbf16>
      %cst_120 = arith.constant dense<0.000000e+00> : vector<8x128xf32>
      %144 = tpu.matmul %142, %143, %cst_120 {dimension_numbers = #tpu.dot_dimension_numbers<[1], [0], [0], [1], [0, 0, 1, 1], [], []>} : vector<8x4xbf16>, vector<4x128xbf16>, vector<8x128xf32> -> vector<8x128xf32>
      %c0_121 = arith.constant 0 : index
      %c0_122 = arith.constant 0 : index
      %145 = vector.load %arg4[%c0_121, %c0_122] : memref<1x128xf32, #tpu.memory_space<vmem>>, vector<1x128xf32>
      %146 = vector.broadcast %145 : vector<1x128xf32> to vector<8x128xf32>
      %147 = arith.addf %144, %146 : vector<8x128xf32>
      %cst_123 = arith.constant 0.000000e+00 : f32
      %148 = vector.broadcast %cst_123 : f32 to vector<8x128xf32>
      %149 = arith.maximumf %147, %148 : vector<8x128xf32>
      %150 = arith.truncf %149 : vector<8x128xf32> to vector<8x128xbf16>
      %c0_124 = arith.constant 0 : index
      %c1408 = arith.constant 1408 : index
      %151 = vector.load %arg9[%c0_124, %c1408] : memref<8x2048xbf16, #tpu.memory_space<vmem>>, vector<8x128xbf16>
      tpu.vector_store %arg9[%c0_124, %c1408], %150 {strides = array<i32>} : memref<8x2048xbf16, #tpu.memory_space<vmem>>, vector<8x128xbf16>,
      %c12 = arith.constant 12 : index
      %c0_125 = arith.constant 0 : index
      %c0_126 = arith.constant 0 : index
      %152 = vector.load %arg2[%c12, %c0_125, %c0_126] : memref<16x8x4xbf16, #tpu.memory_space<vmem>>, vector<1x8x4xbf16>
      %153 = vector.shape_cast %152 : vector<1x8x4xbf16> to vector<8x4xbf16>
      %c0_127 = arith.constant 0 : index
      %c0_128 = arith.constant 0 : index
      %154 = vector.load %arg3[%c0_127, %c0_128] : memref<4x128xbf16, #tpu.memory_space<vmem>>, vector<4x128xbf16>
      %cst_129 = arith.constant dense<0.000000e+00> : vector<8x128xf32>
      %155 = tpu.matmul %153, %154, %cst_129 {dimension_numbers = #tpu.dot_dimension_numbers<[1], [0], [0], [1], [0, 0, 1, 1], [], []>} : vector<8x4xbf16>, vector<4x128xbf16>, vector<8x128xf32> -> vector<8x128xf32>
      %c0_130 = arith.constant 0 : index
      %c0_131 = arith.constant 0 : index
      %156 = vector.load %arg4[%c0_130, %c0_131] : memref<1x128xf32, #tpu.memory_space<vmem>>, vector<1x128xf32>
      %157 = vector.broadcast %156 : vector<1x128xf32> to vector<8x128xf32>
      %158 = arith.addf %155, %157 : vector<8x128xf32>
      %cst_132 = arith.constant 0.000000e+00 : f32
      %159 = vector.broadcast %cst_132 : f32 to vector<8x128xf32>
      %160 = arith.maximumf %158, %159 : vector<8x128xf32>
      %161 = arith.truncf %160 : vector<8x128xf32> to vector<8x128xbf16>
      %c0_133 = arith.constant 0 : index
      %c1536 = arith.constant 1536 : index
      %162 = vector.load %arg9[%c0_133, %c1536] : memref<8x2048xbf16, #tpu.memory_space<vmem>>, vector<8x128xbf16>
      tpu.vector_store %arg9[%c0_133, %c1536], %161 {strides = array<i32>} : memref<8x2048xbf16, #tpu.memory_space<vmem>>, vector<8x128xbf16>,
      %c13 = arith.constant 13 : index
      %c0_134 = arith.constant 0 : index
      %c0_135 = arith.constant 0 : index
      %163 = vector.load %arg2[%c13, %c0_134, %c0_135] : memref<16x8x4xbf16, #tpu.memory_space<vmem>>, vector<1x8x4xbf16>
      %164 = vector.shape_cast %163 : vector<1x8x4xbf16> to vector<8x4xbf16>
      %c0_136 = arith.constant 0 : index
      %c0_137 = arith.constant 0 : index
      %165 = vector.load %arg3[%c0_136, %c0_137] : memref<4x128xbf16, #tpu.memory_space<vmem>>, vector<4x128xbf16>
      %cst_138 = arith.constant dense<0.000000e+00> : vector<8x128xf32>
      %166 = tpu.matmul %164, %165, %cst_138 {dimension_numbers = #tpu.dot_dimension_numbers<[1], [0], [0], [1], [0, 0, 1, 1], [], []>} : vector<8x4xbf16>, vector<4x128xbf16>, vector<8x128xf32> -> vector<8x128xf32>
      %c0_139 = arith.constant 0 : index
      %c0_140 = arith.constant 0 : index
      %167 = vector.load %arg4[%c0_139, %c0_140] : memref<1x128xf32, #tpu.memory_space<vmem>>, vector<1x128xf32>
      %168 = vector.broadcast %167 : vector<1x128xf32> to vector<8x128xf32>
      %169 = arith.addf %166, %168 : vector<8x128xf32>
      %cst_141 = arith.constant 0.000000e+00 : f32
      %170 = vector.broadcast %cst_141 : f32 to vector<8x128xf32>
      %171 = arith.maximumf %169, %170 : vector<8x128xf32>
      %172 = arith.truncf %171 : vector<8x128xf32> to vector<8x128xbf16>
      %c0_142 = arith.constant 0 : index
      %c1664 = arith.constant 1664 : index
      %173 = vector.load %arg9[%c0_142, %c1664] : memref<8x2048xbf16, #tpu.memory_space<vmem>>, vector<8x128xbf16>
      tpu.vector_store %arg9[%c0_142, %c1664], %172 {strides = array<i32>} : memref<8x2048xbf16, #tpu.memory_space<vmem>>, vector<8x128xbf16>,
      %c14 = arith.constant 14 : index
      %c0_143 = arith.constant 0 : index
      %c0_144 = arith.constant 0 : index
      %174 = vector.load %arg2[%c14, %c0_143, %c0_144] : memref<16x8x4xbf16, #tpu.memory_space<vmem>>, vector<1x8x4xbf16>
      %175 = vector.shape_cast %174 : vector<1x8x4xbf16> to vector<8x4xbf16>
      %c0_145 = arith.constant 0 : index
      %c0_146 = arith.constant 0 : index
      %176 = vector.load %arg3[%c0_145, %c0_146] : memref<4x128xbf16, #tpu.memory_space<vmem>>, vector<4x128xbf16>
      %cst_147 = arith.constant dense<0.000000e+00> : vector<8x128xf32>
      %177 = tpu.matmul %175, %176, %cst_147 {dimension_numbers = #tpu.dot_dimension_numbers<[1], [0], [0], [1], [0, 0, 1, 1], [], []>} : vector<8x4xbf16>, vector<4x128xbf16>, vector<8x128xf32> -> vector<8x128xf32>
      %c0_148 = arith.constant 0 : index
      %c0_149 = arith.constant 0 : index
      %178 = vector.load %arg4[%c0_148, %c0_149] : memref<1x128xf32, #tpu.memory_space<vmem>>, vector<1x128xf32>
      %179 = vector.broadcast %178 : vector<1x128xf32> to vector<8x128xf32>
      %180 = arith.addf %177, %179 : vector<8x128xf32>
      %cst_150 = arith.constant 0.000000e+00 : f32
      %181 = vector.broadcast %cst_150 : f32 to vector<8x128xf32>
      %182 = arith.maximumf %180, %181 : vector<8x128xf32>
      %183 = arith.truncf %182 : vector<8x128xf32> to vector<8x128xbf16>
      %c0_151 = arith.constant 0 : index
      %c1792 = arith.constant 1792 : index
      %184 = vector.load %arg9[%c0_151, %c1792] : memref<8x2048xbf16, #tpu.memory_space<vmem>>, vector<8x128xbf16>
      tpu.vector_store %arg9[%c0_151, %c1792], %183 {strides = array<i32>} : memref<8x2048xbf16, #tpu.memory_space<vmem>>, vector<8x128xbf16>,
      %c15 = arith.constant 15 : index
      %c0_152 = arith.constant 0 : index
      %c0_153 = arith.constant 0 : index
      %185 = vector.load %arg2[%c15, %c0_152, %c0_153] : memref<16x8x4xbf16, #tpu.memory_space<vmem>>, vector<1x8x4xbf16>
      %186 = vector.shape_cast %185 : vector<1x8x4xbf16> to vector<8x4xbf16>
      %c0_154 = arith.constant 0 : index
      %c0_155 = arith.constant 0 : index
      %187 = vector.load %arg3[%c0_154, %c0_155] : memref<4x128xbf16, #tpu.memory_space<vmem>>, vector<4x128xbf16>
      %cst_156 = arith.constant dense<0.000000e+00> : vector<8x128xf32>
      %188 = tpu.matmul %186, %187, %cst_156 {dimension_numbers = #tpu.dot_dimension_numbers<[1], [0], [0], [1], [0, 0, 1, 1], [], []>} : vector<8x4xbf16>, vector<4x128xbf16>, vector<8x128xf32> -> vector<8x128xf32>
      %c0_157 = arith.constant 0 : index
      %c0_158 = arith.constant 0 : index
      %189 = vector.load %arg4[%c0_157, %c0_158] : memref<1x128xf32, #tpu.memory_space<vmem>>, vector<1x128xf32>
      %190 = vector.broadcast %189 : vector<1x128xf32> to vector<8x128xf32>
      %191 = arith.addf %188, %190 : vector<8x128xf32>
      %cst_159 = arith.constant 0.000000e+00 : f32
      %192 = vector.broadcast %cst_159 : f32 to vector<8x128xf32>
      %193 = arith.maximumf %191, %192 : vector<8x128xf32>
      %194 = arith.truncf %193 : vector<8x128xf32> to vector<8x128xbf16>
      %c0_160 = arith.constant 0 : index
      %c1920 = arith.constant 1920 : index
      %195 = vector.load %arg9[%c0_160, %c1920] : memref<8x2048xbf16, #tpu.memory_space<vmem>>, vector<8x128xbf16>
      tpu.vector_store %arg9[%c0_160, %c1920], %194 {strides = array<i32>} : memref<8x2048xbf16, #tpu.memory_space<vmem>>, vector<8x128xbf16>,
      %cst_161 = arith.constant 0.000000e+00 : f32
      %196 = vector.broadcast %cst_161 : f32 to vector<8x128xf32>
      %c0_162 = arith.constant 0 : index
      %c0_163 = arith.constant 0 : index
      %197 = vector.load %arg10[%c0_162, %c0_163] : memref<8x128xf32, #tpu.memory_space<vmem>>, vector<8x128xf32>
      tpu.vector_store %arg10[%c0_162, %c0_163], %196 {strides = array<i32>} : memref<8x128xf32, #tpu.memory_space<vmem>>, vector<8x128xf32>,
    } else {
    }
    %c0 = arith.constant 0 : index
    %c0_1 = arith.constant 0 : index
    %3 = vector.load %arg9[%c0, %c0_1] : memref<8x2048xbf16, #tpu.memory_space<vmem>>, vector<8x2048xbf16>
    %c0_2 = arith.constant 0 : index
    %c0_3 = arith.constant 0 : index
    %4 = vector.load %arg5[%c0_2, %c0_3] : memref<2048x256xbf16, #tpu.memory_space<vmem>>, vector<2048x256xbf16>
    %cst = arith.constant dense<0.000000e+00> : vector<8x256xf32>
    %5 = tpu.matmul %3, %4, %cst {dimension_numbers = #tpu.dot_dimension_numbers<[1], [0], [0], [1], [0, 0, 1, 1], [], []>} : vector<8x2048xbf16>, vector<2048x256xbf16>, vector<8x256xf32> -> vector<8x256xf32>
    %c0_4 = arith.constant 0 : index
    %c0_5 = arith.constant 0 : index
    %6 = vector.load %arg6[%c0_4, %c0_5] : memref<1x256xf32, #tpu.memory_space<vmem>>, vector<1x256xf32>
    %7 = vector.broadcast %6 : vector<1x256xf32> to vector<8x256xf32>
    %8 = arith.addf %5, %7 : vector<8x256xf32>
    %cst_6 = arith.constant 0.000000e+00 : f32
    %9 = vector.broadcast %cst_6 : f32 to vector<8x256xf32>
    %10 = arith.maximumf %8, %9 : vector<8x256xf32>
    %c0_7 = arith.constant 0 : index
    %c0_8 = arith.constant 0 : index
    %11 = vector.load %arg10[%c0_7, %c0_8] : memref<8x128xf32, #tpu.memory_space<vmem>>, vector<8x128xf32>
    %12 = arith.truncf %10 : vector<8x256xf32> to vector<8x256xbf16>
    %c0_9 = arith.constant 0 : index
    %c0_10 = arith.constant 0 : index
    %13 = vector.load %arg7[%c0_9, %c0_10] : memref<256x128xbf16, #tpu.memory_space<vmem>>, vector<256x128xbf16>
    %cst_11 = arith.constant dense<0.000000e+00> : vector<8x128xf32>
    %14 = tpu.matmul %12, %13, %cst_11 {dimension_numbers = #tpu.dot_dimension_numbers<[1], [0], [0], [1], [0, 0, 1, 1], [], []>} : vector<8x256xbf16>, vector<256x128xbf16>, vector<8x128xf32> -> vector<8x128xf32>
    %15 = arith.addf %11, %14 : vector<8x128xf32>
    %c0_12 = arith.constant 0 : index
    %c0_13 = arith.constant 0 : index
    %16 = vector.load %arg10[%c0_12, %c0_13] : memref<8x128xf32, #tpu.memory_space<vmem>>, vector<8x128xf32>
    tpu.vector_store %arg10[%c0_12, %c0_13], %15 {strides = array<i32>} : memref<8x128xf32, #tpu.memory_space<vmem>>, vector<8x128xf32>,
    %c1_i32 = arith.constant 1 : i32
    %17 = arith.cmpi eq, %arg1, %c1_i32 : i32
    %18 = arith.extui %17 : i1 to i32
    %c0_i32_14 = arith.constant 0 : i32
    %19 = arith.cmpi ne, %18, %c0_i32_14 : i32
    scf.if %19 {
      %c0_15 = arith.constant 0 : index
      %c0_16 = arith.constant 0 : index
      %20 = vector.load %arg10[%c0_15, %c0_16] : memref<8x128xf32, #tpu.memory_space<vmem>>, vector<8x128xf32>
      %c0_17 = arith.constant 0 : index
      %c0_18 = arith.constant 0 : index
      %21 = vector.load %arg8[%c0_17, %c0_18] : memref<8x128xf32, #tpu.memory_space<vmem>>, vector<8x128xf32>
      tpu.vector_store %arg8[%c0_17, %c0_18], %20 {strides = array<i32>} : memref<8x128xf32, #tpu.memory_space<vmem>>, vector<8x128xf32>,
    } else {
    }
    return
  }
  func.func @transform_0(%arg0: i32, %arg1: i32) -> (i32, i32, i32) {
    %c0_i32 = arith.constant 0 : i32
    %c0_i32_0 = arith.constant 0 : i32
    %c0_i32_1 = arith.constant 0 : i32
    %c0_i32_2 = arith.constant 0 : i32
    return %c0_i32, %c0_i32_0, %c0_i32_1 : i32, i32, i32
  }
  func.func @transform_1(%arg0: i32, %arg1: i32) -> (i32, i32) {
    %c0_i32 = arith.constant 0 : i32
    %c0_i32_0 = arith.constant 0 : i32
    %c0_i32_1 = arith.constant 0 : i32
    return %c0_i32, %c0_i32_0 : i32, i32
  }
  func.func @transform_2(%arg0: i32, %arg1: i32) -> (i32, i32) {
    %c0_i32 = arith.constant 0 : i32
    %c0_i32_0 = arith.constant 0 : i32
    %c0_i32_1 = arith.constant 0 : i32
    return %c0_i32, %c0_i32_0 : i32, i32
  }
  func.func @transform_3(%arg0: i32, %arg1: i32) -> (i32, i32) {
    %c2_i32 = arith.constant 2 : i32
    %0 = arith.muli %arg0, %c2_i32 : i32
    %1 = arith.addi %0, %arg1 : i32
    %c0_i32 = arith.constant 0 : i32
    %c0_i32_0 = arith.constant 0 : i32
    return %c0_i32, %1 : i32, i32
  }
  func.func @transform_4(%arg0: i32, %arg1: i32) -> (i32, i32) {
    %c2_i32 = arith.constant 2 : i32
    %0 = arith.muli %arg0, %c2_i32 : i32
    %1 = arith.addi %0, %arg1 : i32
    %c0_i32 = arith.constant 0 : i32
    %c0_i32_0 = arith.constant 0 : i32
    return %c0_i32, %1 : i32, i32
  }
  func.func @transform_5(%arg0: i32, %arg1: i32) -> (i32, i32) {
    %c2_i32 = arith.constant 2 : i32
    %0 = arith.muli %arg0, %c2_i32 : i32
    %1 = arith.addi %0, %arg1 : i32
    %c0_i32 = arith.constant 0 : i32
    %c0_i32_0 = arith.constant 0 : i32
    return %1, %c0_i32 : i32, i32
  }
  func.func @transform_6(%arg0: i32, %arg1: i32) -> (i32, i32) {
    %c0_i32 = arith.constant 0 : i32
    %c0_i32_0 = arith.constant 0 : i32
    return %arg0, %c0_i32 : i32, i32
  }
}

</mosaic_0001>

<bundles_post_ra>
// kernel: forward.1
= control target key start
LH: loop header
LB: loop body
LE: loop exit
PB: predicated region body
PF: predicated region fallthrough
CT: control target
= control target key end

     0   :  { %s5933_s0 = inlined_call_operand.vmem [shape: bf16[16,8,4], index: 0, kind: input, shape index: {}]   ;;  %s5934_s1 = inlined_call_operand.hbm [shape: bf16[4,128], index: 1, kind: input, shape index: {}]   ;;  %s5935_s2 = inlined_call_operand.hbm [shape: f32[1,128], index: 2, kind: input, shape index: {}]   ;;  %s5936_s3 = inlined_call_operand.hbm [shape: bf16[2048,1024], index: 3, kind: input, shape index: {}]   ;;  %s5937_s4 = inlined_call_operand.hbm [shape: f32[1,1024], index: 4, kind: input, shape index: {}]   ;;  %s5938_s5 = inlined_call_operand.hbm [shape: bf16[1024,128], index: 5, kind: input, shape index: {}]   ;;  %s5939_s6 = inlined_call_operand.vmem [shape: f32[16,128], index: 6, kind: output, shape index: {}]  }
   0x1   :  { %5947 = sst [smem:[#allocation21_spill]] %s5933_s0 }
   0x2   :  { %5948 = sst [smem:[#allocation22_spill]] %s5934_s1 }
   0x3   :  { %5949 = sst [smem:[#allocation23_spill]] %s5936_s3 }
   0x4   :  { %11 = vsyncpa [#allocation5], 0 }
   0x5   :  { %12 = vsyncpa [#allocation7], 0  ;;  %s5034_s21 = smov 0   ;;  %s5036_s22 = smov 0  }
   0x6   :  { %s5038_s23 = smov 0   ;;  %s5040_s24 = smov 0  }
   0x7   :  { %s5042_s25 = smov 0   ;;  %s5044_s26 = smov 0  }
   0x8   :  { %s5046_s27 = smov 0   ;;  %s5048_s28 = smov 0  }
   0x9 LB: > { %5950 = sst [smem:[#allocation14_spill]] %s4969_s23  ;;  %s5940_s29 = sadd.s32 4294967295, %s4989_s28   ;;  %s4989_s28 = sphi %s5048_s28, %s18_s28   ;;  %s4985_s27 = sphi %s5046_s27, %s5978_s27   ;;  %s4981_s26 = sphi %s5044_s26, %s5974_s26   ;;  %s4977_s25 = sphi %s5042_s25, %s5973_s25   ;;  %s4973_s24 = sphi %s5040_s24, %s5972_s24   ;;  %s4969_s23 = sphi %s5038_s23, %s5971_s23   ;;  %s4965_s22 = sphi %s5036_s22, %s5977_s22   ;;  %s4961_s21 = sphi %s5034_s21, %s5976_s21  }
   0xa   : > { %5951 = sst [smem:[#allocation15_spill]] %s4973_s24  ;;  %s27_s30 = sadd.s32 1, %s4981_s26 }
   0xb   : > { %5952 = sst [smem:[#allocation16_spill]] %s4981_s26  ;;  %p28_p0 = scmp.ge.s32.totalorder %s27_s30, 2 }
   0xc   : > { %5953 = sst [smem:[#allocation17_spill]] %s4985_s27  ;;  %s30_s7 = sadd.s32 1, %s4985_s27 }
   0xd   : > { %s3216_s8 = sshll.u32 %s4985_s27, 1  ;;  %s104_s9 = sadd.s32 1, %s4969_s23 }
   0xe   : > { %s5980_s30 = smov (%p28_p0, %s27_s30), 0  ;;  %s5982_s7 = smov (!%p28_p0, %s30_s7), %s4985_s27 }
   0xf   : > { %5954 = sst [smem:[#allocation18_spill]] %s5980_s30  ;;  %s5081_s10 = sadd.s32 %s4981_s26, %s3216_s8 }
  0x10   : > { %p111_p1 = scmp.ne.s32.totalorder %s4969_s23, %s4965_s22  ;;  %p32_p2 = scmp.ge.s32.totalorder %s5982_s7, 2 }
  0x11   : > { %p112_p3 = scmp.eq.s32.totalorder %s4989_s28, 0  ;;  %p117_p4 = scmp.ne.s32.totalorder %s4965_s22, %s4961_s21 }
  0x12   : > { %p5089_p5 = scmp.eq.s32.totalorder %s5940_s29, 0  ;;  %s5984_s7 = smov (%p32_p2, %s5982_s7), 0 }
  0x13   : > { %5956 = sst [smem:[#allocation19_spill]] %s5984_s7  ;;  %p5095_p6 = por %p112_p3, %p111_p1 }
  0x14   : > { %p5101_p7 = por %p5089_p5, %p117_p4  ;;  %s3217_s14 = sshll.u32 %s5984_s7, 1 }
  0x15   : > { %p3222_p8 = scmp.ge.s32.totalorder %s4989_s28, 1  ;;  %s100_s15 = sadd.s32 %s3217_s14, %s5980_s30 }
  0x16   : > { %p214_p9 = scmp.lt.s32.totalorder %s4989_s28, 5  ;;  %s101_s16 = ssub.s32 %s5081_s10, %s100_s15 }
  0x17   : > { %p102_p10 = scmp.eq.s32.totalorder %s101_s16, 0  ;;  %s5960_s1 = sld [smem:[#allocation22_spill]] }
  0x18   : > { %p5110_p11 = pnand %p3222_p8, %p214_p9  ;;  %s4991_s8 = smov [#allocation4]  }
  0x19   : > { %s5118_s21 = scalar_select %p102_p10, %s4969_s23, %s104_s9  }
  0x1a   : > { %p4655_p12 = pneg %p5110_p11  ;;  %s231_s14 = sshll.u32 %s4991_s8, 4  ;;  %s232_s14 = int_to_ptr.vmem [resolvable:$true] %s231_s14 }
  0x1b   : > { %5961 = sst [smem:[#allocation20_spill]] %s5118_s21  ;;  %p4674_p0 = scmp.lt.s32.totalorder %s4989_s28, 4 }
  0x1c   : > { %p5124_p13 = pnand %p4655_p12, %p5089_p5  ;;  %s254_s16 = sand.u32 1, %s4989_s28  }
  0x1d   : > { %s229_s20 = sshll.u32 %s5960_s1, 4  ;;  %p5134_p1 = pnand %p4674_p0, %p5095_p6  ;;  %s230_s20 = int_to_ptr.hbm [resolvable:$true] %s229_s20 }
  0x1e   : > { %4658 = dma.hbm_to_vmem [thread:$0]  (!%p5124_p13), %s230_s20, 32, %s232_s14, [#allocation5]  }
  0x1f   : > { %s5139_s18 = sand.u32 1, %s4969_s23   ;;  %s4367_s8 = sshll.u32 %s5081_s10, 3 }
  0x20   : > { %s3226_s19 = sshll.u32 %s5139_s18, 11  ;;  %s5964_s3 = sld [smem:[#allocation23_spill]] }
  0x21   : > { %s258_s30 = scalar_lea.vmem [#allocation8], %s3226_s19  ;;  %s5146_s12 = scalar_lea.sflag [#allocation5], %s254_s16 }
  0x22   : > { %s268_s27 = sshll.u32 %s258_s30, 4  ;;  %s4992_s14 = smov 512   ;;  %s269_s27 = int_to_ptr.vmem [resolvable:$true] %s268_s27 }
  0x23   : > { %s4993_s26 = smov 128   ;;  %s4994_s21 = smov 8  }
  0x24   : > { %s3230_s23 = sshll.u32 %s5139_s18, 1  ;;  %s3232_s1 = sshll.u32 %s5081_s10, 1 }
  0x25   : > { %s241_s24 = sshll.u32 %s5935_s2, 4  ;;  %s4996_s0 = smov 64   ;;  %s242_s24 = int_to_ptr.hbm [resolvable:$true] %s241_s24 }
  0x26   : > { %s265_s7 = scalar_lea.hbm %s5964_s3, %s4367_s8  ;;  %s282_s8 = scalar_lea.vmem [#allocation9], %s3230_s23 }
  0x27   : > { %s266_s20 = sshll.u32 %s265_s7, 4  ;;  %s288_s7 = scalar_lea.hbm %s5937_s4, %s3232_s1  ;;  %s267_s20 = int_to_ptr.hbm [resolvable:$true] %s266_s20 }
  0x28   : > { %4665 = dma.hbm_to_vmem [thread:$0]  (!%p5134_p1), %s267_s20, 32768, %s269_s27, %s5146_s12, %s4992_s14, %s4993_s26, %s4994_s21  }
  0x29   : > { %s290_s19 = sshll.u32 %s288_s7, 4  ;;  %s292_s16 = sshll.u32 %s282_s8, 4  ;;  %s291_s19 = int_to_ptr.hbm [resolvable:$true] %s290_s19  ;;  %s293_s16 = int_to_ptr.vmem [resolvable:$true] %s292_s16 }
  0x2a   : > { %4668 = dma.hbm_to_vmem [thread:$0]  (!%p5134_p1), %s291_s19, 32, %s293_s16, %s5146_s12  }
  0x2b   : > { %s4995_s26 = smov [#allocation6]   ;;  %s3233_s21 = sshll.u32 %s5139_s18, 7 }
  0x2c   : > { %s243_s27 = sshll.u32 %s4995_s26, 4  ;;  %s4368_s20 = sshll.u32 %s5081_s10, 7  ;;  %s244_s27 = int_to_ptr.vmem [resolvable:$true] %s243_s27 }
  0x2d   : > { %4661 = dma.hbm_to_vmem [thread:$0]  (!%p5124_p13), %s242_s24, 16, %s244_s27, [#allocation7]  }
  0x2e   : > { %s310_s1 = scalar_lea.hbm %s5938_s5, %s4368_s20  ;;  %s303_s29 = scalar_lea.vmem [#allocation10], %s3233_s21 }
  0x2f   : > { %s313_s30 = sshll.u32 %s303_s29, 4  ;;  %s311_s7 = sshll.u32 %s310_s1, 4  ;;  %s314_s30 = int_to_ptr.vmem [resolvable:$true] %s313_s30  ;;  %s312_s7 = int_to_ptr.hbm [resolvable:$true] %s311_s7 }
  0x30   : > { %s4997_s3 = smov 4   ;;  %325 = sbr.rel (%p5110_p11) target bundleno = 810 (0x32a), region = 44 }
  0x31   : > { %4671 = dma.hbm_to_vmem [thread:$0]  (!%p5134_p1), %s312_s7, 2048, %s314_s30, %s5146_s12, %s4996_s0, %s4996_s0, %s4997_s3  }
  0x35   : > { %4948 = dma.done.wait (%p5089_p5), [#allocation5], 32  }
  0x36   : > { %4950 = vsyncadd (%p5089_p5), [#allocation5], 4294967264 }
  0x37   : > { %4952 = dma.done.wait (%p5089_p5), [#allocation7], 16  }
  0x38   : > { %4954 = vsyncadd (%p5089_p5), [#allocation7], 4294967280  ;;  %s5965_s24 = sadd.s32 4294967295, %s4989_s28   ;;  %s339_s15 = sand.u32 1, %s4965_s22  }
  0x39   : > { %s337_s10 = sand.u32 1, %s5965_s24   ;;  %s3240_s17 = sshll.u32 %s339_s15, 11 }
  0x3a   : > { %s338_s9 = scalar_lea.sflag [#allocation5], %s337_s10  ;;  %s5185_s18 = scalar_lea.vmem [#allocation8], %s3240_s17 }
  0x3b   : > { %4956 = dma.done.wait (%p5101_p7), %s338_s9, 34848  }
  0x3c   : > { %4958 = vsyncadd (%p5101_p7), %s338_s9, 4294932448  ;;  %s3241_s12 = sshll.u32 %s339_s15, 1  ;;  %s3242_s11 = sshll.u32 %s339_s15, 7 }
  0x3d   : > { %p409_p2 = scmp.lt.s32.totalorder %s4977_s25, 1  ;;  %s5198_s27 = scalar_lea.vmem [#allocation9], %s3241_s12 }
  0x3e   : > { %s5200_s21 = scalar_lea.vmem [#allocation10], %s3242_s11  ;;  %s5966_s20 = sld [smem:[#allocation15_spill]] }
  0x3f   : > { %s5986_s25 = smov (!%p409_p2, %s4977_s25), 1 }
  0x40   : > { %s3243_s19 = sshll.u32 %s5986_s25, 3 }
  0x41   : > { %s5196_s26 = scalar_lea.vmem %s5939_s6, %s3243_s19 }
  0x44   : > { %p3244_p3 = scmp.ne.s32.totalorder %s5966_s20, 0 }
  0x45   : > { %s5967_s23 = sld [smem:[#allocation21_spill]] (!%p3244_p3) }
  0x46   : > { %417 = sbr.rel (%p3244_p3) target bundleno = 271 (0x10f), region = 68 }
  0x4b   : > { %v419_v0 = vld [vmem:[#allocation4] sm:$0x3]  ;;  %vm428_vm0 = vcmask 1041408   ;;  %vm424_vm1 = vcmask 31744   ;;  %s5968_s14 = smov %s5967_s23  ;;  %v418_v8 = vld [vmem:[%s5967_s23] sm:$0xf] }
  0x4c   : > { %v450_v1 = vld [vmem:[#allocation4] sm:$0x3]  ;;  %v430_v2 = vsel %vm428_vm0, %v419_v0, 0  ;;  %v3246_v9 = vld [vmem:[%s5968_s14 + $0x4] sm:$0xf] }
  0x4d   : > { %v459_v3 = vsel %vm428_vm0, %v450_v1, 0  ;;  %v479_v4 = vld [vmem:[#allocation4] sm:$0x3]  ;;  %439 = vmatpush.bf16.msra.mxu0 %v430_v2  ;;  %v3250_v11 = vld [vmem:[%s5968_s14 + $0xc] sm:$0xf] }
  0x4e   : > { %v508_v5 = vld [vmem:[#allocation4] sm:$0x3]  ;;  %468 = vmatpush.bf16.msra.mxu1 %v459_v3  ;;  %v488_v6 = vsel %vm428_vm0, %v479_v4, 0  ;;  %v3252_v30 = vld [vmem:[%s5968_s14 + $0x10] sm:$0xf] }
  0x4f   : > { %v517_v7 = vsel %vm428_vm0, %v508_v5, 0  ;;  %497 = vmatpush.bf16.msra.mxu2 %v488_v6  ;;  %v3248_v10 = vld [vmem:[%s5968_s14 + $0x8] sm:$0xf]  ;;  %v3254_v31 = vld [vmem:[%s5968_s14 + $0x14] sm:$0xf] }
  0x50   : > { %526 = vmatpush.bf16.msra.mxu3 %v517_v7  ;;  %v595_v12 = vld [vmem:[#allocation4] sm:$0x3]  ;;  %3245 = vmatmul.msk.bf16.vlgmr.msra.gmra.mxu0 %vm424_vm1, %v418_v8  ;;  %v3256_v34 = vld [vmem:[%s5968_s14 + $0x18] sm:$0xf]  ;;  %v3258_v35 = vld [vmem:[%s5968_s14 + $0x1c] sm:$0xf] }
  0x51   : > { %v604_v13 = vsel %vm428_vm0, %v595_v12, 0  ;;  %v624_v14 = vld [vmem:[#allocation4] sm:$0x3]  ;;  %3247 = vmatmul.msk.bf16.vlgmr.msra.gmra.mxu1 %vm424_vm1, %v3246_v9  ;;  %v3260_v40 = vld [vmem:[%s5968_s14 + $0x20] sm:$0xf] }
  0x52   : > { %v537_v15 = vld [vmem:[#allocation4] sm:$0x3]  ;;  %v633_v16 = vsel %vm428_vm0, %v624_v14, 0  ;;  %3249 = vmatmul.msk.bf16.vlgmr.msra.gmra.mxu2 %vm424_vm1, %v3248_v10  ;;  %v3262_v41 = vld [vmem:[%s5968_s14 + $0x24] sm:$0xf] }
  0x53   : > { %v546_v17 = vsel %vm428_vm0, %v537_v15, 0  ;;  %v566_v18 = vld [vmem:[#allocation4] sm:$0x3]  ;;  %3251 = vmatmul.msk.bf16.vlgmr.msra.gmra.mxu3 %vm424_vm1, %v3250_v11  ;;  %613 = vmatpush.bf16.msrb.mxu2 %v604_v13  ;;  %v3266_v43 = vld [vmem:[%s5968_s14 + $0x2c] sm:$0xf] }
  0x54   : > { %v575_v19 = vsel %vm428_vm0, %v566_v18, 0  ;;  %642 = vmatpush.bf16.msrb.mxu3 %v633_v16  ;;  %v711_v20 = vld [vmem:[#allocation4] sm:$0x3]  ;;  %555 = vmatpush.bf16.msrb.mxu0 %v546_v17  ;;  %v3268_v44 = vld [vmem:[%s5968_s14 + $0x30] sm:$0xf] }
  0x55   : > { %v740_v21 = vld [vmem:[#allocation4] sm:$0x3]  ;;  %584 = vmatpush.bf16.msrb.mxu1 %v575_v19  ;;  %v720_v22 = vsel %vm428_vm0, %v711_v20, 0  ;;  %v3270_v45 = vld [vmem:[%s5968_s14 + $0x34] sm:$0xf] }
  0x56   : > { %v749_v23 = vsel %vm428_vm0, %v740_v21, 0  ;;  %v653_v24 = vld [vmem:[#allocation4] sm:$0x3]  ;;  %v3272_v46 = vld [vmem:[%s5968_s14 + $0x38] sm:$0xf] }
  0x57   : > { %v682_v25 = vld [vmem:[#allocation4] sm:$0x3]  ;;  %729 = vmatpush.bf16.msra.mxu2 %v720_v22  ;;  %v662_v26 = vsel %vm428_vm0, %v653_v24, 0  ;;  %v3274_v47 = vld [vmem:[%s5968_s14 + $0x3c] sm:$0xf] }
  0x58   : > { %758 = vmatpush.bf16.msra.mxu3 %v749_v23  ;;  %v691_v27 = vsel %vm428_vm0, %v682_v25, 0  ;;  %671 = vmatpush.bf16.msra.mxu0 %v662_v26  ;;  %v827_v28 = vld [vmem:[#allocation4] sm:$0x3]  ;;  %v4749_v48 = vld [vmem:[#allocation6] ss:$0 sm:$0xff] }
  0x59   : > { %700 = vmatpush.bf16.msra.mxu1 %v691_v27  ;;  %v856_v29 = vld [vmem:[#allocation4] sm:$0x3]  ;;  %v836_v36 = vsel %vm428_vm0, %v827_v28, 0  ;;  %v4750_v49 = vld [vmem:[#allocation6] ss:$0 sm:$0xff] }
  0x5a   : > { %v769_v32 = vld [vmem:[#allocation4] sm:$0x3]  ;;  %v865_v37 = vsel %vm428_vm0, %v856_v29, 0  ;;  %v4751_v56 = vld [vmem:[#allocation6] ss:$0 sm:$0xff] }
  0x5b   : > { %v798_v33 = vld [vmem:[#allocation4] sm:$0x3]  ;;  %v778_v38 = vsel %vm428_vm0, %v769_v32, 0  ;;  %v4752_v57 = vld [vmem:[#allocation6] ss:$0 sm:$0xff] }
  0x5c   : > { %v807_v39 = vsel %vm428_vm0, %v798_v33, 0  ;;  %v3264_v42 = vld [vmem:[%s5968_s14 + $0x28] sm:$0xf] }
  0x5d   : > { %v4753_v6 = vld [vmem:[#allocation6] ss:$0 sm:$0xff] }
  0x5e   : > { %v4754_v7 = vld [vmem:[#allocation6] ss:$0 sm:$0xff] }
  0x5f   : > { %v4755_v16 = vld [vmem:[#allocation6] ss:$0 sm:$0xff] }
  0x60   : > { %3253 = vmatmul.msk.bf16.vlgmr.msrb.gmra.mxu0 %vm424_vm1, %v3252_v30  ;;  %v4756_v17 = vld [vmem:[#allocation6] ss:$0 sm:$0xff] }
  0x61   : > { %3255 = vmatmul.msk.bf16.vlgmr.msrb.gmra.mxu1 %vm424_vm1, %v3254_v31  ;;  %787 = vmatpush.bf16.msrb.mxu0 %v778_v38  ;;  %v4757_v30 = vld [vmem:[#allocation6] ss:$0 sm:$0xff] }
  0x62   : > { %3257 = vmatmul.msk.bf16.vlgmr.msrb.gmra.mxu2 %vm424_vm1, %v3256_v34  ;;  %816 = vmatpush.bf16.msrb.mxu1 %v807_v39  ;;  %v4758_v31 = vld [vmem:[#allocation6] ss:$0 sm:$0xff] }
  0x63   : > { %3259 = vmatmul.msk.bf16.vlgmr.msrb.gmra.mxu3 %vm424_vm1, %v3258_v35  ;;  %845 = vmatpush.bf16.msrb.mxu2 %v836_v36  ;;  %v4998_v36 = vmov 0.0  }
  0x64   : > { %874 = vmatpush.bf16.msrb.mxu3 %v865_v37  ;;  %883 = vst [vmem:[#allocation3] sm:$0xff] %v4998_v36 }
  0x70   : > { %3261 = vmatmul.msk.bf16.vlgmr.msra.gmra.mxu0 %vm424_vm1, %v3260_v40 }
  0x71   : > { %3263 = vmatmul.msk.bf16.vlgmr.msra.gmra.mxu1 %vm424_vm1, %v3262_v41  ;;  %v4759_v41 = vld [vmem:[#allocation6] ss:$0 sm:$0xff] }
  0x72   : > { %3265 = vmatmul.msk.bf16.vlgmr.msra.gmra.mxu2 %vm424_vm1, %v3264_v42  ;;  %v4760_v42 = vld [vmem:[#allocation6] ss:$0 sm:$0xff] }
  0x73   : > { %3267 = vmatmul.msk.bf16.vlgmr.msra.gmra.mxu3 %vm424_vm1, %v3266_v43 }
  0x80   : > { %3269 = vmatmul.msk.bf16.vlgmr.msrb.gmra.mxu0 %vm424_vm1, %v3268_v44 }
  0x81   : > { %3271 = vmatmul.msk.bf16.vlgmr.msrb.gmra.mxu1 %vm424_vm1, %v3270_v45 }
  0x82   : > { %3273 = vmatmul.msk.bf16.vlgmr.msrb.gmra.mxu2 %vm424_vm1, %v3272_v46 }
  0x83   : > { %3275 = vmatmul.msk.bf16.vlgmr.msrb.gmra.mxu3 %vm424_vm1, %v3274_v47 }
  0xcd   : > { %v441_v50 = vpop.f32.mrf.mxu0 }
  0xce   : > { %v470_v51 = vpop.f32.mrf.mxu1  ;;  %v442_v52 = vadd.f32 %v4749_v48, %v441_v50 }
  0xcf   : > { %v471_v53 = vadd.f32 %v4750_v49, %v470_v51 }
  0xd0   : > { %v445_v54 = vmax.f32 %v442_v52, 0.0 }
  0xd1   : > { %v474_v55 = vmax.f32 %v471_v53, 0.0 }
  0xd2   : > { %v446_v58 = vpack.c.bf16 %v445_v54, %v445_v54 }
  0xd3   : > { %v475_v59 = vpack.c.bf16 %v474_v55, %v474_v55  ;;  %v4761_v55 = vld [vmem:[#allocation6] ss:$0 sm:$0xff] }
  0xd4   : > { %447 = vst [vmem:[#allocation2] sm:$0xf] %v446_v58 }
  0xd5   : > { %v499_v60 = vpop.f32.mrf.mxu2  ;;  %476 = vst [vmem:[#allocation2 + $0x4] sm:$0xf] %v475_v59  ;;  %v443_v0 = vpop.f32.mrf.mxu0 }
  0xd6   : > { %v528_v61 = vpop.f32.mrf.mxu3  ;;  %v500_v62 = vadd.f32 %v4751_v56, %v499_v60  ;;  %v472_v1 = vpop.f32.mrf.mxu1  ;;  %v4762_v56 = vld [vmem:[#allocation6] ss:$0 sm:$0xff] }
  0xd7   : > { %v529_v63 = vadd.f32 %v4752_v57, %v528_v61  ;;  %v4763_v1 = vld [vmem:[#allocation6] ss:$0 sm:$0xff] }
  0xd8   : > { %v503_v2 = vmax.f32 %v500_v62, 0.0 }
  0xd9   : > { %v532_v3 = vmax.f32 %v529_v63, 0.0 }
  0xda   : > { %v504_v4 = vpack.c.bf16 %v503_v2, %v503_v2  ;;  %v4764_v2 = vld [vmem:[#allocation6] ss:$0 sm:$0xff] }
  0xdb   : > { %v533_v5 = vpack.c.bf16 %v532_v3, %v532_v3 }
  0xdc   : > { %505 = vst [vmem:[#allocation2 + $0x8] sm:$0xf] %v504_v4 }
  0xdd   : > { %534 = vst [vmem:[#allocation2 + $0xc] sm:$0xf] %v533_v5  ;;  %v501_v8 = vpop.f32.mrf.mxu2  ;;  %v557_v10 = vpop.f32.mrf.mxu0 }
  0xde   : > { %v530_v9 = vpop.f32.mrf.mxu3  ;;  %v586_v11 = vpop.f32.mrf.mxu1  ;;  %v558_v12 = vadd.f32 %v4753_v6, %v557_v10 }
  0xdf   : > { %v587_v13 = vadd.f32 %v4754_v7, %v586_v11 }
  0xe0   : > { %v561_v14 = vmax.f32 %v558_v12, 0.0 }
  0xe1   : > { %v590_v15 = vmax.f32 %v587_v13, 0.0 }
  0xe2   : > { %v562_v18 = vpack.c.bf16 %v561_v14, %v561_v14 }
  0xe3   : > { %v591_v19 = vpack.c.bf16 %v590_v15, %v590_v15 }
  0xe4   : > { %563 = vst [vmem:[#allocation2 + $0x10] sm:$0xf] %v562_v18 }
  0xe5   : > { %v615_v20 = vpop.f32.mrf.mxu2  ;;  %592 = vst [vmem:[#allocation2 + $0x14] sm:$0xf] %v591_v19  ;;  %v559_v24 = vpop.f32.mrf.mxu0 }
  0xe6   : > { %v644_v21 = vpop.f32.mrf.mxu3  ;;  %v616_v22 = vadd.f32 %v4755_v16, %v615_v20  ;;  %v588_v25 = vpop.f32.mrf.mxu1 }
  0xe7   : > { %v645_v23 = vadd.f32 %v4756_v17, %v644_v21 }
  0xe8   : > { %v619_v26 = vmax.f32 %v616_v22, 0.0 }
  0xe9   : > { %v648_v27 = vmax.f32 %v645_v23, 0.0 }
  0xea   : > { %v620_v28 = vpack.c.bf16 %v619_v26, %v619_v26 }
  0xeb   : > { %v649_v29 = vpack.c.bf16 %v648_v27, %v648_v27 }
  0xec   : > { %621 = vst [vmem:[#allocation2 + $0x18] sm:$0xf] %v620_v28 }
  0xed   : > { %650 = vst [vmem:[#allocation2 + $0x1c] sm:$0xf] %v649_v29  ;;  %v617_v32 = vpop.f32.mrf.mxu2  ;;  %v673_v34 = vpop.f32.mrf.mxu0 }
  0xee   : > { %v646_v33 = vpop.f32.mrf.mxu3  ;;  %v702_v35 = vpop.f32.mrf.mxu1  ;;  %v674_v37 = vadd.f32 %v4757_v30, %v673_v34 }
  0xef   : > { %v703_v38 = vadd.f32 %v4758_v31, %v702_v35 }
  0xf0   : > { %v677_v39 = vmax.f32 %v674_v37, 0.0 }
  0xf1   : > { %v706_v40 = vmax.f32 %v703_v38, 0.0 }
  0xf2   : > { %v678_v43 = vpack.c.bf16 %v677_v39, %v677_v39 }
  0xf3   : > { %v707_v44 = vpack.c.bf16 %v706_v40, %v706_v40 }
  0xf4   : > { %679 = vst [vmem:[#allocation2 + $0x20] sm:$0xf] %v678_v43 }
  0xf5   : > { %v731_v45 = vpop.f32.mrf.mxu2  ;;  %708 = vst [vmem:[#allocation2 + $0x24] sm:$0xf] %v707_v44  ;;  %v675_v49 = vpop.f32.mrf.mxu0 }
  0xf6   : > { %v760_v46 = vpop.f32.mrf.mxu3  ;;  %v732_v47 = vadd.f32 %v4759_v41, %v731_v45  ;;  %v704_v50 = vpop.f32.mrf.mxu1 }
  0xf7   : > { %v761_v48 = vadd.f32 %v4760_v42, %v760_v46 }
  0xf8   : > { %v735_v51 = vmax.f32 %v732_v47, 0.0 }
  0xf9   : > { %v764_v52 = vmax.f32 %v761_v48, 0.0 }
  0xfa   : > { %v736_v53 = vpack.c.bf16 %v735_v51, %v735_v51 }
  0xfb   : > { %v765_v54 = vpack.c.bf16 %v764_v52, %v764_v52 }
  0xfc   : > { %737 = vst [vmem:[#allocation2 + $0x28] sm:$0xf] %v736_v53 }
  0xfd   : > { %766 = vst [vmem:[#allocation2 + $0x2c] sm:$0xf] %v765_v54  ;;  %v733_v57 = vpop.f32.mrf.mxu2  ;;  %v789_v59 = vpop.f32.mrf.mxu0 }
  0xfe   : > { %v762_v58 = vpop.f32.mrf.mxu3  ;;  %v818_v60 = vpop.f32.mrf.mxu1  ;;  %v790_v61 = vadd.f32 %v4761_v55, %v789_v59 }
  0xff   : > { %v819_v62 = vadd.f32 %v4762_v56, %v818_v60 }
 0x100   : > { %v793_v63 = vmax.f32 %v790_v61, 0.0 }
 0x101   : > { %v822_v0 = vmax.f32 %v819_v62, 0.0 }
 0x102   : > { %v794_v3 = vpack.c.bf16 %v793_v63, %v793_v63 }
 0x103   : > { %v823_v4 = vpack.c.bf16 %v822_v0, %v822_v0 }
 0x104   : > { %795 = vst [vmem:[#allocation2 + $0x30] sm:$0xf] %v794_v3 }
 0x105   : > { %v847_v5 = vpop.f32.mrf.mxu2  ;;  %824 = vst [vmem:[#allocation2 + $0x34] sm:$0xf] %v823_v4  ;;  %v791_v9 = vpop.f32.mrf.mxu0 }
 0x106   : > { %v876_v6 = vpop.f32.mrf.mxu3  ;;  %v848_v7 = vadd.f32 %v4763_v1, %v847_v5  ;;  %v820_v10 = vpop.f32.mrf.mxu1 }
 0x107   : > { %v877_v8 = vadd.f32 %v4764_v2, %v876_v6 }
 0x108   : > { %v851_v11 = vmax.f32 %v848_v7, 0.0 }
 0x109   : > { %v880_v12 = vmax.f32 %v877_v8, 0.0 }
 0x10a   : > { %v852_v13 = vpack.c.bf16 %v851_v11, %v851_v11 }
 0x10b   : > { %v881_v14 = vpack.c.bf16 %v880_v12, %v880_v12 }
 0x10c   : > { %853 = vst [vmem:[#allocation2 + $0x38] sm:$0xf] %v852_v13 }
 0x10d   : > { %882 = vst [vmem:[#allocation2 + $0x3c] sm:$0xf] %v881_v14  ;;  %v849_v15 = vpop.f32.mrf.mxu2 }
 0x10e   : > { %v878_v16 = vpop.f32.mrf.mxu3 }
 0x10f PF: > { %v3334_v17 = vld [vmem:[%s5185_s18 + $0x70] sm:$0xf]  ;;  %v4384_v18 = vld [vmem:[%s5185_s18 + $0x74] sm:$0xf0]  ;;  %v3326_v28 = vld [vmem:[%s5185_s18 + $0x60] sm:$0xf] }
 0x110   : > { %v3398_v19 = vld [vmem:[%s5185_s18 + $0xf0] sm:$0xf]  ;;  %v3335_v20 = vor.u32 %v4384_v18, %v3334_v17  ;;  %v4400_v21 = vld [vmem:[%s5185_s18 + $0xf4] sm:$0xf0]  ;;  %v4382_v30 = vld [vmem:[%s5185_s18 + $0x64] sm:$0xf0] }
 0x111   : > { %v3462_v22 = vld [vmem:[%s5185_s18 + $0x170] sm:$0xf]  ;;  %v4416_v23 = vld [vmem:[%s5185_s18 + $0x174] sm:$0xf0]  ;;  %v3399_v24 = vor.u32 %v4400_v21, %v3398_v19  ;;  %v3390_v31 = vld [vmem:[%s5185_s18 + $0xe0] sm:$0xf]  ;;  %v3327_v33 = vor.u32 %v4382_v30, %v3326_v28 }
 0x112   : > { %v3463_v25 = vor.u32 %v4416_v23, %v3462_v22  ;;  %v3526_v26 = vld [vmem:[%s5185_s18 + $0x1f0] sm:$0xf]  ;;  %v4432_v27 = vld [vmem:[%s5185_s18 + $0x1f4] sm:$0xf0]  ;;  %2490 = vmatpush.bf16.msra.mxu0 %v3335_v20  ;;  %v4398_v32 = vld [vmem:[%s5185_s18 + $0xe4] sm:$0xf0] }
 0x113   : > { %v3527_v29 = vor.u32 %v4432_v27, %v3526_v26  ;;  %2503 = vmatpush.bf16.msra.mxu1 %v3399_v24  ;;  %v3391_v34 = vor.u32 %v4398_v32, %v3390_v31  ;;  %v3454_v35 = vld [vmem:[%s5185_s18 + $0x160] sm:$0xf]  ;;  %v4414_v36 = vld [vmem:[%s5185_s18 + $0x164] sm:$0xf0]  ;;  %v3318_v40 = vld [vmem:[%s5185_s18 + $0x50] sm:$0xf] }
 0x114   : > { %2516 = vmatpush.bf16.msra.mxu2 %v3463_v25  ;;  %v3518_v37 = vld [vmem:[%s5185_s18 + $0x1e0] sm:$0xf]  ;;  %v3455_v38 = vor.u32 %v4414_v36, %v3454_v35  ;;  %v4430_v39 = vld [vmem:[%s5185_s18 + $0x1e4] sm:$0xf0]  ;;  %v4380_v41 = vld [vmem:[%s5185_s18 + $0x54] sm:$0xf0] }
 0x115   : > { %2529 = vmatpush.bf16.msra.mxu3 %v3527_v29  ;;  %v3519_v42 = vor.u32 %v4430_v39, %v3518_v37  ;;  %v3382_v43 = vld [vmem:[%s5185_s18 + $0xd0] sm:$0xf]  ;;  %v4396_v44 = vld [vmem:[%s5185_s18 + $0xd4] sm:$0xf0]  ;;  %v3319_v46 = vor.u32 %v4380_v41, %v3318_v40  ;;  %v3310_v52 = vld [vmem:[%s5185_s18 + $0x40] sm:$0xf] }
 0x116   : > { %v3446_v45 = vld [vmem:[%s5185_s18 + $0x150] sm:$0xf]  ;;  %2491 = vmatpush.bf16.msra.mxu0 %v3327_v33  ;;  %v4412_v47 = vld [vmem:[%s5185_s18 + $0x154] sm:$0xf0]  ;;  %v3383_v50 = vor.u32 %v4396_v44, %v3382_v43  ;;  %v4378_v53 = vld [vmem:[%s5185_s18 + $0x44] sm:$0xf0] }
 0x117   : > { %v3510_v48 = vld [vmem:[%s5185_s18 + $0x1d0] sm:$0xf]  ;;  %v4428_v49 = vld [vmem:[%s5185_s18 + $0x1d4] sm:$0xf0]  ;;  %2504 = vmatpush.bf16.msra.mxu1 %v3391_v34  ;;  %v3447_v51 = vor.u32 %v4412_v47, %v3446_v45  ;;  %v3374_v54 = vld [vmem:[%s5185_s18 + $0xc0] sm:$0xf]  ;;  %v3311_v61 = vor.u32 %v4378_v53, %v3310_v52 }
 0x118   : > { %2517 = vmatpush.bf16.msra.mxu2 %v3455_v38  ;;  %v3511_v55 = vor.u32 %v4428_v49, %v3510_v48  ;;  %v4394_v56 = vld [vmem:[%s5185_s18 + $0xc4] sm:$0xf0]  ;;  %v3438_v57 = vld [vmem:[%s5185_s18 + $0x140] sm:$0xf]  ;;  %v3302_v0 = vld [vmem:[%s5185_s18 + $0x30] sm:$0xf] }
 0x119   : > { %2530 = vmatpush.bf16.msra.mxu3 %v3519_v42  ;;  %v4410_v58 = vld [vmem:[%s5185_s18 + $0x144] sm:$0xf0]  ;;  %v3502_v59 = vld [vmem:[%s5185_s18 + $0x1c0] sm:$0xf]  ;;  %v3375_v62 = vor.u32 %v4394_v56, %v3374_v54  ;;  %v4376_v1 = vld [vmem:[%s5185_s18 + $0x34] sm:$0xf0] }
 0x11a   : > { %v4426_v60 = vld [vmem:[%s5185_s18 + $0x1c4] sm:$0xf0]  ;;  %2492 = vmatpush.bf16.msra.mxu0 %v3319_v46  ;;  %v3439_v63 = vor.u32 %v4410_v58, %v3438_v57  ;;  %v3366_v2 = vld [vmem:[%s5185_s18 + $0xb0] sm:$0xf]  ;;  %v4392_v4 = vld [vmem:[%s5185_s18 + $0xb4] sm:$0xf0]  ;;  %v3303_v9 = vor.u32 %v4376_v1, %v3302_v0 }
 0x11b   : > { %2505 = vmatpush.bf16.msra.mxu1 %v3383_v50  ;;  %v3503_v3 = vor.u32 %v4426_v60, %v3502_v59  ;;  %v3430_v5 = vld [vmem:[%s5185_s18 + $0x130] sm:$0xf]  ;;  %v4408_v6 = vld [vmem:[%s5185_s18 + $0x134] sm:$0xf0]  ;;  %v3367_v10 = vor.u32 %v4392_v4, %v3366_v2  ;;  %v3294_v12 = vld [vmem:[%s5185_s18 + $0x20] sm:$0xf] }
 0x11c   : > { %2518 = vmatpush.bf16.msra.mxu2 %v3447_v51  ;;  %v3494_v7 = vld [vmem:[%s5185_s18 + $0x1b0] sm:$0xf]  ;;  %v4424_v8 = vld [vmem:[%s5185_s18 + $0x1b4] sm:$0xf0]  ;;  %v3431_v11 = vor.u32 %v4408_v6, %v3430_v5  ;;  %v4374_v13 = vld [vmem:[%s5185_s18 + $0x24] sm:$0xf0] }
 0x11d   : > { %2531 = vmatpush.bf16.msra.mxu3 %v3511_v55  ;;  %v3358_v14 = vld [vmem:[%s5185_s18 + $0xa0] sm:$0xf]  ;;  %v3495_v15 = vor.u32 %v4424_v8, %v3494_v7  ;;  %v4390_v16 = vld [vmem:[%s5185_s18 + $0xa4] sm:$0xf0]  ;;  %v3295_v21 = vor.u32 %v4374_v13, %v3294_v12  ;;  %v3286_v24 = vld [vmem:[%s5185_s18 + $0x10] sm:$0xf] }
 0x11e   : > { %2493 = vmatpush.bf16.msra.mxu0 %v3311_v61  ;;  %v3422_v17 = vld [vmem:[%s5185_s18 + $0x120] sm:$0xf]  ;;  %v4406_v18 = vld [vmem:[%s5185_s18 + $0x124] sm:$0xf0]  ;;  %v3359_v22 = vor.u32 %v4390_v16, %v3358_v14  ;;  %v4372_v25 = vld [vmem:[%s5185_s18 + $0x14] sm:$0xf0] }
 0x11f   : > { %2506 = vmatpush.bf16.msra.mxu1 %v3375_v62  ;;  %v3486_v19 = vld [vmem:[%s5185_s18 + $0x1a0] sm:$0xf]  ;;  %v4422_v20 = vld [vmem:[%s5185_s18 + $0x1a4] sm:$0xf0]  ;;  %v3423_v23 = vor.u32 %v4406_v18, %v3422_v17  ;;  %v3350_v26 = vld [vmem:[%s5185_s18 + $0x90] sm:$0xf]  ;;  %v3287_v33 = vor.u32 %v4372_v25, %v3286_v24 }
 0x120   : > { %2519 = vmatpush.bf16.msra.mxu2 %v3439_v63  ;;  %v3487_v27 = vor.u32 %v4422_v20, %v3486_v19  ;;  %v4388_v28 = vld [vmem:[%s5185_s18 + $0x94] sm:$0xf0]  ;;  %v3414_v29 = vld [vmem:[%s5185_s18 + $0x110] sm:$0xf]  ;;  %v3278_v34 = vld [vmem:[%s5185_s18] sm:$0xf] }
 0x121   : > { %2532 = vmatpush.bf16.msra.mxu3 %v3503_v3  ;;  %v4404_v30 = vld [vmem:[%s5185_s18 + $0x114] sm:$0xf0]  ;;  %v3478_v31 = vld [vmem:[%s5185_s18 + $0x190] sm:$0xf]  ;;  %v4370_v35 = vld [vmem:[%s5185_s18 + $0x4] sm:$0xf0]  ;;  %v3351_v36 = vor.u32 %v4388_v28, %v3350_v26 }
 0x122   : > { %2494 = vmatpush.bf16.msra.mxu0 %v3303_v9  ;;  %v4420_v32 = vld [vmem:[%s5185_s18 + $0x194] sm:$0xf0]  ;;  %v3415_v37 = vor.u32 %v4404_v30, %v3414_v29  ;;  %v3342_v38 = vld [vmem:[%s5185_s18 + $0x80] sm:$0xf]  ;;  %v4386_v39 = vld [vmem:[%s5185_s18 + $0x84] sm:$0xf0]  ;;  %v3279_v48 = vor.u32 %v4370_v35, %v3278_v34 }
 0x123   : > { %2507 = vmatpush.bf16.msra.mxu1 %v3367_v10  ;;  %v3406_v40 = vld [vmem:[%s5185_s18 + $0x100] sm:$0xf]  ;;  %v3479_v41 = vor.u32 %v4420_v32, %v3478_v31  ;;  %v4402_v42 = vld [vmem:[%s5185_s18 + $0x104] sm:$0xf0]  ;;  %v3590_v45 = vld [vmem:[%s5185_s18 + $0x270] sm:$0xf]  ;;  %v3343_v52 = vor.u32 %v4386_v39, %v3342_v38 }
 0x124   : > { %2520 = vmatpush.bf16.msra.mxu2 %v3431_v11  ;;  %v3470_v43 = vld [vmem:[%s5185_s18 + $0x180] sm:$0xf]  ;;  %v4418_v44 = vld [vmem:[%s5185_s18 + $0x184] sm:$0xf0]  ;;  %v4448_v46 = vld [vmem:[%s5185_s18 + $0x274] sm:$0xf0]  ;;  %v3407_v53 = vor.u32 %v4402_v42, %v3406_v40 }
 0x125   : > { %2533 = vmatpush.bf16.msra.mxu3 %v3495_v15  ;;  %v3654_v47 = vld [vmem:[%s5185_s18 + $0x2f0] sm:$0xf]  ;;  %v4464_v49 = vld [vmem:[%s5185_s18 + $0x2f4] sm:$0xf0]  ;;  %v3471_v56 = vor.u32 %v4418_v44, %v3470_v43  ;;  %v3591_v57 = vor.u32 %v4448_v46, %v3590_v45  ;;  %v3582_v60 = vld [vmem:[%s5185_s18 + $0x260] sm:$0xf] }
 0x126   : > { %2495 = vmatpush.bf16.msra.mxu0 %v3295_v21  ;;  %v3718_v50 = vld [vmem:[%s5185_s18 + $0x370] sm:$0xf]  ;;  %v4480_v51 = vld [vmem:[%s5185_s18 + $0x374] sm:$0xf0]  ;;  %v3655_v58 = vor.u32 %v4464_v49, %v3654_v47  ;;  %v4446_v61 = vld [vmem:[%s5185_s18 + $0x264] sm:$0xf0] }
 0x127   : > { %2508 = vmatpush.bf16.msra.mxu1 %v3359_v22  ;;  %v3782_v54 = vld [vmem:[%s5185_s18 + $0x3f0] sm:$0xf]  ;;  %v4496_v55 = vld [vmem:[%s5185_s18 + $0x3f4] sm:$0xf0]  ;;  %v3719_v59 = vor.u32 %v4480_v51, %v3718_v50  ;;  %v3646_v62 = vld [vmem:[%s5185_s18 + $0x2e0] sm:$0xf]  ;;  %v3583_v5 = vor.u32 %v4446_v61, %v3582_v60 }
 0x128   : > { %2521 = vmatpush.bf16.msra.mxu2 %v3423_v23  ;;  %v3783_v63 = vor.u32 %v4496_v55, %v3782_v54  ;;  %v4462_v0 = vld [vmem:[%s5185_s18 + $0x2e4] sm:$0xf0]  ;;  %v3710_v1 = vld [vmem:[%s5185_s18 + $0x360] sm:$0xf]  ;;  %v3574_v6 = vld [vmem:[%s5185_s18 + $0x250] sm:$0xf] }
 0x129   : > { %2534 = vmatpush.bf16.msra.mxu3 %v3487_v27  ;;  %v4478_v2 = vld [vmem:[%s5185_s18 + $0x364] sm:$0xf0]  ;;  %v3774_v3 = vld [vmem:[%s5185_s18 + $0x3e0] sm:$0xf]  ;;  %v3647_v7 = vor.u32 %v4462_v0, %v3646_v62  ;;  %v4444_v9 = vld [vmem:[%s5185_s18 + $0x254] sm:$0xf0] }
 0x12a   : > { %2496 = vmatpush.bf16.msra.mxu0 %v3287_v33  ;;  %v4494_v4 = vld [vmem:[%s5185_s18 + $0x3e4] sm:$0xf0]  ;;  %v3711_v8 = vor.u32 %v4478_v2, %v3710_v1  ;;  %v3638_v10 = vld [vmem:[%s5185_s18 + $0x2d0] sm:$0xf]  ;;  %v4460_v11 = vld [vmem:[%s5185_s18 + $0x2d4] sm:$0xf0]  ;;  %v3575_v17 = vor.u32 %v4444_v9, %v3574_v6 }
 0x12b   : > { %2509 = vmatpush.bf16.msra.mxu1 %v3351_v36  ;;  %v3775_v12 = vor.u32 %v4494_v4, %v3774_v3  ;;  %v3702_v13 = vld [vmem:[%s5185_s18 + $0x350] sm:$0xf]  ;;  %v4476_v14 = vld [vmem:[%s5185_s18 + $0x354] sm:$0xf0]  ;;  %v3639_v18 = vor.u32 %v4460_v11, %v3638_v10  ;;  %v885_v19 = vld [vmem:[#allocation2 + $0x8] sm:$0xff] }
 0x12c   : > { %2522 = vmatpush.bf16.msra.mxu2 %v3415_v37  ;;  %v3766_v15 = vld [vmem:[%s5185_s18 + $0x3d0] sm:$0xf]  ;;  %v4492_v16 = vld [vmem:[%s5185_s18 + $0x3d4] sm:$0xf0]  ;;  %v3703_v21 = vor.u32 %v4476_v14, %v3702_v13  ;;  %v3566_v22 = vld [vmem:[%s5185_s18 + $0x240] sm:$0xf]  ;;  %v1164_v25 = vunpack.c.l.b16 %v885_v19  ;;  %v1165_v27 = vunpack.c.h.b16 %v885_v19 }
 0x12d   : > { %2535 = vmatpush.bf16.msra.mxu3 %v3479_v41  ;;  %v884_v20 = vld [vmem:[#allocation2] sm:$0xff]  ;;  %v4442_v23 = vld [vmem:[%s5185_s18 + $0x244] sm:$0xf0]  ;;  %v3630_v24 = vld [vmem:[%s5185_s18 + $0x2c0] sm:$0xf]  ;;  %v3767_v28 = vor.u32 %v4492_v16, %v3766_v15 }
 0x12e   : > { %2497 = vmatpush.bf16.msra.mxu0 %v3279_v48  ;;  %v1162_v26 = vunpack.c.l.b16 %v884_v20  ;;  %v4458_v29 = vld [vmem:[%s5185_s18 + $0x2c4] sm:$0xf0]  ;;  %v3694_v30 = vld [vmem:[%s5185_s18 + $0x340] sm:$0xf]  ;;  %v1163_v32 = vunpack.c.h.b16 %v884_v20  ;;  %v5379_v35 = vpack.c.b16 %v1164_v25, %v1164_v25  ;;  %v5383_v37 = vpack.c.b16 %v1165_v27, %v1165_v27  ;;  %v3558_v42 = vld [vmem:[%s5185_s18 + $0x230] sm:$0xf] }
 0x12f   : > { %2510 = vmatpush.bf16.msra.mxu1 %v3343_v52  ;;  %v4474_v31 = vld [vmem:[%s5185_s18 + $0x344] sm:$0xf0]  ;;  %v3758_v33 = vld [vmem:[%s5185_s18 + $0x3c0] sm:$0xf]  ;;  %v3567_v38 = vor.u32 %v4442_v23, %v3566_v22  ;;  %v3631_v40 = vor.u32 %v4458_v29, %v3630_v24  ;;  %v4440_v43 = vld [vmem:[%s5185_s18 + $0x234] sm:$0xf0] }
 0x130   : > { %2523 = vmatpush.bf16.msra.mxu2 %v3407_v53  ;;  %v4490_v34 = vld [vmem:[%s5185_s18 + $0x3c4] sm:$0xf0]  ;;  %v5381_v36 = vpack.c.b16 %v1162_v26, %v1162_v26  ;;  %v5385_v39 = vpack.c.b16 %v1163_v32, %v1163_v32  ;;  %v3695_v41 = vor.u32 %v4474_v31, %v3694_v30  ;;  %v3622_v44 = vld [vmem:[%s5185_s18 + $0x2b0] sm:$0xf]  ;;  %v4456_v46 = vld [vmem:[%s5185_s18 + $0x2b4] sm:$0xf0]  ;;  %v3559_v51 = vor.u32 %v4440_v43, %v3558_v42 }
 0x131   : > { %2536 = vmatpush.bf16.msra.mxu3 %v3471_v56  ;;  %v3759_v45 = vor.u32 %v4490_v34, %v3758_v33  ;;  %v3686_v47 = vld [vmem:[%s5185_s18 + $0x330] sm:$0xf]  ;;  %v4472_v48 = vld [vmem:[%s5185_s18 + $0x334] sm:$0xf0]  ;;  %v3623_v52 = vor.u32 %v4456_v46, %v3622_v44  ;;  %v3550_v54 = vld [vmem:[%s5185_s18 + $0x220] sm:$0xf] }
 0x132   : > { %2542 = vmatpush.bf16.msrb.mxu0 %v3591_v57  ;;  %v3750_v49 = vld [vmem:[%s5185_s18 + $0x3b0] sm:$0xf]  ;;  %v4488_v50 = vld [vmem:[%s5185_s18 + $0x3b4] sm:$0xf0]  ;;  %2511 = vmatmul.bf16.vlgmr.msra.gmra.mxu1 %v5385_v39  ;;  %v3687_v53 = vor.u32 %v4472_v48, %v3686_v47  ;;  %v4438_v55 = vld [vmem:[%s5185_s18 + $0x224] sm:$0xf0] }
 0x133   : > { %2555 = vmatpush.bf16.msrb.mxu1 %v3655_v58  ;;  %2524 = vmatmul.bf16.vlgmr.msra.gmra.mxu2 %v5379_v35  ;;  %v3614_v56 = vld [vmem:[%s5185_s18 + $0x2a0] sm:$0xf]  ;;  %v3751_v57 = vor.u32 %v4488_v50, %v3750_v49  ;;  %v4454_v58 = vld [vmem:[%s5185_s18 + $0x2a4] sm:$0xf0]  ;;  %v3542_v2 = vld [vmem:[%s5185_s18 + $0x210] sm:$0xf] }
 0x134   : > { %2568 = vmatpush.bf16.msrb.mxu2 %v3719_v59  ;;  %2498 = vmatmul.bf16.vlgmr.msra.gmra.mxu0 %v5381_v36  ;;  %v3678_v59 = vld [vmem:[%s5185_s18 + $0x320] sm:$0xf]  ;;  %v4470_v60 = vld [vmem:[%s5185_s18 + $0x324] sm:$0xf0]  ;;  %v3615_v0 = vor.u32 %v4454_v58, %v3614_v56  ;;  %v4436_v3 = vld [vmem:[%s5185_s18 + $0x214] sm:$0xf0] }
 0x135   : > { %2581 = vmatpush.bf16.msrb.mxu3 %v3783_v63  ;;  %v3742_v61 = vld [vmem:[%s5185_s18 + $0x3a0] sm:$0xf]  ;;  %v4486_v62 = vld [vmem:[%s5185_s18 + $0x3a4] sm:$0xf0]  ;;  %v3551_v63 = vor.u32 %v4438_v55, %v3550_v54  ;;  %v3679_v1 = vor.u32 %v4470_v60, %v3678_v59  ;;  %v3606_v4 = vld [vmem:[%s5185_s18 + $0x290] sm:$0xf] }
 0x136   : > { %2543 = vmatpush.bf16.msrb.mxu0 %v3583_v5  ;;  %2537 = vmatmul.bf16.vlgmr.msra.gmra.mxu3 %v5383_v37  ;;  %v3743_v5 = vor.u32 %v4486_v62, %v3742_v61  ;;  %v4452_v6 = vld [vmem:[%s5185_s18 + $0x294] sm:$0xf0]  ;;  %v3734_v9 = vld [vmem:[%s5185_s18 + $0x390] sm:$0xf]  ;;  %v3534_v11 = vld [vmem:[%s5185_s18 + $0x200] sm:$0xf] }
 0x137   : > { %2556 = vmatpush.bf16.msrb.mxu1 %v3647_v7  ;;  %v3670_v7 = vld [vmem:[%s5185_s18 + $0x310] sm:$0xf]  ;;  %v4484_v10 = vld [vmem:[%s5185_s18 + $0x394] sm:$0xf0]  ;;  %v4434_v13 = vld [vmem:[%s5185_s18 + $0x204] sm:$0xf0]  ;;  %v3607_v16 = vor.u32 %v4452_v6, %v3606_v4 }
 0x138   : > { %2569 = vmatpush.bf16.msrb.mxu2 %v3711_v8  ;;  %v4468_v8 = vld [vmem:[%s5185_s18 + $0x314] sm:$0xf0]  ;;  %v3598_v14 = vld [vmem:[%s5185_s18 + $0x280] sm:$0xf]  ;;  %v4450_v15 = vld [vmem:[%s5185_s18 + $0x284] sm:$0xf0] }
 0x139   : > { %2582 = vmatpush.bf16.msrb.mxu3 %v3775_v12  ;;  %v3543_v12 = vor.u32 %v4436_v3, %v3542_v2  ;;  %v4466_v19 = vld [vmem:[%s5185_s18 + $0x304] sm:$0xf0]  ;;  %v887_v20 = vld [vmem:[#allocation2 + $0x18] sm:$0xff]  ;;  %v3726_v22 = vld [vmem:[%s5185_s18 + $0x380] sm:$0xf]  ;;  %v3599_v33 = vor.u32 %v4450_v15, %v3598_v14 }
 0x13a   : > { %2544 = vmatpush.bf16.msrb.mxu0 %v3575_v17  ;;  %v3671_v17 = vor.u32 %v4468_v8, %v3670_v7  ;;  %v4482_v23 = vld [vmem:[%s5185_s18 + $0x384] sm:$0xf0]  ;;  %v3846_v25 = vld [vmem:[%s5185_s18 + $0x470] sm:$0xf]  ;;  %v4512_v26 = vld [vmem:[%s5185_s18 + $0x474] sm:$0xf0]  ;;  %v1168_v32 = vunpack.c.l.b16 %v887_v20  ;;  %v1169_v42 = vunpack.c.h.b16 %v887_v20 }
 0x13b   : > { %2557 = vmatpush.bf16.msrb.mxu1 %v3639_v18  ;;  %v3662_v18 = vld [vmem:[%s5185_s18 + $0x300] sm:$0xf]  ;;  %v886_v24 = vld [vmem:[#allocation2 + $0x10] sm:$0xff]  ;;  %v3910_v27 = vld [vmem:[%s5185_s18 + $0x4f0] sm:$0xf]  ;;  %v3727_v43 = vor.u32 %v4482_v23, %v3726_v22  ;;  %v3847_v44 = vor.u32 %v4512_v26, %v3846_v25 }
 0x13c   : > { %2570 = vmatpush.bf16.msrb.mxu2 %v3703_v21  ;;  %v3735_v21 = vor.u32 %v4484_v10, %v3734_v9  ;;  %v4528_v29 = vld [vmem:[%s5185_s18 + $0x4f4] sm:$0xf0]  ;;  %v3974_v30 = vld [vmem:[%s5185_s18 + $0x570] sm:$0xf]  ;;  %v3663_v34 = vor.u32 %v4466_v19, %v3662_v18  ;;  %v3838_v48 = vld [vmem:[%s5185_s18 + $0x460] sm:$0xf]  ;;  %v5437_v55 = vpack.c.b16 %v1168_v32, %v1168_v32  ;;  %v5443_v59 = vpack.c.b16 %v1169_v42, %v1169_v42 }
 0x13d   : > { %2583 = vmatpush.bf16.msrb.mxu3 %v3767_v28  ;;  %v3535_v28 = vor.u32 %v4434_v13, %v3534_v11  ;;  %v4544_v31 = vld [vmem:[%s5185_s18 + $0x574] sm:$0xf0]  ;;  %v3911_v46 = vor.u32 %v4528_v29, %v3910_v27  ;;  %v4510_v49 = vld [vmem:[%s5185_s18 + $0x464] sm:$0xf0]  ;;  %v3902_v50 = vld [vmem:[%s5185_s18 + $0x4e0] sm:$0xf] }
 0x13e   : > { %2545 = vmatpush.bf16.msrb.mxu0 %v3567_v38  ;;  %v4038_v38 = vld [vmem:[%s5185_s18 + $0x5f0] sm:$0xf]  ;;  %v3975_v47 = vor.u32 %v4544_v31, %v3974_v30  ;;  %v4542_v54 = vld [vmem:[%s5185_s18 + $0x564] sm:$0xf0]  ;;  %v4030_v56 = vld [vmem:[%s5185_s18 + $0x5e0] sm:$0xf]  ;;  %v3839_v60 = vor.u32 %v4510_v49, %v3838_v48 }
 0x13f   : > { %2558 = vmatpush.bf16.msrb.mxu1 %v3631_v40  ;;  %v4560_v40 = vld [vmem:[%s5185_s18 + $0x5f4] sm:$0xf0]  ;;  %v3894_v2 = vld [vmem:[%s5185_s18 + $0x4d0] sm:$0xf]  ;;  %v4506_v13 = vld [vmem:[%s5185_s18 + $0x444] sm:$0xf0] }
 0x140   : > { %2571 = vmatpush.bf16.msrb.mxu2 %v3695_v41  ;;  %v1166_v41 = vunpack.c.l.b16 %v886_v24  ;;  %v4524_v4 = vld [vmem:[%s5185_s18 + $0x4d4] sm:$0xf0]  ;;  %v4022_v7 = vld [vmem:[%s5185_s18 + $0x5d0] sm:$0xf]  ;;  %v3886_v14 = vld [vmem:[%s5185_s18 + $0x4c0] sm:$0xf] }
 0x141   : > { %2584 = vmatpush.bf16.msrb.mxu3 %v3759_v45  ;;  %v1167_v45 = vunpack.c.h.b16 %v886_v24  ;;  %v4540_v6 = vld [vmem:[%s5185_s18 + $0x554] sm:$0xf0]  ;;  %v3895_v10 = vor.u32 %v4524_v4, %v3894_v2  ;;  %v4538_v18 = vld [vmem:[%s5185_s18 + $0x544] sm:$0xf0]  ;;  %v4014_v19 = vld [vmem:[%s5185_s18 + $0x5c0] sm:$0xf] }
 0x142   : > { %2546 = vmatpush.bf16.msrb.mxu0 %v3559_v51  ;;  %v4039_v51 = vor.u32 %v4560_v40, %v4038_v38  ;;  %v5441_v58 = vpack.c.b16 %v1166_v41, %v1166_v41  ;;  %v4556_v8 = vld [vmem:[%s5185_s18 + $0x5d4] sm:$0xf0]  ;;  %v4554_v20 = vld [vmem:[%s5185_s18 + $0x5c4] sm:$0xf0]  ;;  %v3814_v24 = vld [vmem:[%s5185_s18 + $0x430] sm:$0xf] }
 0x143   : > { %2559 = vmatpush.bf16.msrb.mxu1 %v3623_v52  ;;  %v4526_v52 = vld [vmem:[%s5185_s18 + $0x4e4] sm:$0xf0]  ;;  %v5445_v61 = vpack.c.b16 %v1167_v45, %v1167_v45  ;;  %v4023_v15 = vor.u32 %v4556_v8, %v4022_v7  ;;  %v4504_v25 = vld [vmem:[%s5185_s18 + $0x434] sm:$0xf0]  ;;  %v3878_v26 = vld [vmem:[%s5185_s18 + $0x4b0] sm:$0xf]  ;;  %v4015_v27 = vor.u32 %v4554_v20, %v4014_v19 }
 0x144   : > { %2572 = vmatpush.bf16.msrb.mxu2 %v3687_v53  ;;  %v3966_v53 = vld [vmem:[%s5185_s18 + $0x560] sm:$0xf]  ;;  %v3903_v62 = vor.u32 %v4526_v52, %v3902_v50  ;;  %v3942_v29 = vld [vmem:[%s5185_s18 + $0x530] sm:$0xf]  ;;  %v4536_v30 = vld [vmem:[%s5185_s18 + $0x534] sm:$0xf0] }
 0x145   : > { %2585 = vmatpush.bf16.msrb.mxu3 %v3751_v57  ;;  %v4558_v57 = vld [vmem:[%s5185_s18 + $0x5e4] sm:$0xf0]  ;;  %v4006_v31 = vld [vmem:[%s5185_s18 + $0x5b0] sm:$0xf]  ;;  %v4552_v32 = vld [vmem:[%s5185_s18 + $0x5b4] sm:$0xf0]  ;;  %v3943_v38 = vor.u32 %v4536_v30, %v3942_v29 }
 0x146   : > { %2547 = vmatpush.bf16.msrb.mxu0 %v3551_v63  ;;  %v3967_v63 = vor.u32 %v4542_v54, %v3966_v53  ;;  %v4031_v3 = vor.u32 %v4558_v57, %v4030_v56  ;;  %v3806_v40 = vld [vmem:[%s5185_s18 + $0x420] sm:$0xf]  ;;  %v4502_v41 = vld [vmem:[%s5185_s18 + $0x424] sm:$0xf0]  ;;  %v3798_v52 = vld [vmem:[%s5185_s18 + $0x410] sm:$0xf] }
 0x147   : > { %2560 = vmatpush.bf16.msrb.mxu1 %v3615_v0  ;;  %v3830_v0 = vld [vmem:[%s5185_s18 + $0x450] sm:$0xf]  ;;  %v3870_v42 = vld [vmem:[%s5185_s18 + $0x4a0] sm:$0xf]  ;;  %v4550_v48 = vld [vmem:[%s5185_s18 + $0x5a4] sm:$0xf0]  ;;  %v3807_v49 = vor.u32 %v4502_v41, %v3806_v40 }
 0x148   : > { %2573 = vmatpush.bf16.msrb.mxu2 %v3679_v1  ;;  %v4508_v1 = vld [vmem:[%s5185_s18 + $0x454] sm:$0xf0]  ;;  %v3934_v45 = vld [vmem:[%s5185_s18 + $0x520] sm:$0xf]  ;;  %v3862_v54 = vld [vmem:[%s5185_s18 + $0x490] sm:$0xf] }
 0x149   : > { %2586 = vmatpush.bf16.msrb.mxu3 %v3743_v5  ;;  %v3958_v5 = vld [vmem:[%s5185_s18 + $0x550] sm:$0xf]  ;;  %v3831_v9 = vor.u32 %v4508_v1, %v3830_v0  ;;  %v4500_v53 = vld [vmem:[%s5185_s18 + $0x414] sm:$0xf0]  ;;  %v3790_v1 = vld [vmem:[%s5185_s18 + $0x400] sm:$0xf] }
 0x14a   : > { %2548 = vmatpush.bf16.msrb.mxu0 %v3543_v12  ;;  %v3959_v11 = vor.u32 %v4540_v6, %v3958_v5  ;;  %v3822_v12 = vld [vmem:[%s5185_s18 + $0x440] sm:$0xf]  ;;  %v4516_v57 = vld [vmem:[%s5185_s18 + $0x494] sm:$0xf0]  ;;  %v3799_v2 = vor.u32 %v4500_v53, %v3798_v52  ;;  %v4514_v5 = vld [vmem:[%s5185_s18 + $0x484] sm:$0xf0] }
 0x14b   : > { %2561 = vmatpush.bf16.msrb.mxu1 %v3607_v16  ;;  %v4522_v16 = vld [vmem:[%s5185_s18 + $0x4c4] sm:$0xf0]  ;;  %v4548_v0 = vld [vmem:[%s5185_s18 + $0x594] sm:$0xf0]  ;;  %v3854_v4 = vld [vmem:[%s5185_s18 + $0x480] sm:$0xf]  ;;  %v3863_v6 = vor.u32 %v4516_v57, %v3862_v54 }
 0x14c   : > { %2574 = vmatpush.bf16.msrb.mxu2 %v3671_v17  ;;  %v3950_v17 = vld [vmem:[%s5185_s18 + $0x540] sm:$0xf]  ;;  %v3887_v22 = vor.u32 %v4522_v16, %v3886_v14  ;;  %v4576_v16 = vld [vmem:[%s5185_s18 + $0x674] sm:$0xf0]  ;;  %v4230_v20 = vld [vmem:[%s5185_s18 + $0x770] sm:$0xf] }
 0x14d   : > { %2587 = vmatpush.bf16.msrb.mxu3 %v3735_v21  ;;  %v3823_v21 = vor.u32 %v4506_v13, %v3822_v12  ;;  %v3951_v23 = vor.u32 %v4538_v18, %v3950_v17  ;;  %v3918_v8 = vld [vmem:[%s5185_s18 + $0x500] sm:$0xf]  ;;  %v4546_v13 = vld [vmem:[%s5185_s18 + $0x584] sm:$0xf0]  ;;  %v4166_v17 = vld [vmem:[%s5185_s18 + $0x6f0] sm:$0xf] }
 0x14e   : > { %2549 = vmatpush.bf16.msrb.mxu0 %v3535_v28  ;;  %v4520_v28 = vld [vmem:[%s5185_s18 + $0x4b4] sm:$0xf0]  ;;  %v3982_v12 = vld [vmem:[%s5185_s18 + $0x580] sm:$0xf]  ;;  %v4086_v54 = vld [vmem:[%s5185_s18 + $0x650] sm:$0xf] }
 0x14f   : > { %2562 = vmatpush.bf16.msrb.mxu1 %v3599_v33  ;;  %v3815_v33 = vor.u32 %v4504_v25, %v3814_v24  ;;  %v889_v14 = vld [vmem:[#allocation2 + $0x28] sm:$0xff]  ;;  %v4592_v19 = vld [vmem:[%s5185_s18 + $0x6f4] sm:$0xf0]  ;;  %v4294_v25 = vld [vmem:[%s5185_s18 + $0x7f0] sm:$0xf]  ;;  %v3983_v29 = vor.u32 %v4546_v13, %v3982_v12 }
 0x150   : > { %2575 = vmatpush.bf16.msrb.mxu2 %v3663_v34  ;;  %v3879_v34 = vor.u32 %v4520_v28, %v3878_v26  ;;  %v4624_v26 = vld [vmem:[%s5185_s18 + $0x7f4] sm:$0xf0]  ;;  %v4158_v40 = vld [vmem:[%s5185_s18 + $0x6e0] sm:$0xf]  ;;  %v4150_v57 = vld [vmem:[%s5185_s18 + $0x6d0] sm:$0xf] }
 0x151   : > { %2588 = vmatpush.bf16.msrb.mxu3 %v3727_v43  ;;  %2550 = vmatmul.bf16.vlgmr.msrb.gmra.mxu0 %v5441_v58  ;;  %v4007_v43 = vor.u32 %v4552_v32, %v4006_v31  ;;  %v1173_v31 = vunpack.c.h.b16 %v889_v14  ;;  %v4167_v32 = vor.u32 %v4592_v19, %v4166_v17  ;;  %v4295_v41 = vor.u32 %v4624_v26, %v4294_v25  ;;  %v4602_v12 = vld [vmem:[%s5185_s18 + $0x744] sm:$0xf0]  ;;  %v4270_v13 = vld [vmem:[%s5185_s18 + $0x7c0] sm:$0xf]  ;;  %v4568_v19 = vld [vmem:[%s5185_s18 + $0x634] sm:$0xf0] }
 0x152   : > { %2594 = vmatpush.bf16.msra.mxu0 %v3847_v44  ;;  %2563 = vmatmul.bf16.vlgmr.msrb.gmra.mxu1 %v5445_v61  ;;  %v4518_v44 = vld [vmem:[%s5185_s18 + $0x4a4] sm:$0xf0]  ;;  %v4262_v25 = vld [vmem:[%s5185_s18 + $0x7b0] sm:$0xf]  ;;  %v4616_v26 = vld [vmem:[%s5185_s18 + $0x7b4] sm:$0xf0] }
 0x153   : > { %2607 = vmatpush.bf16.msra.mxu1 %v3911_v46  ;;  %2576 = vmatmul.bf16.vlgmr.msrb.gmra.mxu2 %v5437_v55  ;;  %v4534_v46 = vld [vmem:[%s5185_s18 + $0x524] sm:$0xf0]  ;;  %v3871_v50 = vor.u32 %v4518_v44, %v3870_v42  ;;  %v4222_v44 = vld [vmem:[%s5185_s18 + $0x760] sm:$0xf] }
 0x154   : > { %2620 = vmatpush.bf16.msra.mxu2 %v3975_v47  ;;  %2589 = vmatmul.bf16.vlgmr.msrb.gmra.mxu3 %v5443_v59  ;;  %v3998_v47 = vld [vmem:[%s5185_s18 + $0x5a0] sm:$0xf] }
 0x155   : > { %2633 = vmatpush.bf16.msra.mxu3 %v4039_v51  ;;  %v3935_v51 = vor.u32 %v4534_v46, %v3934_v45  ;;  %v3999_v56 = vor.u32 %v4550_v48, %v3998_v47  ;;  %v4606_v45 = vld [vmem:[%s5185_s18 + $0x764] sm:$0xf0]  ;;  %v4286_v48 = vld [vmem:[%s5185_s18 + $0x7e0] sm:$0xf] }
 0x156   : > { %2595 = vmatpush.bf16.msra.mxu0 %v3839_v60  ;;  %v3926_v60 = vld [vmem:[%s5185_s18 + $0x510] sm:$0xf]  ;;  %v4223_v53 = vor.u32 %v4606_v45, %v4222_v44 }
 0x157   : > { %2608 = vmatpush.bf16.msra.mxu1 %v3903_v62  ;;  %v4532_v62 = vld [vmem:[%s5185_s18 + $0x514] sm:$0xf0] }
 0x158   : > { %2621 = vmatpush.bf16.msra.mxu2 %v3967_v63  ;;  %v3990_v63 = vld [vmem:[%s5185_s18 + $0x590] sm:$0xf]  ;;  %v3927_v7 = vor.u32 %v4532_v62, %v3926_v60  ;;  %v4588_v62 = vld [vmem:[%s5185_s18 + $0x6d4] sm:$0xf0] }
 0x159   : > { %2634 = vmatpush.bf16.msra.mxu3 %v4031_v3  ;;  %v4498_v3 = vld [vmem:[%s5185_s18 + $0x404] sm:$0xf0] }
 0x15a   : > { %2596 = vmatpush.bf16.msra.mxu0 %v3831_v9  ;;  %v4530_v9 = vld [vmem:[%s5185_s18 + $0x504] sm:$0xf0]  ;;  %v3791_v18 = vor.u32 %v4498_v3, %v3790_v1  ;;  %v4278_v1 = vld [vmem:[%s5185_s18 + $0x7d0] sm:$0xf] }
 0x15b   : > { %2609 = vmatpush.bf16.msra.mxu1 %v3895_v10  ;;  %v888_v10 = vld [vmem:[#allocation2 + $0x20] sm:$0xff]  ;;  %v3919_v24 = vor.u32 %v4530_v9, %v3918_v8  ;;  %v4142_v8 = vld [vmem:[%s5185_s18 + $0x6c0] sm:$0xf] }
 0x15c   : > { %2622 = vmatpush.bf16.msra.mxu2 %v3959_v11  ;;  %v3991_v11 = vor.u32 %v4548_v0, %v3990_v63  ;;  %v1171_v28 = vunpack.c.h.b16 %v888_v10  ;;  %v4214_v63 = vld [vmem:[%s5185_s18 + $0x750] sm:$0xf]  ;;  %v4604_v0 = vld [vmem:[%s5185_s18 + $0x754] sm:$0xf0] }
 0x15d   : > { %2635 = vmatpush.bf16.msra.mxu3 %v4023_v15  ;;  %v4102_v15 = vld [vmem:[%s5185_s18 + $0x670] sm:$0xf] }
 0x15e   : > { %2597 = vmatpush.bf16.msra.mxu0 %v3823_v21  ;;  %v4608_v21 = vld [vmem:[%s5185_s18 + $0x774] sm:$0xf0]  ;;  %v4103_v30 = vor.u32 %v4576_v16, %v4102_v15  ;;  %v5517_v47 = vpack.c.b16 %v1171_v28, %v1171_v28 }
 0x15f   : > { %2610 = vmatpush.bf16.msra.mxu1 %v3887_v22  ;;  %v1170_v22 = vunpack.c.l.b16 %v888_v10  ;;  %v4586_v10 = vld [vmem:[%s5185_s18 + $0x6c4] sm:$0xf0] }
 0x160   : > { %2623 = vmatpush.bf16.msra.mxu2 %v3951_v23  ;;  %v3855_v23 = vor.u32 %v4514_v5, %v3854_v4  ;;  %v4151_v4 = vor.u32 %v4588_v62, %v4150_v57  ;;  %v4215_v5 = vor.u32 %v4604_v0, %v4214_v63  ;;  %v4143_v16 = vor.u32 %v4586_v10, %v4142_v8  ;;  %v4596_v57 = vld [vmem:[%s5185_s18 + $0x714] sm:$0xf0]  ;;  %v4046_v63 = vld [vmem:[%s5185_s18 + $0x600] sm:$0xf]  ;;  %v890_v8 = vld [vmem:[#allocation2 + $0x30] sm:$0xff] }
 0x161   : > { %2636 = vmatpush.bf16.msra.mxu3 %v4015_v27  ;;  %v1172_v27 = vunpack.c.l.b16 %v889_v14  ;;  %v5510_v42 = vpack.c.b16 %v1170_v22, %v1170_v22  ;;  %v4618_v14 = vld [vmem:[%s5185_s18 + $0x7c4] sm:$0xf0]  ;;  %v4584_v22 = vld [vmem:[%s5185_s18 + $0x6b4] sm:$0xf0]  ;;  %v4238_v10 = vld [vmem:[%s5185_s18 + $0x780] sm:$0xf] }
 0x162   : > { %2598 = vmatpush.bf16.msra.mxu0 %v3815_v33  ;;  %v4231_v33 = vor.u32 %v4608_v21, %v4230_v20  ;;  %v4134_v20 = vld [vmem:[%s5185_s18 + $0x6b0] sm:$0xf]  ;;  %v4271_v21 = vor.u32 %v4618_v14, %v4270_v13  ;;  %v4612_v62 = vld [vmem:[%s5185_s18 + $0x794] sm:$0xf0]  ;;  %v4383_v13 = vld [vmem:[%s5185_s18 + $0x74] sm:$0xf] }
 0x163   : > { %2611 = vmatpush.bf16.msra.mxu1 %v3879_v34  ;;  %v4094_v34 = vld [vmem:[%s5185_s18 + $0x660] sm:$0xf]  ;;  %v5515_v46 = vpack.c.b16 %v1172_v27, %v1172_v27  ;;  %v4135_v28 = vor.u32 %v4584_v22, %v4134_v20  ;;  %v3336_v14 = vld [vmem:[%s5185_s18 + $0x78] sm:$0xf0]  ;;  %v1174_v20 = vunpack.c.l.b16 %v890_v8 }
 0x164   : > { %2624 = vmatpush.bf16.msra.mxu2 %v3943_v38  ;;  %v4574_v38 = vld [vmem:[%s5185_s18 + $0x664] sm:$0xf0] }
 0x165   : > { %2637 = vmatpush.bf16.msra.mxu3 %v4007_v43  ;;  %v4590_v43 = vld [vmem:[%s5185_s18 + $0x6e4] sm:$0xf0] }
 0x166   : > { %2599 = vmatpush.bf16.msra.mxu0 %v3807_v49  ;;  %v4622_v49 = vld [vmem:[%s5185_s18 + $0x7e4] sm:$0xf0]  ;;  %v4159_v52 = vor.u32 %v4590_v43, %v4158_v40 }
 0x167   : > { %2612 = vmatpush.bf16.msra.mxu1 %v3871_v50  ;;  %v5521_v50 = vpack.c.b16 %v1173_v31, %v1173_v31  ;;  %v4287_v60 = vor.u32 %v4622_v49, %v4286_v48  ;;  %v4566_v31 = vld [vmem:[%s5185_s18 + $0x624] sm:$0xf0]  ;;  %v4054_v49 = vld [vmem:[%s5185_s18 + $0x610] sm:$0xf] }
 0x168   : > { %2625 = vmatpush.bf16.msra.mxu2 %v3935_v51  ;;  %v4095_v51 = vor.u32 %v4574_v38, %v4094_v34  ;;  %v4582_v34 = vld [vmem:[%s5185_s18 + $0x6a4] sm:$0xf0]  ;;  %v4190_v38 = vld [vmem:[%s5185_s18 + $0x720] sm:$0xf] }
 0x169   : > { %2638 = vmatpush.bf16.msra.mxu3 %v3999_v56  ;;  %v4572_v56 = vld [vmem:[%s5185_s18 + $0x654] sm:$0xf0]  ;;  %v4598_v40 = vld [vmem:[%s5185_s18 + $0x724] sm:$0xf0] }
 0x16a   : > { %2600 = vmatpush.bf16.msra.mxu0 %v3799_v2  ;;  %v4620_v2 = vld [vmem:[%s5185_s18 + $0x7d4] sm:$0xf0]  ;;  %v4087_v3 = vor.u32 %v4572_v56, %v4086_v54  ;;  %v4614_v43 = vld [vmem:[%s5185_s18 + $0x7a4] sm:$0xf0]  ;;  %v4191_v48 = vor.u32 %v4598_v40, %v4190_v38  ;;  %v4182_v56 = vld [vmem:[%s5185_s18 + $0x710] sm:$0xf]  ;;  %v5586_v40 = vpack.c.b16 %v1174_v20, %v1174_v20 }
 0x16b   : > { %2613 = vmatpush.bf16.msra.mxu1 %v3863_v6  ;;  %v4078_v6 = vld [vmem:[%s5185_s18 + $0x640] sm:$0xf]  ;;  %v4279_v9 = vor.u32 %v4620_v2, %v4278_v1  ;;  %v4580_v54 = vld [vmem:[%s5185_s18 + $0x694] sm:$0xf0]  ;;  %v4562_v1 = vld [vmem:[%s5185_s18 + $0x604] sm:$0xf0] }
 0x16c   : > { %2626 = vmatpush.bf16.msra.mxu2 %v3927_v7  ;;  %v4570_v7 = vld [vmem:[%s5185_s18 + $0x644] sm:$0xf0]  ;;  %v4110_v2 = vld [vmem:[%s5185_s18 + $0x680] sm:$0xf]  ;;  %v4375_v20 = vld [vmem:[%s5185_s18 + $0x34] sm:$0xf] }
 0x16d   : > { %2639 = vmatpush.bf16.msra.mxu3 %v3991_v11  ;;  %v4206_v11 = vld [vmem:[%s5185_s18 + $0x740] sm:$0xf]  ;;  %v4079_v15 = vor.u32 %v4570_v7, %v4078_v6  ;;  %v4594_v7 = vld [vmem:[%s5185_s18 + $0x704] sm:$0xf0] }
 0x16e   : > { %2601 = vmatpush.bf16.msra.mxu0 %v3791_v18  ;;  %v4207_v17 = vor.u32 %v4602_v12, %v4206_v11  ;;  %v4070_v18 = vld [vmem:[%s5185_s18 + $0x630] sm:$0xf]  ;;  %v4174_v6 = vld [vmem:[%s5185_s18 + $0x700] sm:$0xf]  ;;  %v4610_v11 = vld [vmem:[%s5185_s18 + $0x784] sm:$0xf0] }
 0x16f   : > { %2614 = vmatpush.bf16.msra.mxu1 %v3855_v23  ;;  %v4198_v23 = vld [vmem:[%s5185_s18 + $0x730] sm:$0xf]  ;;  %v4071_v27 = vor.u32 %v4568_v19, %v4070_v18  ;;  %v4415_v18 = vld [vmem:[%s5185_s18 + $0x174] sm:$0xf]  ;;  %v3464_v19 = vld [vmem:[%s5185_s18 + $0x178] sm:$0xf0]  ;;  %v4175_v22 = vor.u32 %v4594_v7, %v4174_v6 }
 0x170   : > { %2627 = vmatpush.bf16.msra.mxu2 %v3919_v24  ;;  %v4600_v24 = vld [vmem:[%s5185_s18 + $0x734] sm:$0xf0]  ;;  %v891_v12 = vld [vmem:[#allocation2 + $0x38] sm:$0xff] }
 0x171   : > { %2640 = vmatpush.bf16.msra.mxu3 %v3983_v29  ;;  %2602 = vmatmul.bf16.vlgmr.msra.gmra.mxu0 %v5510_v42  ;;  %v4199_v29 = vor.u32 %v4600_v24, %v4198_v23  ;;  %v4431_v23 = vld [vmem:[%s5185_s18 + $0x1f4] sm:$0xf]  ;;  %v3528_v24 = vld [vmem:[%s5185_s18 + $0x1f8] sm:$0xf0] }
 0x172   : > { %2646 = vmatpush.bf16.msrb.mxu0 %v4103_v30  ;;  %2615 = vmatmul.bf16.vlgmr.msra.gmra.mxu1 %v5517_v47  ;;  %v4062_v30 = vld [vmem:[%s5185_s18 + $0x620] sm:$0xf]  ;;  %v3531_v38 = vor.u32 %v4431_v23, %v3528_v24  ;;  %v3368_v24 = vld [vmem:[%s5185_s18 + $0xb8] sm:$0xf0] }
 0x173   : > { %2659 = vmatpush.bf16.msrb.mxu1 %v4167_v32  ;;  %2628 = vmatmul.bf16.vlgmr.msra.gmra.mxu2 %v5515_v46  ;;  %v4126_v32 = vld [vmem:[%s5185_s18 + $0x6a0] sm:$0xf]  ;;  %v4063_v44 = vor.u32 %v4566_v31, %v4062_v30  ;;  %v3467_v31 = vor.u32 %v4415_v18, %v3464_v19 }
 0x174   : > { %2672 = vmatpush.bf16.msrb.mxu2 %v4231_v33  ;;  %2641 = vmatmul.bf16.vlgmr.msra.gmra.mxu3 %v5521_v50  ;;  %v4263_v33 = vor.u32 %v4616_v26, %v4262_v25  ;;  %v4127_v45 = vor.u32 %v4582_v34, %v4126_v32  ;;  %v1176_v25 = vunpack.c.l.b16 %v891_v12  ;;  %v1175_v26 = vunpack.c.h.b16 %v890_v8  ;;  %v4381_v32 = vld [vmem:[%s5185_s18 + $0x64] sm:$0xf] }
 0x175   : > { %2685 = vmatpush.bf16.msrb.mxu3 %v4295_v41  ;;  %v4254_v41 = vld [vmem:[%s5185_s18 + $0x7a0] sm:$0xf]  ;;  %v4397_v34 = vld [vmem:[%s5185_s18 + $0xe4] sm:$0xf] }
 0x176   : > { %2647 = vmatpush.bf16.msrb.mxu0 %v4095_v51  ;;  %v4564_v51 = vld [vmem:[%s5185_s18 + $0x614] sm:$0xf0]  ;;  %v4377_v8 = vld [vmem:[%s5185_s18 + $0x44] sm:$0xf] }
 0x177   : > { %2660 = vmatpush.bf16.msrb.mxu1 %v4159_v52  ;;  %v4118_v52 = vld [vmem:[%s5185_s18 + $0x690] sm:$0xf]  ;;  %v4055_v0 = vor.u32 %v4564_v51, %v4054_v49  ;;  %v4429_v49 = vld [vmem:[%s5185_s18 + $0x1e4] sm:$0xf]  ;;  %v3520_v51 = vld [vmem:[%s5185_s18 + $0x1e8] sm:$0xf0] }
 0x178   : > { %2673 = vmatpush.bf16.msrb.mxu2 %v4223_v53  ;;  %v4255_v53 = vor.u32 %v4614_v43, %v4254_v41  ;;  %v3392_v41 = vld [vmem:[%s5185_s18 + $0xe8] sm:$0xf0]  ;;  %v4413_v43 = vld [vmem:[%s5185_s18 + $0x164] sm:$0xf] }
 0x179   : > { %2686 = vmatpush.bf16.msrb.mxu3 %v4287_v60  ;;  %v4246_v60 = vld [vmem:[%s5185_s18 + $0x790] sm:$0xf] }
 0x17a   : > { %2648 = vmatpush.bf16.msrb.mxu0 %v4087_v3  ;;  %v4578_v3 = vld [vmem:[%s5185_s18 + $0x684] sm:$0xf0] }
 0x17b   : > { %2661 = vmatpush.bf16.msrb.mxu1 %v4151_v4  ;;  %v4119_v4 = vor.u32 %v4580_v54, %v4118_v52  ;;  %v3395_v54 = vor.u32 %v4397_v34, %v3392_v41  ;;  %v4389_v34 = vld [vmem:[%s5185_s18 + $0xa4] sm:$0xf]  ;;  %v3360_v41 = vld [vmem:[%s5185_s18 + $0xa8] sm:$0xf0] }
 0x17c   : > { %2674 = vmatpush.bf16.msrb.mxu2 %v4215_v5  ;;  %v4183_v5 = vor.u32 %v4596_v57, %v4182_v56  ;;  %v4379_v57 = vld [vmem:[%s5185_s18 + $0x54] sm:$0xf] }
 0x17d   : > { %2687 = vmatpush.bf16.msrb.mxu3 %v4279_v9  ;;  %v4247_v9 = vor.u32 %v4612_v62, %v4246_v60  ;;  %v3320_v60 = vld [vmem:[%s5185_s18 + $0x58] sm:$0xf0]  ;;  %v4395_v62 = vld [vmem:[%s5185_s18 + $0xd4] sm:$0xf] }
 0x17e   : > { %2649 = vmatpush.bf16.msrb.mxu0 %v4079_v15  ;;  %v4399_v15 = vld [vmem:[%s5185_s18 + $0xf4] sm:$0xf] }
 0x17f   : > { %2662 = vmatpush.bf16.msrb.mxu1 %v4143_v16  ;;  %v4047_v16 = vor.u32 %v4562_v1, %v4046_v63  ;;  %v3523_v63 = vor.u32 %v4429_v49, %v3520_v51  ;;  %v4411_v1 = vld [vmem:[%s5185_s18 + $0x154] sm:$0xf]  ;;  %v4421_v49 = vld [vmem:[%s5185_s18 + $0x1a4] sm:$0xf]  ;;  %v3488_v51 = vld [vmem:[%s5185_s18 + $0x1a8] sm:$0xf0] }
 0x180   : > { %2675 = vmatpush.bf16.msrb.mxu2 %v4207_v17  ;;  %v3400_v17 = vld [vmem:[%s5185_s18 + $0xf8] sm:$0xf0] }
 0x181   : > { %2688 = vmatpush.bf16.msrb.mxu3 %v4271_v21  ;;  %v4111_v21 = vor.u32 %v4578_v3, %v4110_v2  ;;  %v3403_v30 = vor.u32 %v4399_v15, %v3400_v17  ;;  %v3448_v2 = vld [vmem:[%s5185_s18 + $0x158] sm:$0xf0]  ;;  %v4427_v3 = vld [vmem:[%s5185_s18 + $0x1d4] sm:$0xf]  ;;  %v4425_v15 = vld [vmem:[%s5185_s18 + $0x1c4] sm:$0xf] }
 0x182   : > { %2650 = vmatpush.bf16.msrb.mxu0 %v4071_v27  ;;  %v4239_v27 = vor.u32 %v4610_v11, %v4238_v10  ;;  %v3451_v7 = vor.u32 %v4411_v1, %v3448_v2  ;;  %v4393_v10 = vld [vmem:[%s5185_s18 + $0xc4] sm:$0xf]  ;;  %v4403_v1 = vld [vmem:[%s5185_s18 + $0x114] sm:$0xf]  ;;  %v3416_v2 = vld [vmem:[%s5185_s18 + $0x118] sm:$0xf0] }
 0x183   : > { %2663 = vmatpush.bf16.msrb.mxu1 %v4135_v28  ;;  %v3339_v28 = vor.u32 %v4383_v13, %v3336_v14  ;;  %v4409_v13 = vld [vmem:[%s5185_s18 + $0x144] sm:$0xf]  ;;  %v3440_v14 = vld [vmem:[%s5185_s18 + $0x148] sm:$0xf0] }
 0x184   : > { %2676 = vmatpush.bf16.msrb.mxu2 %v4199_v29  ;;  %v1177_v29 = vunpack.c.h.b16 %v891_v12  ;;  %v3376_v12 = vld [vmem:[%s5185_s18 + $0xc8] sm:$0xf0]  ;;  %v3443_v19 = vor.u32 %v4409_v13, %v3440_v14 }
 0x185   : > { %2689 = vmatpush.bf16.msrb.mxu3 %v4263_v33  ;;  %v3328_v33 = vld [vmem:[%s5185_s18 + $0x68] sm:$0xf0]  ;;  %v3379_v18 = vor.u32 %v4393_v10, %v3376_v12  ;;  %v4385_v10 = vld [vmem:[%s5185_s18 + $0x84] sm:$0xf] }
 0x186   : > { %2651 = vmatpush.bf16.msrb.mxu0 %v4063_v44  ;;  %v3456_v44 = vld [vmem:[%s5185_s18 + $0x168] sm:$0xf0]  ;;  %v5597_v52 = vpack.c.b16 %v1177_v29, %v1177_v29  ;;  %v4401_v12 = vld [vmem:[%s5185_s18 + $0x104] sm:$0xf] }
 0x187   : > { %2664 = vmatpush.bf16.msrb.mxu1 %v4127_v45  ;;  %v5591_v45 = vpack.c.b16 %v1176_v25, %v1176_v25  ;;  %v3459_v56 = vor.u32 %v4413_v43, %v3456_v44  ;;  %v4407_v25 = vld [vmem:[%s5185_s18 + $0x134] sm:$0xf]  ;;  %v4405_v43 = vld [vmem:[%s5185_s18 + $0x124] sm:$0xf]  ;;  %v3424_v44 = vld [vmem:[%s5185_s18 + $0x128] sm:$0xf0] }
 0x188   : > { %2677 = vmatpush.bf16.msrb.mxu2 %v4191_v48  ;;  %v5593_v48 = vpack.c.b16 %v1175_v26, %v1175_v26  ;;  %v3432_v26 = vld [vmem:[%s5185_s18 + $0x138] sm:$0xf0]  ;;  %v3408_v14 = vld [vmem:[%s5185_s18 + $0x108] sm:$0xf0] }
 0x189   : > { %2690 = vmatpush.bf16.msrb.mxu3 %v4255_v53  ;;  %v3331_v53 = vor.u32 %v4381_v32, %v3328_v33  ;;  %v4373_v32 = vld [vmem:[%s5185_s18 + $0x24] sm:$0xf]  ;;  %v3296_v33 = vld [vmem:[%s5185_s18 + $0x28] sm:$0xf0] }
 0x18a   : > { %2652 = vmatpush.bf16.msrb.mxu0 %v4055_v0  ;;  %v3384_v0 = vld [vmem:[%s5185_s18 + $0xd8] sm:$0xf0] }
 0x18b   : > { %2665 = vmatpush.bf16.msrb.mxu1 %v4119_v4  ;;  %v3512_v4 = vld [vmem:[%s5185_s18 + $0x1d8] sm:$0xf0]  ;;  %v3387_v6 = vor.u32 %v4395_v62, %v3384_v0  ;;  %v4387_v62 = vld [vmem:[%s5185_s18 + $0x94] sm:$0xf] }
 0x18c   : > { %2678 = vmatpush.bf16.msrb.mxu2 %v4183_v5  ;;  %v3323_v5 = vor.u32 %v4379_v57, %v3320_v60  ;;  %v3515_v11 = vor.u32 %v4427_v3, %v3512_v4  ;;  %v4371_v57 = vld [vmem:[%s5185_s18 + $0x14] sm:$0xf]  ;;  %v3288_v60 = vld [vmem:[%s5185_s18 + $0x18] sm:$0xf0] }
 0x18d   : > { %2691 = vmatpush.bf16.msrb.mxu3 %v4247_v9  ;;  %v3312_v9 = vld [vmem:[%s5185_s18 + $0x48] sm:$0xf0]  ;;  %v3352_v0 = vld [vmem:[%s5185_s18 + $0x98] sm:$0xf0]  ;;  %v4419_v3 = vld [vmem:[%s5185_s18 + $0x194] sm:$0xf] }
 0x18e   : > { %2653 = vmatpush.bf16.msrb.mxu0 %v4047_v16  ;;  %v3504_v16 = vld [vmem:[%s5185_s18 + $0x1c8] sm:$0xf0]  ;;  %v3315_v17 = vor.u32 %v4377_v8, %v3312_v9  ;;  %v3480_v4 = vld [vmem:[%s5185_s18 + $0x198] sm:$0xf0]  ;;  %v3355_v8 = vor.u32 %v4387_v62, %v3352_v0  ;;  %v3419_v9 = vor.u32 %v4403_v1, %v3416_v2  ;;  %v4459_v62 = vld [vmem:[%s5185_s18 + $0x2d4] sm:$0xf] }
 0x18f   : > { %2666 = vmatpush.bf16.msrb.mxu1 %v4111_v21  ;;  %v3304_v21 = vld [vmem:[%s5185_s18 + $0x38] sm:$0xf0]  ;;  %v3507_v23 = vor.u32 %v4425_v15, %v3504_v16  ;;  %v3483_v13 = vor.u32 %v4419_v3, %v3480_v4  ;;  %v4417_v15 = vld [vmem:[%s5185_s18 + $0x184] sm:$0xf]  ;;  %v3472_v16 = vld [vmem:[%s5185_s18 + $0x188] sm:$0xf0] }
 0x190   : > { %2679 = vmatpush.bf16.msrb.mxu2 %v4175_v22  ;;  %v4391_v22 = vld [vmem:[%s5185_s18 + $0xb4] sm:$0xf]  ;;  %v3307_v29 = vor.u32 %v4375_v20, %v3304_v21  ;;  %v3656_v21 = vld [vmem:[%s5185_s18 + $0x2f8] sm:$0xf0] }
 0x191   : > { %2692 = vmatpush.bf16.msrb.mxu3 %v4239_v27  ;;  %2654 = vmatmul.bf16.vlgmr.msrb.gmra.mxu0 %v5586_v40  ;;  %v4423_v27 = vld [vmem:[%s5185_s18 + $0x1b4] sm:$0xf]  ;;  %v3640_v0 = vld [vmem:[%s5185_s18 + $0x2d8] sm:$0xf0] }
 0x192   : > { %2698 = vmatpush.bf16.msra.mxu0 %v3339_v28  ;;  %2667 = vmatmul.bf16.vlgmr.msrb.gmra.mxu1 %v5593_v48  ;;  %v3496_v28 = vld [vmem:[%s5185_s18 + $0x1b8] sm:$0xf0]  ;;  %v4475_v1 = vld [vmem:[%s5185_s18 + $0x354] sm:$0xf] }
 0x193   : > { %2711 = vmatpush.bf16.msra.mxu1 %v3403_v30  ;;  %2680 = vmatmul.bf16.vlgmr.msrb.gmra.mxu2 %v5591_v45  ;;  %v3371_v30 = vor.u32 %v4391_v22, %v3368_v24  ;;  %v4479_v22 = vld [vmem:[%s5185_s18 + $0x374] sm:$0xf]  ;;  %v3704_v2 = vld [vmem:[%s5185_s18 + $0x358] sm:$0xf0] }
 0x194   : > { %2724 = vmatpush.bf16.msra.mxu2 %v3467_v31  ;;  %2693 = vmatmul.bf16.vlgmr.msrb.gmra.mxu3 %v5597_v52  ;;  %v3435_v31 = vor.u32 %v4407_v25, %v3432_v26  ;;  %v3411_v25 = vor.u32 %v4401_v12, %v3408_v14  ;;  %v4495_v26 = vld [vmem:[%s5185_s18 + $0x3f4] sm:$0xf]  ;;  %v3768_v4 = vld [vmem:[%s5185_s18 + $0x3d8] sm:$0xf0]  ;;  %v4489_v12 = vld [vmem:[%s5185_s18 + $0x3c4] sm:$0xf] }
 0x195   : > { %2737 = vmatpush.bf16.msra.mxu3 %v3531_v38  ;;  %v3499_v38 = vor.u32 %v4423_v27, %v3496_v28  ;;  %v3784_v27 = vld [vmem:[%s5185_s18 + $0x3f8] sm:$0xf0]  ;;  %v3475_v28 = vor.u32 %v4417_v15, %v3472_v16  ;;  %v4491_v3 = vld [vmem:[%s5185_s18 + $0x3d4] sm:$0xf] }
 0x196   : > { %2699 = vmatpush.bf16.msra.mxu0 %v3331_v53  ;;  %v3299_v53 = vor.u32 %v4373_v32, %v3296_v33  ;;  %v4445_v32 = vld [vmem:[%s5185_s18 + $0x264] sm:$0xf]  ;;  %v3584_v33 = vld [vmem:[%s5185_s18 + $0x268] sm:$0xf0]  ;;  %v4439_v14 = vld [vmem:[%s5185_s18 + $0x234] sm:$0xf] }
 0x197   : > { %2712 = vmatpush.bf16.msra.mxu1 %v3395_v54  ;;  %v3363_v54 = vor.u32 %v4389_v34, %v3360_v41  ;;  %v4461_v34 = vld [vmem:[%s5185_s18 + $0x2e4] sm:$0xf]  ;;  %v3648_v41 = vld [vmem:[%s5185_s18 + $0x2e8] sm:$0xf0] }
 0x198   : > { %2725 = vmatpush.bf16.msra.mxu2 %v3459_v56  ;;  %v3427_v56 = vor.u32 %v4405_v43, %v3424_v44  ;;  %v4477_v43 = vld [vmem:[%s5185_s18 + $0x364] sm:$0xf]  ;;  %v3712_v44 = vld [vmem:[%s5185_s18 + $0x368] sm:$0xf0] }
 0x199   : > { %2738 = vmatpush.bf16.msra.mxu3 %v3523_v63  ;;  %v3491_v63 = vor.u32 %v4421_v49, %v3488_v51  ;;  %v4493_v49 = vld [vmem:[%s5185_s18 + $0x3e4] sm:$0xf]  ;;  %v3776_v51 = vld [vmem:[%s5185_s18 + $0x3e8] sm:$0xf0] }
 0x19a   : > { %2700 = vmatpush.bf16.msra.mxu0 %v3323_v5  ;;  %v3291_v5 = vor.u32 %v4371_v57, %v3288_v60  ;;  %v4443_v57 = vld [vmem:[%s5185_s18 + $0x254] sm:$0xf]  ;;  %v3576_v60 = vld [vmem:[%s5185_s18 + $0x258] sm:$0xf0] }
 0x19b   : > { %2713 = vmatpush.bf16.msra.mxu1 %v3387_v6  ;;  %v4369_v6 = vld [vmem:[%s5185_s18 + $0x4] sm:$0xf] }
 0x19c   : > { %2726 = vmatpush.bf16.msra.mxu2 %v3451_v7  ;;  %v3280_v7 = vld [vmem:[%s5185_s18 + $0x8] sm:$0xf0] }
 0x19d   : > { %2739 = vmatpush.bf16.msra.mxu3 %v3515_v11  ;;  %v3344_v11 = vld [vmem:[%s5185_s18 + $0x88] sm:$0xf0]  ;;  %v3283_v20 = vor.u32 %v4369_v6, %v3280_v7  ;;  %v3643_v6 = vor.u32 %v4459_v62, %v3640_v0  ;;  %v4441_v7 = vld [vmem:[%s5185_s18 + $0x244] sm:$0xf] }
 0x19e   : > { %2701 = vmatpush.bf16.msra.mxu0 %v3315_v17  ;;  %v4447_v17 = vld [vmem:[%s5185_s18 + $0x274] sm:$0xf]  ;;  %v3347_v24 = vor.u32 %v4385_v10, %v3344_v11  ;;  %v4473_v10 = vld [vmem:[%s5185_s18 + $0x344] sm:$0xf]  ;;  %v3696_v11 = vld [vmem:[%s5185_s18 + $0x348] sm:$0xf0] }
 0x19f   : > { %2714 = vmatpush.bf16.msra.mxu1 %v3379_v18  ;;  %v3592_v18 = vld [vmem:[%s5185_s18 + $0x278] sm:$0xf0]  ;;  %v3699_v16 = vor.u32 %v4473_v10, %v3696_v11  ;;  %v3600_v10 = vld [vmem:[%s5185_s18 + $0x288] sm:$0xf0]  ;;  %v4465_v11 = vld [vmem:[%s5185_s18 + $0x304] sm:$0xf] }
 0x1a0   : > { %2727 = vmatpush.bf16.msra.mxu2 %v3443_v19  ;;  %v4463_v19 = vld [vmem:[%s5185_s18 + $0x2f4] sm:$0xf] }
 0x1a1   : > { %2740 = vmatpush.bf16.msra.mxu3 %v3507_v23  ;;  %v3720_v23 = vld [vmem:[%s5185_s18 + $0x378] sm:$0xf0] }
 0x1a2   : > { %2702 = vmatpush.bf16.msra.mxu0 %v3307_v29  ;;  %v3595_v29 = vor.u32 %v4447_v17, %v3592_v18  ;;  %v3560_v17 = vld [vmem:[%s5185_s18 + $0x238] sm:$0xf0]  ;;  %v4455_v18 = vld [vmem:[%s5185_s18 + $0x2b4] sm:$0xf] }
 0x1a3   : > { %2715 = vmatpush.bf16.msra.mxu1 %v3371_v30  ;;  %v3659_v30 = vor.u32 %v4463_v19, %v3656_v21  ;;  %v3624_v19 = vld [vmem:[%s5185_s18 + $0x2b8] sm:$0xf0]  ;;  %v4471_v21 = vld [vmem:[%s5185_s18 + $0x334] sm:$0xf] }
 0x1a4   : > { %2728 = vmatpush.bf16.msra.mxu2 %v3435_v31  ;;  %v3723_v31 = vor.u32 %v4479_v22, %v3720_v23  ;;  %v3688_v22 = vld [vmem:[%s5185_s18 + $0x338] sm:$0xf0]  ;;  %v5694_v23 = vld [vmem:[%s5198_s27] sm:$0x3] }
 0x1a5   : > { %2741 = vmatpush.bf16.msra.mxu3 %v3499_v38  ;;  %v3787_v38 = vor.u32 %v4495_v26, %v3784_v27  ;;  %v3563_v26 = vor.u32 %v4439_v14, %v3560_v17  ;;  %v4437_v27 = vld [vmem:[%s5185_s18 + $0x224] sm:$0xf] }
 0x1a6   : > { %2703 = vmatpush.bf16.msra.mxu0 %v3299_v53  ;;  %v3587_v53 = vor.u32 %v4445_v32, %v3584_v33  ;;  %v1150_v32 = vperm.slane %v5694_v23, 0  ;;  %v4481_v14 = vld [vmem:[%s5185_s18 + $0x384] sm:$0xf] }
 0x1a7   : > { %2716 = vmatpush.bf16.msra.mxu1 %v3363_v54  ;;  %v3651_v54 = vor.u32 %v4461_v34, %v3648_v41  ;;  %v3616_v34 = vld [vmem:[%s5185_s18 + $0x2a8] sm:$0xf0] }
 0x1a8   : > { %2729 = vmatpush.bf16.msra.mxu2 %v3427_v56  ;;  %v3715_v56 = vor.u32 %v4477_v43, %v3712_v44  ;;  %v3680_v41 = vld [vmem:[%s5185_s18 + $0x328] sm:$0xf0]  ;;  %v4485_v43 = vld [vmem:[%s5185_s18 + $0x3a4] sm:$0xf] }
 0x1a9   : > { %2742 = vmatpush.bf16.msra.mxu3 %v3491_v63  ;;  %v3779_v63 = vor.u32 %v4493_v49, %v3776_v51  ;;  %v3744_v44 = vld [vmem:[%s5185_s18 + $0x3a8] sm:$0xf0] }
 0x1aa   : > { %2704 = vmatpush.bf16.msra.mxu0 %v3291_v5  ;;  %v3579_v5 = vor.u32 %v4443_v57, %v3576_v60  ;;  %v3544_v57 = vld [vmem:[%s5185_s18 + $0x218] sm:$0xf0]  ;;  %v4451_v60 = vld [vmem:[%s5185_s18 + $0x294] sm:$0xf]  ;;  %v3747_v0 = vor.u32 %v4485_v43, %v3744_v44  ;;  %v4509_v43 = vld [vmem:[%s5185_s18 + $0x464] sm:$0xf] }
 0x1ab   : > { %2717 = vmatpush.bf16.msra.mxu1 %v3355_v8  ;;  %v3568_v8 = vld [vmem:[%s5185_s18 + $0x248] sm:$0xf0] }
 0x1ac   : > { %2730 = vmatpush.bf16.msra.mxu2 %v3419_v9  ;;  %v4457_v9 = vld [vmem:[%s5185_s18 + $0x2c4] sm:$0xf]  ;;  %v3840_v44 = vld [vmem:[%s5185_s18 + $0x468] sm:$0xf0] }
 0x1ad   : > { %2743 = vmatpush.bf16.msra.mxu3 %v3483_v13  ;;  %v3571_v13 = vor.u32 %v4441_v7, %v3568_v8  ;;  %v4433_v7 = vld [vmem:[%s5185_s18 + $0x204] sm:$0xf]  ;;  %v3536_v8 = vld [vmem:[%s5185_s18 + $0x208] sm:$0xf0] }
 0x1ae   : > { %2705 = vmatpush.bf16.msra.mxu0 %v3283_v20 }
 0x1af   : > { %2718 = vmatpush.bf16.msra.mxu1 %v3347_v24  ;;  %v4487_v24 = vld [vmem:[%s5185_s18 + $0x3b4] sm:$0xf] }
 0x1b0   : > { %2731 = vmatpush.bf16.msra.mxu2 %v3411_v25  ;;  %v3752_v25 = vld [vmem:[%s5185_s18 + $0x3b8] sm:$0xf0] }
 0x1b1   : > { %2744 = vmatpush.bf16.msra.mxu3 %v3475_v28  ;;  %2706 = vmatmul.bf16.vlgmr.msra.gmra.mxu0 %v5381_v36  ;;  %v3771_v36 = vor.u32 %v4491_v3, %v3768_v4  ;;  %v3627_v28 = vor.u32 %v4455_v18, %v3624_v19  ;;  %v3755_v33 = vor.u32 %v4487_v24, %v3752_v25  ;;  %v2499_v51 = vpop.f32.mrf.mxu0  ;;  %v3672_v3 = vld [vmem:[%s5185_s18 + $0x318] sm:$0xf0]  ;;  %v4483_v4 = vld [vmem:[%s5185_s18 + $0x394] sm:$0xf] }
 0x1b2   : > { %2750 = vmatpush.bf16.msrb.mxu0 %v3595_v29  ;;  %2719 = vmatmul.bf16.vlgmr.msra.gmra.mxu1 %v5385_v39  ;;  %v3760_v39 = vld [vmem:[%s5185_s18 + $0x3c8] sm:$0xf0]  ;;  %v3691_v29 = vor.u32 %v4471_v21, %v3688_v22  ;;  %v2500_v62 = vadd.f32 %v2499_v51, %v1150_v32  ;;  %v4511_v18 = vld [vmem:[%s5185_s18 + $0x474] sm:$0xf]  ;;  %v3848_v19 = vld [vmem:[%s5185_s18 + $0x478] sm:$0xf0]  ;;  %v3539_v21 = vor.u32 %v4433_v7, %v3536_v8 }
 0x1b3   : > { %2763 = vmatpush.bf16.msrb.mxu1 %v3659_v30  ;;  %2732 = vmatmul.bf16.vlgmr.msra.gmra.mxu2 %v5379_v35  ;;  %v3707_v35 = vor.u32 %v4475_v1, %v3704_v2  ;;  %v3763_v20 = vor.u32 %v4489_v12, %v3760_v39  ;;  %v3552_v30 = vld [vmem:[%s5185_s18 + $0x228] sm:$0xf0]  ;;  %v3608_v1 = vld [vmem:[%s5185_s18 + $0x298] sm:$0xf0]  ;;  %v4467_v2 = vld [vmem:[%s5185_s18 + $0x314] sm:$0xf] }
 0x1b4   : > { %2776 = vmatpush.bf16.msrb.mxu2 %v3723_v31  ;;  %2745 = vmatmul.bf16.vlgmr.msra.gmra.mxu3 %v5383_v37  ;;  %v3632_v37 = vld [vmem:[%s5185_s18 + $0x2c8] sm:$0xf0]  ;;  %v4453_v31 = vld [vmem:[%s5185_s18 + $0x2a4] sm:$0xf]  ;;  %v3555_v49 = vor.u32 %v4437_v27, %v3552_v30  ;;  %v3912_v22 = vld [vmem:[%s5185_s18 + $0x4f8] sm:$0xf0] }
 0x1b5   : > { %2789 = vmatpush.bf16.msrb.mxu3 %v3787_v38  ;;  %v3635_v15 = vor.u32 %v4457_v9, %v3632_v37  ;;  %v4469_v38 = vld [vmem:[%s5185_s18 + $0x324] sm:$0xf]  ;;  %v3611_v9 = vor.u32 %v4451_v60, %v3608_v1  ;;  %v4543_v24 = vld [vmem:[%s5185_s18 + $0x574] sm:$0xf]  ;;  %v3976_v25 = vld [vmem:[%s5185_s18 + $0x578] sm:$0xf0] }
 0x1b6   : > { %2751 = vmatpush.bf16.msrb.mxu0 %v3587_v53  ;;  %v3619_v53 = vor.u32 %v4453_v31, %v3616_v34  ;;  %v4449_v37 = vld [vmem:[%s5185_s18 + $0x284] sm:$0xf]  ;;  %v2525_v12 = vpop.f32.mrf.mxu2  ;;  %v4559_v30 = vld [vmem:[%s5185_s18 + $0x5f4] sm:$0xf]  ;;  %v4040_v31 = vld [vmem:[%s5185_s18 + $0x5f8] sm:$0xf0]  ;;  %v3851_v34 = vor.u32 %v4511_v18, %v3848_v19 }
 0x1b7   : > { %2764 = vmatpush.bf16.msrb.mxu1 %v3651_v54  ;;  %v3683_v54 = vor.u32 %v4469_v38, %v3680_v41  ;;  %v3979_v41 = vor.u32 %v4543_v24, %v3976_v25  ;;  %v4043_v51 = vor.u32 %v4559_v30, %v4040_v31  ;;  %v4032_v60 = vld [vmem:[%s5185_s18 + $0x5e8] sm:$0xf0]  ;;  %v4539_v7 = vld [vmem:[%s5185_s18 + $0x554] sm:$0xf]  ;;  %v3960_v8 = vld [vmem:[%s5185_s18 + $0x558] sm:$0xf0] }
 0x1b8   : > { %2777 = vmatpush.bf16.msrb.mxu2 %v3715_v56  ;;  %v4435_v56 = vld [vmem:[%s5185_s18 + $0x214] sm:$0xf]  ;;  %v4008_v31 = vld [vmem:[%s5185_s18 + $0x5b8] sm:$0xf0] }
 0x1b9   : > { %2790 = vmatpush.bf16.msrb.mxu3 %v3779_v63  ;;  %v2512_v63 = vpop.f32.mrf.mxu1  ;;  %v2538_v17 = vpop.f32.mrf.mxu3  ;;  %v4551_v30 = vld [vmem:[%s5185_s18 + $0x5b4] sm:$0xf] }
 0x1ba   : > { %2752 = vmatpush.bf16.msrb.mxu0 %v3579_v5  ;;  %v3736_v5 = vld [vmem:[%s5185_s18 + $0x398] sm:$0xf0]  ;;  %v2501_v27 = vpop.f32.mrf.mxu0 }
 0x1bb   : > { %2765 = vmatpush.bf16.msrb.mxu1 %v3643_v6  ;;  %v2513_v6 = vadd.f32 %v2512_v63, %v2500_v62  ;;  %v3739_v39 = vor.u32 %v4483_v4, %v3736_v5  ;;  %v3843_v63 = vor.u32 %v4509_v43, %v3840_v44  ;;  %v3832_v4 = vld [vmem:[%s5185_s18 + $0x458] sm:$0xf0]  ;;  %v4523_v5 = vld [vmem:[%s5185_s18 + $0x4d4] sm:$0xf]  ;;  %v4517_v43 = vld [vmem:[%s5185_s18 + $0x4a4] sm:$0xf] }
 0x1bc   : > { %2778 = vmatpush.bf16.msrb.mxu2 %v3707_v35  ;;  %v3547_v35 = vor.u32 %v4435_v56, %v3544_v57  ;;  %v3968_v56 = vld [vmem:[%s5185_s18 + $0x568] sm:$0xf0]  ;;  %v4557_v57 = vld [vmem:[%s5185_s18 + $0x5e4] sm:$0xf]  ;;  %v3880_v27 = vld [vmem:[%s5185_s18 + $0x4b8] sm:$0xf0] }
 0x1bd   : > { %2791 = vmatpush.bf16.msrb.mxu3 %v3771_v36  ;;  %v3675_v36 = vor.u32 %v4467_v2, %v3672_v3  ;;  %v4507_v3 = vld [vmem:[%s5185_s18 + $0x454] sm:$0xf] }
 0x1be   : > { %2753 = vmatpush.bf16.msrb.mxu0 %v3571_v13  ;;  %v3664_v13 = vld [vmem:[%s5185_s18 + $0x308] sm:$0xf0]  ;;  %v2527_v62 = vpop.f32.mrf.mxu2 }
 0x1bf   : > { %2766 = vmatpush.bf16.msrb.mxu1 %v3635_v15  ;;  %v3728_v15 = vld [vmem:[%s5185_s18 + $0x388] sm:$0xf0] }
 0x1c0   : > { %2779 = vmatpush.bf16.msrb.mxu2 %v3699_v16  ;;  %v2526_v16 = vadd.f32 %v2525_v12, %v2513_v6  ;;  %v4035_v6 = vor.u32 %v4557_v57, %v4032_v60  ;;  %v3824_v12 = vld [vmem:[%s5185_s18 + $0x448] sm:$0xf0]  ;;  %v4549_v57 = vld [vmem:[%s5185_s18 + $0x5a4] sm:$0xf] }
 0x1c1   : > { %2792 = vmatpush.bf16.msrb.mxu3 %v3763_v20  ;;  %v4527_v20 = vld [vmem:[%s5185_s18 + $0x4f4] sm:$0xf]  ;;  %v2514_v32 = vpop.f32.mrf.mxu1  ;;  %v4000_v60 = vld [vmem:[%s5185_s18 + $0x5a8] sm:$0xf0] }
 0x1c2   : > { %2754 = vmatpush.bf16.msrb.mxu0 %v3563_v26  ;;  %v5729_v26 = vadd.f32 %v2538_v17, %v2526_v16  ;;  %v3915_v38 = vor.u32 %v4527_v20, %v3912_v22  ;;  %v4016_v16 = vld [vmem:[%s5185_s18 + $0x5c8] sm:$0xf0]  ;;  %v4503_v20 = vld [vmem:[%s5185_s18 + $0x434] sm:$0xf] }
 0x1c3   : > { %2767 = vmatpush.bf16.msrb.mxu1 %v3627_v28  ;;  %v3603_v28 = vor.u32 %v4449_v37, %v3600_v10  ;;  %v3835_v37 = vor.u32 %v4507_v3, %v3832_v4  ;;  %v3963_v10 = vor.u32 %v4539_v7, %v3960_v8  ;;  %v4519_v22 = vld [vmem:[%s5185_s18 + $0x4b4] sm:$0xf]  ;;  %v3800_v3 = vld [vmem:[%s5185_s18 + $0x418] sm:$0xf0] }
 0x1c4   : > { %2780 = vmatpush.bf16.msrb.mxu2 %v3691_v29  ;;  %v3667_v29 = vor.u32 %v4465_v11, %v3664_v13  ;;  %v4505_v11 = vld [vmem:[%s5185_s18 + $0x444] sm:$0xf]  ;;  %v3888_v13 = vld [vmem:[%s5185_s18 + $0x4c8] sm:$0xf0]  ;;  %v4515_v4 = vld [vmem:[%s5185_s18 + $0x494] sm:$0xf] }
 0x1c5   : > { %2793 = vmatpush.bf16.msrb.mxu3 %v3755_v33  ;;  %v3731_v33 = vor.u32 %v4481_v14, %v3728_v15  ;;  %v3952_v14 = vld [vmem:[%s5185_s18 + $0x548] sm:$0xf0]  ;;  %v4553_v15 = vld [vmem:[%s5185_s18 + $0x5c4] sm:$0xf]  ;;  %v4531_v7 = vld [vmem:[%s5185_s18 + $0x514] sm:$0xf] }
 0x1c6   : > { %2755 = vmatpush.bf16.msrb.mxu0 %v3555_v49  ;;  %v4525_v49 = vld [vmem:[%s5185_s18 + $0x4e4] sm:$0xf]  ;;  %v4019_v25 = vor.u32 %v4553_v15, %v4016_v16  ;;  %v3928_v8 = vld [vmem:[%s5185_s18 + $0x518] sm:$0xf0]  ;;  %v3920_v15 = vld [vmem:[%s5185_s18 + $0x508] sm:$0xf0] }
 0x1c7   : > { %2768 = vmatpush.bf16.msrb.mxu1 %v3619_v53  ;;  %v3904_v53 = vld [vmem:[%s5185_s18 + $0x4e8] sm:$0xf0]  ;;  %v4545_v16 = vld [vmem:[%s5185_s18 + $0x584] sm:$0xf] }
 0x1c8   : > { %2781 = vmatpush.bf16.msrb.mxu2 %v3683_v54  ;;  %v4541_v54 = vld [vmem:[%s5185_s18 + $0x564] sm:$0xf]  ;;  %v3907_v1 = vor.u32 %v4525_v49, %v3904_v53  ;;  %v4011_v49 = vor.u32 %v4551_v30, %v4008_v31  ;;  %v4623_v31 = vld [vmem:[%s5185_s18 + $0x7f4] sm:$0xf] }
 0x1c9   : > { %2794 = vmatpush.bf16.msrb.mxu3 %v3747_v0  ;;  %v2540_v0 = vpop.f32.mrf.mxu3  ;;  %v3971_v2 = vor.u32 %v4541_v54, %v3968_v56  ;;  %v4533_v53 = vld [vmem:[%s5185_s18 + $0x524] sm:$0xf]  ;;  %v3936_v54 = vld [vmem:[%s5185_s18 + $0x528] sm:$0xf0] }
 0x1ca   : > { %2756 = vmatpush.bf16.msrb.mxu0 %v3547_v35  ;;  %v3896_v35 = vld [vmem:[%s5185_s18 + $0x4d8] sm:$0xf0] }
 0x1cb   : > { %2769 = vmatpush.bf16.msrb.mxu1 %v3611_v9  ;;  %v4555_v9 = vld [vmem:[%s5185_s18 + $0x5d4] sm:$0xf] }
 0x1cc   : > { %2782 = vmatpush.bf16.msrb.mxu2 %v3675_v36  ;;  %v4024_v36 = vld [vmem:[%s5185_s18 + $0x5d8] sm:$0xf0] }
 0x1cd   : > { %2795 = vmatpush.bf16.msrb.mxu3 %v3739_v39  ;;  %v4521_v39 = vld [vmem:[%s5185_s18 + $0x4c4] sm:$0xf] }
 0x1ce   : > { %2757 = vmatpush.bf16.msrb.mxu0 %v3539_v21  ;;  %v5761_v17 = vpop.f32.mrf.mxu0  ;;  %v3891_v18 = vor.u32 %v4521_v39, %v3888_v13  ;;  %v3816_v21 = vld [vmem:[%s5185_s18 + $0x438] sm:$0xf0]  ;;  %v4513_v39 = vld [vmem:[%s5185_s18 + $0x484] sm:$0xf] }
 0x1cf   : > { %2770 = vmatpush.bf16.msrb.mxu1 %v3603_v28  ;;  %v5766_v24 = vpop.f32.mrf.mxu1  ;;  %v4535_v28 = vld [vmem:[%s5185_s18 + $0x534] sm:$0xf]  ;;  %v3819_v32 = vor.u32 %v4503_v20, %v3816_v21  ;;  %v4529_v13 = vld [vmem:[%s5185_s18 + $0x504] sm:$0xf]  ;;  %v4104_v20 = vld [vmem:[%s5185_s18 + $0x678] sm:$0xf0] }
 0x1d0   : > { %2783 = vmatpush.bf16.msrb.mxu2 %v3667_v29  ;;  %v3944_v29 = vld [vmem:[%s5185_s18 + $0x538] sm:$0xf0]  ;;  %v4591_v21 = vld [vmem:[%s5185_s18 + $0x6f4] sm:$0xf]  ;;  %v3923_v30 = vor.u32 %v4529_v13, %v3920_v15  ;;  %v4617_v13 = vld [vmem:[%s5185_s18 + $0x7c4] sm:$0xf] }
 0x1d1   : > { %2796 = vmatpush.bf16.msrb.mxu3 %v3731_v33  ;;  %2758 = vmatmul.bf16.vlgmr.msrb.gmra.mxu0 %v5441_v58  ;;  %v4027_v58 = vor.u32 %v4555_v9, %v4024_v36  ;;  %v3883_v33 = vor.u32 %v4519_v22, %v3880_v27  ;;  %v4547_v9 = vld [vmem:[%s5185_s18 + $0x594] sm:$0xf]  ;;  %v3992_v36 = vld [vmem:[%s5185_s18 + $0x598] sm:$0xf0] }
 0x1d2   : > { %2802 = vmatpush.bf16.msra.mxu0 %v3851_v34  ;;  %2771 = vmatmul.bf16.vlgmr.msrb.gmra.mxu1 %v5445_v61  ;;  %v3827_v61 = vor.u32 %v4505_v11, %v3824_v12  ;;  %v3947_v34 = vor.u32 %v4535_v28, %v3944_v29  ;;  %v3931_v12 = vor.u32 %v4531_v7, %v3928_v8  ;;  %v4607_v27 = vld [vmem:[%s5185_s18 + $0x774] sm:$0xf]  ;;  %v4232_v28 = vld [vmem:[%s5185_s18 + $0x778] sm:$0xf0] }
 0x1d3   : > { %2815 = vmatpush.bf16.msra.mxu1 %v3915_v38  ;;  %2784 = vmatmul.bf16.vlgmr.msrb.gmra.mxu2 %v5437_v55  ;;  %v3899_v55 = vor.u32 %v4523_v5, %v3896_v35  ;;  %v4501_v38 = vld [vmem:[%s5185_s18 + $0x424] sm:$0xf]  ;;  %v3864_v35 = vld [vmem:[%s5185_s18 + $0x498] sm:$0xf0]  ;;  %v4603_v7 = vld [vmem:[%s5185_s18 + $0x754] sm:$0xf] }
 0x1d4   : > { %2828 = vmatpush.bf16.msra.mxu2 %v3979_v41  ;;  %2797 = vmatmul.bf16.vlgmr.msrb.gmra.mxu3 %v5443_v59  ;;  %v4537_v59 = vld [vmem:[%s5185_s18 + $0x544] sm:$0xf]  ;;  %v3808_v41 = vld [vmem:[%s5185_s18 + $0x428] sm:$0xf0]  ;;  %v3867_v11 = vor.u32 %v4515_v4, %v3864_v35  ;;  %v4088_v4 = vld [vmem:[%s5185_s18 + $0x658] sm:$0xf0] }
 0x1d5   : > { %2841 = vmatpush.bf16.msra.mxu3 %v4043_v51  ;;  %v3955_v19 = vor.u32 %v4537_v59, %v3952_v14  ;;  %v3872_v51 = vld [vmem:[%s5185_s18 + $0x4a8] sm:$0xf0]  ;;  %v3811_v62 = vor.u32 %v4501_v38, %v3808_v41  ;;  %v3995_v14 = vor.u32 %v4547_v9, %v3992_v36  ;;  %v4235_v41 = vor.u32 %v4607_v27, %v4232_v28  ;;  %v4152_v35 = vld [vmem:[%s5185_s18 + $0x6d8] sm:$0xf0]  ;;  %v4619_v9 = vld [vmem:[%s5185_s18 + $0x7d4] sm:$0xf] }
 0x1d6   : > { %2803 = vmatpush.bf16.msra.mxu0 %v3843_v63  ;;  %v5776_v44 = vpop.f32.mrf.mxu2  ;;  %v2553_v63 = vpop.f32.mrf.mxu0  ;;  %v3875_v0 = vor.u32 %v4517_v43, %v3872_v51  ;;  %v4573_v43 = vld [vmem:[%s5185_s18 + $0x664] sm:$0xf]  ;;  %v4216_v8 = vld [vmem:[%s5185_s18 + $0x758] sm:$0xf0]  ;;  %v4615_v28 = vld [vmem:[%s5185_s18 + $0x7b4] sm:$0xf] }
 0x1d7   : > { %2816 = vmatpush.bf16.msra.mxu1 %v3907_v1  ;;  %v5781_v56 = vpop.f32.mrf.mxu3  ;;  %v3939_v1 = vor.u32 %v4533_v53, %v3936_v54  ;;  %v2566_v5 = vpop.f32.mrf.mxu1  ;;  %v4589_v51 = vld [vmem:[%s5185_s18 + $0x6e4] sm:$0xf]  ;;  %v4160_v54 = vld [vmem:[%s5185_s18 + $0x6e8] sm:$0xf0]  ;;  %v4280_v36 = vld [vmem:[%s5185_s18 + $0x7d8] sm:$0xf0] }
 0x1d8   : > { %2829 = vmatpush.bf16.msra.mxu2 %v3971_v2  ;;  %v4499_v2 = vld [vmem:[%s5185_s18 + $0x414] sm:$0xf]  ;;  %v4288_v63 = vld [vmem:[%s5185_s18 + $0x7e8] sm:$0xf0]  ;;  %v4200_v27 = vld [vmem:[%s5185_s18 + $0x738] sm:$0xf0] }
 0x1d9   : > { %2842 = vmatpush.bf16.msra.mxu3 %v4035_v6  ;;  %v4003_v6 = vor.u32 %v4549_v57, %v4000_v60  ;;  %v4605_v57 = vld [vmem:[%s5185_s18 + $0x764] sm:$0xf]  ;;  %v4224_v60 = vld [vmem:[%s5185_s18 + $0x768] sm:$0xf0]  ;;  %v4587_v5 = vld [vmem:[%s5185_s18 + $0x6d4] sm:$0xf] }
 0x1da   : > { %2804 = vmatpush.bf16.msra.mxu0 %v3835_v37  ;;  %v3803_v37 = vor.u32 %v4499_v2, %v3800_v3  ;;  %v4227_v2 = vor.u32 %v4605_v57, %v4224_v60  ;;  %v4571_v3 = vld [vmem:[%s5185_s18 + $0x654] sm:$0xf]  ;;  %v4613_v60 = vld [vmem:[%s5185_s18 + $0x7a4] sm:$0xf] }
 0x1db   : > { %2817 = vmatpush.bf16.msra.mxu1 %v3899_v55  ;;  %v4497_v55 = vld [vmem:[%s5185_s18 + $0x404] sm:$0xf] }
 0x1dc   : > { %2830 = vmatpush.bf16.msra.mxu2 %v3963_v10  ;;  %v3792_v10 = vld [vmem:[%s5185_s18 + $0x408] sm:$0xf0] }
 0x1dd   : > { %2843 = vmatpush.bf16.msra.mxu3 %v4027_v58  ;;  %v3856_v58 = vld [vmem:[%s5185_s18 + $0x488] sm:$0xf0]  ;;  %v3795_v22 = vor.u32 %v4497_v55, %v3792_v10  ;;  %v4219_v55 = vor.u32 %v4603_v7, %v4216_v8  ;;  %v4569_v10 = vld [vmem:[%s5185_s18 + $0x644] sm:$0xf]  ;;  %v4184_v7 = vld [vmem:[%s5185_s18 + $0x718] sm:$0xf0] }
 0x1de   : > { %2805 = vmatpush.bf16.msra.mxu0 %v3827_v61  ;;  %v2579_v59 = vpop.f32.mrf.mxu2  ;;  %v3984_v61 = vld [vmem:[%s5185_s18 + $0x588] sm:$0xf0]  ;;  %v3859_v29 = vor.u32 %v4513_v39, %v3856_v58  ;;  %v4601_v39 = vld [vmem:[%s5185_s18 + $0x744] sm:$0xf] }
 0x1df   : > { %2818 = vmatpush.bf16.msra.mxu1 %v3891_v18  ;;  %v2592_v18 = vpop.f32.mrf.mxu3  ;;  %v4208_v58 = vld [vmem:[%s5185_s18 + $0x748] sm:$0xf0] }
 0x1e0   : > { %2831 = vmatpush.bf16.msra.mxu2 %v3955_v19  ;;  %v4575_v19 = vld [vmem:[%s5185_s18 + $0x674] sm:$0xf]  ;;  %v4272_v59 = vld [vmem:[%s5185_s18 + $0x7c8] sm:$0xf0] }
 0x1e1   : > { %2844 = vmatpush.bf16.msra.mxu3 %v4019_v25  ;;  %v4168_v25 = vld [vmem:[%s5185_s18 + $0x6f8] sm:$0xf0]  ;;  %v4567_v18 = vld [vmem:[%s5185_s18 + $0x634] sm:$0xf] }
 0x1e2   : > { %2806 = vmatpush.bf16.msra.mxu0 %v3819_v32  ;;  %v4296_v32 = vld [vmem:[%s5185_s18 + $0x7f8] sm:$0xf0]  ;;  %v4171_v38 = vor.u32 %v4591_v21, %v4168_v25  ;;  %v4275_v21 = vor.u32 %v4617_v13, %v4272_v59  ;;  %v4599_v25 = vld [vmem:[%s5185_s18 + $0x734] sm:$0xf]  ;;  %v4609_v59 = vld [vmem:[%s5185_s18 + $0x784] sm:$0xf] }
 0x1e3   : > { %2819 = vmatpush.bf16.msra.mxu1 %v3883_v33  ;;  %v3987_v33 = vor.u32 %v4545_v16, %v3984_v61  ;;  %v4299_v53 = vor.u32 %v4623_v31, %v4296_v32  ;;  %v4211_v61 = vor.u32 %v4601_v39, %v4208_v58  ;;  %v4203_v32 = vor.u32 %v4599_v25, %v4200_v27  ;;  %v4593_v39 = vld [vmem:[%s5185_s18 + $0x704] sm:$0xf] }
 0x1e4   : > { %2832 = vmatpush.bf16.msra.mxu2 %v3947_v34  ;;  %v4107_v34 = vor.u32 %v4575_v19, %v4104_v20  ;;  %v4072_v19 = vld [vmem:[%s5185_s18 + $0x638] sm:$0xf0]  ;;  %v4583_v20 = vld [vmem:[%s5185_s18 + $0x6b4] sm:$0xf] }
 0x1e5   : > { %2845 = vmatpush.bf16.msra.mxu3 %v4011_v49  ;;  %v4096_v49 = vld [vmem:[%s5185_s18 + $0x668] sm:$0xf0] }
 0x1e6   : > { %2807 = vmatpush.bf16.msra.mxu0 %v3811_v62  ;;  %v4621_v62 = vld [vmem:[%s5185_s18 + $0x7e4] sm:$0xf] }
 0x1e7   : > { %2820 = vmatpush.bf16.msra.mxu1 %v3875_v0  ;;  %v4099_v0 = vor.u32 %v4573_v43, %v4096_v49  ;;  %v4128_v49 = vld [vmem:[%s5185_s18 + $0x6a8] sm:$0xf0] }
 0x1e8   : > { %2833 = vmatpush.bf16.msra.mxu2 %v3939_v1  ;;  %v4163_v1 = vor.u32 %v4589_v51, %v4160_v54  ;;  %v4597_v51 = vld [vmem:[%s5185_s18 + $0x724] sm:$0xf]  ;;  %v2552_v54 = vadd.f32 %v5761_v17, %v5729_v26  ;;  %v4579_v26 = vld [vmem:[%s5185_s18 + $0x694] sm:$0xf] }
 0x1e9   : > { %2846 = vmatpush.bf16.msra.mxu3 %v4003_v6  ;;  %v4291_v6 = vor.u32 %v4621_v62, %v4288_v63  ;;  %v4256_v62 = vld [vmem:[%s5185_s18 + $0x7a8] sm:$0xf0] }
 0x1ea   : > { %2808 = vmatpush.bf16.msra.mxu0 %v3803_v37  ;;  %v4155_v37 = vor.u32 %v4587_v5, %v4152_v35  ;;  %v4056_v5 = vld [vmem:[%s5185_s18 + $0x618] sm:$0xf0]  ;;  %v4259_v17 = vor.u32 %v4613_v60, %v4256_v62  ;;  %v4595_v35 = vld [vmem:[%s5185_s18 + $0x714] sm:$0xf]  ;;  %v2565_v8 = vadd.f32 %v5766_v24, %v2552_v54  ;;  %v4176_v24 = vld [vmem:[%s5185_s18 + $0x708] sm:$0xf0] }
 0x1eb   : > { %2821 = vmatpush.bf16.msra.mxu1 %v3867_v11  ;;  %v4080_v11 = vld [vmem:[%s5185_s18 + $0x648] sm:$0xf0]  ;;  %v1151_v60 = vperm.slane %v5694_v23, 1 }
 0x1ec   : > { %2834 = vmatpush.bf16.msra.mxu2 %v3931_v12  ;;  %v4144_v12 = vld [vmem:[%s5185_s18 + $0x6c8] sm:$0xf0]  ;;  %v2578_v13 = vadd.f32 %v5776_v44, %v2565_v8  ;;  %v4631_v44 = vld [vmem:[%s5200_s21 + $0x30] sm:$0xff] }
 0x1ed   : > { %2847 = vmatpush.bf16.msra.mxu3 %v3995_v14  ;;  %v4083_v14 = vor.u32 %v4569_v10, %v4080_v11  ;;  %v4561_v10 = vld [vmem:[%s5185_s18 + $0x604] sm:$0xf]  ;;  %v4048_v11 = vld [vmem:[%s5185_s18 + $0x608] sm:$0xf0] }
 0x1ee   : > { %2809 = vmatpush.bf16.msra.mxu0 %v3795_v22  ;;  %v4136_v22 = vld [vmem:[%s5185_s18 + $0x6b8] sm:$0xf0] }
 0x1ef   : > { %2822 = vmatpush.bf16.msra.mxu1 %v3859_v29  ;;  %v5839_v15 = vpop.f32.mrf.mxu1  ;;  %v4264_v29 = vld [vmem:[%s5185_s18 + $0x7b8] sm:$0xf0]  ;;  %v4139_v31 = vor.u32 %v4583_v20, %v4136_v22  ;;  %v2591_v22 = vadd.f32 %v5781_v56, %v2578_v13  ;;  %v4630_v56 = vld [vmem:[%s5200_s21 + $0x28] sm:$0xff] }
 0x1f0   : > { %2835 = vmatpush.bf16.msra.mxu2 %v3923_v30  ;;  %v4075_v30 = vor.u32 %v4567_v18, %v4072_v19  ;;  %v4179_v19 = vor.u32 %v4593_v39, %v4176_v24  ;;  %v4635_v24 = vld [vmem:[%s5200_s21 + $0x50] sm:$0xff] }
 0x1f1   : > { %2848 = vmatpush.bf16.msra.mxu3 %v3987_v33  ;;  %2810 = vmatmul.bf16.vlgmr.msra.gmra.mxu0 %v5510_v42  ;;  %v4091_v42 = vor.u32 %v4571_v3, %v4088_v4  ;;  %v4565_v33 = vld [vmem:[%s5185_s18 + $0x624] sm:$0xf]  ;;  %v4563_v4 = vld [vmem:[%s5185_s18 + $0x614] sm:$0xf] }
 0x1f2   : > { %2854 = vmatpush.bf16.msrb.mxu0 %v4107_v34  ;;  %2823 = vmatmul.bf16.vlgmr.msra.gmra.mxu1 %v5517_v47  ;;  %v4283_v47 = vor.u32 %v4619_v9, %v4280_v36  ;;  %v4064_v34 = vld [vmem:[%s5185_s18 + $0x628] sm:$0xf0]  ;;  %v4611_v9 = vld [vmem:[%s5185_s18 + $0x794] sm:$0xf]  ;;  %v4248_v36 = vld [vmem:[%s5185_s18 + $0x798] sm:$0xf0] }
 0x1f3   : > { %2867 = vmatpush.bf16.msrb.mxu1 %v4171_v38  ;;  %2836 = vmatmul.bf16.vlgmr.msra.gmra.mxu2 %v5515_v46  ;;  %v4585_v46 = vld [vmem:[%s5185_s18 + $0x6c4] sm:$0xf] }
 0x1f4   : > { %2880 = vmatpush.bf16.msrb.mxu2 %v4235_v41  ;;  %2849 = vmatmul.bf16.vlgmr.msra.gmra.mxu3 %v5521_v50  ;;  %v5835_v50 = vpop.f32.mrf.mxu0  ;;  %v4147_v16 = vor.u32 %v4585_v46, %v4144_v12  ;;  %v4581_v38 = vld [vmem:[%s5185_s18 + $0x6a4] sm:$0xf]  ;;  %v4267_v41 = vor.u32 %v4615_v28, %v4264_v29  ;;  %v4112_v12 = vld [vmem:[%s5185_s18 + $0x688] sm:$0xf0] }
 0x1f5   : > { %2893 = vmatpush.bf16.msrb.mxu3 %v4299_v53  ;;  %v4192_v53 = vld [vmem:[%s5185_s18 + $0x728] sm:$0xf0]  ;;  %v4577_v46 = vld [vmem:[%s5185_s18 + $0x684] sm:$0xf]  ;;  %v2604_v25 = vadd.f32 %v5835_v50, %v2591_v22 }
 0x1f6   : > { %2855 = vmatpush.bf16.msrb.mxu0 %v4099_v0  ;;  %v5852_v43 = vpop.f32.mrf.mxu2  ;;  %v4067_v0 = vor.u32 %v4565_v33, %v4064_v34  ;;  %v4195_v3 = vor.u32 %v4597_v51, %v4192_v53  ;;  %v4115_v18 = vor.u32 %v4577_v46, %v4112_v12  ;;  %v4629_v29 = vld [vmem:[%s5200_s21 + $0x20] sm:$0xff]  ;;  %v4627_v33 = vld [vmem:[%s5200_s21 + $0x10] sm:$0xff]  ;;  %v4636_v12 = vld [vmem:[%s5200_s21 + $0x58] sm:$0xff] }
 0x1f7   : > { %2868 = vmatpush.bf16.msrb.mxu1 %v4163_v1  ;;  %v5859_v57 = vpop.f32.mrf.mxu3  ;;  %v2618_v1 = vpop.f32.mrf.mxu1  ;;  %v2617_v27 = vadd.f32 %v5839_v15, %v2604_v25  ;;  %v4625_v53 = vld [vmem:[%s5200_s21] sm:$0xff] }
 0x1f8   : > { %2881 = vmatpush.bf16.msrb.mxu2 %v4227_v2  ;;  %v4131_v2 = vor.u32 %v4581_v38, %v4128_v49 }
 0x1f9   : > { %2894 = vmatpush.bf16.msrb.mxu3 %v4291_v6  ;;  %v4120_v6 = vld [vmem:[%s5185_s18 + $0x698] sm:$0xf0]  ;;  %v2630_v50 = vadd.f32 %v5852_v43, %v2617_v27 }
 0x1fa   : > { %2856 = vmatpush.bf16.msrb.mxu0 %v4091_v42  ;;  %v4059_v42 = vor.u32 %v4563_v4, %v4056_v5 }
 0x1fb   : > { %2869 = vmatpush.bf16.msrb.mxu1 %v4155_v37  ;;  %v4123_v37 = vor.u32 %v4579_v26, %v4120_v6 }
 0x1fc   : > { %2882 = vmatpush.bf16.msrb.mxu2 %v4219_v55  ;;  %v2605_v63 = vpop.f32.mrf.mxu0  ;;  %v4187_v55 = vor.u32 %v4595_v35, %v4184_v7 }
 0x1fd   : > { %2895 = vmatpush.bf16.msrb.mxu3 %v4283_v47  ;;  %v4251_v47 = vor.u32 %v4611_v9, %v4248_v36  ;;  %v4640_v36 = vld [vmem:[%s5200_s21 + $0x78] sm:$0xff] }
 0x1fe   : > { %2857 = vmatpush.bf16.msrb.mxu0 %v4083_v14  ;;  %v2631_v58 = vpop.f32.mrf.mxu2  ;;  %v4240_v14 = vld [vmem:[%s5185_s18 + $0x788] sm:$0xf0]  ;;  %s5969_s18 = sld [smem:[#allocation15_spill]] }
 0x1ff   : > { %2870 = vmatpush.bf16.msrb.mxu1 %v4147_v16  ;;  %v2644_v16 = vpop.f32.mrf.mxu3  ;;  %v4243_v20 = vor.u32 %v4609_v59, %v4240_v14  ;;  %v4634_v59 = vld [vmem:[%s5200_s21 + $0x48] sm:$0xff] }
 0x200   : > { %2883 = vmatpush.bf16.msrb.mxu2 %v4211_v61  ;;  %v4051_v61 = vor.u32 %v4561_v10, %v4048_v11  ;;  %v4638_v11 = vld [vmem:[%s5200_s21 + $0x68] sm:$0xff] }
 0x201   : > { %2896 = vmatpush.bf16.msrb.mxu3 %v4275_v21  ;;  %v4632_v21 = vld [vmem:[%s5200_s21 + $0x38] sm:$0xff] }
 0x202   : > { %2858 = vmatpush.bf16.msrb.mxu0 %v4075_v30 }
 0x203   : > { %2871 = vmatpush.bf16.msrb.mxu1 %v4139_v31 }
 0x204   : > { %2884 = vmatpush.bf16.msrb.mxu2 %v4203_v32  ;;  %p4364_p4 = scmp.ne.s32.totalorder %s5969_s18, 1 }
 0x205   : > { %2897 = vmatpush.bf16.msrb.mxu3 %v4267_v41  ;;  %v4626_v41 = vld [vmem:[%s5200_s21 + $0x8] sm:$0xff] }
 0x206   : > { %2859 = vmatpush.bf16.msrb.mxu0 %v4067_v0 }
 0x207   : > { %2872 = vmatpush.bf16.msrb.mxu1 %v4131_v2 }
 0x208   : > { %2885 = vmatpush.bf16.msrb.mxu2 %v4195_v3 }
 0x209   : > { %2898 = vmatpush.bf16.msrb.mxu3 %v4259_v17 }
 0x20a   : > { %2860 = vmatpush.bf16.msrb.mxu0 %v4059_v42 }
 0x20b   : > { %2873 = vmatpush.bf16.msrb.mxu1 %v4123_v37 }
 0x20c   : > { %2886 = vmatpush.bf16.msrb.mxu2 %v4187_v55  ;;  %v4639_v55 = vld [vmem:[%s5200_s21 + $0x70] sm:$0xff] }
 0x20d   : > { %2899 = vmatpush.bf16.msrb.mxu3 %v4251_v47  ;;  %v4637_v47 = vld [vmem:[%s5200_s21 + $0x60] sm:$0xff] }
 0x20e   : > { %2861 = vmatpush.bf16.msrb.mxu0 %v4051_v61  ;;  %v2655_v28 = vpop.f32.mrf.mxu0 }
 0x20f   : > { %2874 = vmatpush.bf16.msrb.mxu1 %v4115_v18  ;;  %v2668_v30 = vpop.f32.mrf.mxu1 }
 0x210   : > { %2887 = vmatpush.bf16.msrb.mxu2 %v4179_v19 }
 0x211   : > { %2900 = vmatpush.bf16.msrb.mxu3 %v4243_v20  ;;  %2862 = vmatmul.bf16.vlgmr.msrb.gmra.mxu0 %v5586_v40  ;;  %v2643_v40 = vadd.f32 %v5859_v57, %v2630_v50  ;;  %v4633_v20 = vld [vmem:[%s5200_s21 + $0x40] sm:$0xff] }
 0x212   : > { %3039 = vmatpush.bf16.msra.mxu0 %v4632_v21  ;;  %2875 = vmatmul.bf16.vlgmr.msrb.gmra.mxu1 %v5593_v48 }
 0x213   : > { %2888 = vmatmul.bf16.vlgmr.msrb.gmra.mxu2 %v5591_v45  ;;  %v2656_v31 = vadd.f32 %v2655_v28, %v2643_v40  ;;  %v4628_v45 = vld [vmem:[%s5200_s21 + $0x18] sm:$0xff]  ;;  %3052 = vmatpush.bf16.msra.mxu1 %v4640_v36 }
 0x214   : > { %2901 = vmatmul.bf16.vlgmr.msrb.gmra.mxu3 %v5597_v52 }
 0x215   : > { %v2669_v15 = vadd.f32 %v2668_v30, %v2656_v31 }
 0x216   : > { %3040 = vmatpush.bf16.msra.mxu0 %v4631_v44  ;;  %v2681_v48 = vpop.f32.mrf.mxu2  ;;  %v2657_v52 = vpop.f32.mrf.mxu0 }
 0x217   : > { %v2694_v32 = vpop.f32.mrf.mxu3  ;;  %v2670_v34 = vpop.f32.mrf.mxu1  ;;  %v2682_v38 = vadd.f32 %v2681_v48, %v2669_v15  ;;  %3053 = vmatpush.bf16.msra.mxu1 %v4639_v55 }
 0x219   : > { %v2695_v43 = vadd.f32 %v2694_v32, %v2682_v38 }
 0x21a   : > { %3041 = vmatpush.bf16.msra.mxu0 %v4630_v56 }
 0x21b   : > { %v2906_v54 = vmax.f32 %v2695_v43, 0.0  ;;  %3054 = vmatpush.bf16.msra.mxu1 %v4638_v11 }
 0x21d   : > { %v2909_v57 = vpack.c.bf16 %v2906_v54, %v2906_v54 }
 0x21e   : > { %3042 = vmatpush.bf16.msra.mxu0 %v4629_v29  ;;  %v2683_v49 = vpop.f32.mrf.mxu2 }
 0x21f   : > { %v2696_v51 = vpop.f32.mrf.mxu3  ;;  %3055 = vmatpush.bf16.msra.mxu1 %v4637_v47 }
 0x222   : > { %3043 = vmatpush.bf16.msra.mxu0 %v4628_v45 }
 0x223   : > { %3056 = vmatpush.bf16.msra.mxu1 %v4636_v12 }
 0x226   : > { %3044 = vmatpush.bf16.msra.mxu0 %v4627_v33 }
 0x227   : > { %3057 = vmatpush.bf16.msra.mxu1 %v4635_v24 }
 0x22a   : > { %3045 = vmatpush.bf16.msra.mxu0 %v4626_v41 }
 0x22b   : > { %3058 = vmatpush.bf16.msra.mxu1 %v4634_v59 }
 0x22e   : > { %3046 = vmatpush.bf16.msra.mxu0 %v4625_v53  ;;  %v2707_v62 = vpop.f32.mrf.mxu0  ;;  %v2908_v53 = vld [vmem:[#allocation3] sm:$0xff] }
 0x22f   : > { %v2708_v63 = vadd.f32 %v2707_v62, %v1151_v60  ;;  %v2720_v0 = vpop.f32.mrf.mxu1  ;;  %3059 = vmatpush.bf16.msra.mxu1 %v4633_v20 }
 0x231   : > { %3047 = vmatmul.bf16.vlgmr.msra.gmra.mxu0 %v2909_v57  ;;  %v2721_v1 = vadd.f32 %v2720_v0, %v2708_v63 }
 0x236   : > { %v2733_v2 = vpop.f32.mrf.mxu2  ;;  %v2709_v26 = vpop.f32.mrf.mxu0 }
 0x237   : > { %v2734_v3 = vadd.f32 %v2733_v2, %v2721_v1  ;;  %v2746_v4 = vpop.f32.mrf.mxu3  ;;  %v2722_v17 = vpop.f32.mrf.mxu1 }
 0x239   : > { %v2747_v5 = vadd.f32 %v2746_v4, %v2734_v3 }
 0x23e   : > { %v2735_v6 = vpop.f32.mrf.mxu2 }
 0x23f   : > { %v2748_v35 = vpop.f32.mrf.mxu3 }
 0x24e   : > { %v2759_v7 = vpop.f32.mrf.mxu0 }
 0x24f   : > { %v2772_v8 = vpop.f32.mrf.mxu1  ;;  %v2760_v13 = vadd.f32 %v2759_v7, %v2747_v5 }
 0x251   : > { %v2773_v18 = vadd.f32 %v2772_v8, %v2760_v13 }
 0x256   : > { %v2785_v23 = vpop.f32.mrf.mxu2  ;;  %v2761_v42 = vpop.f32.mrf.mxu0 }
 0x257   : > { %v2798_v9 = vpop.f32.mrf.mxu3  ;;  %v2774_v37 = vpop.f32.mrf.mxu1  ;;  %v2786_v21 = vadd.f32 %v2785_v23, %v2773_v18 }
 0x259   : > { %v2799_v44 = vadd.f32 %v2798_v9, %v2786_v21 }
 0x25e   : > { %v2787_v10 = vpop.f32.mrf.mxu2 }
 0x25f   : > { %v2800_v46 = vpop.f32.mrf.mxu3 }
 0x26e   : > { %v2811_v39 = vpop.f32.mrf.mxu0 }
 0x26f   : > { %v2824_v58 = vpop.f32.mrf.mxu1  ;;  %v2812_v27 = vadd.f32 %v2811_v39, %v2799_v44 }
 0x271   : > { %v2825_v56 = vadd.f32 %v2824_v58, %v2812_v27 }
 0x276   : > { %v2837_v14 = vpop.f32.mrf.mxu2  ;;  %v2813_v61 = vpop.f32.mrf.mxu0 }
 0x277   : > { %v2850_v16 = vpop.f32.mrf.mxu3  ;;  %v2826_v19 = vpop.f32.mrf.mxu1  ;;  %v2838_v50 = vadd.f32 %v2837_v14, %v2825_v56 }
 0x279   : > { %v2851_v28 = vadd.f32 %v2850_v16, %v2838_v50 }
 0x27e   : > { %v2839_v22 = vpop.f32.mrf.mxu2 }
 0x27f   : > { %v2852_v25 = vpop.f32.mrf.mxu3 }
 0x28e   : > { %v2863_v29 = vpop.f32.mrf.mxu0 }
 0x28f   : > { %v2876_v30 = vpop.f32.mrf.mxu1  ;;  %v2864_v40 = vadd.f32 %v2863_v29, %v2851_v28 }
 0x291   : > { %v2877_v31 = vadd.f32 %v2876_v30, %v2864_v40 }
 0x296   : > { %v2889_v45 = vpop.f32.mrf.mxu2  ;;  %v2865_v32 = vpop.f32.mrf.mxu0 }
 0x297   : > { %v2890_v48 = vadd.f32 %v2889_v45, %v2877_v31  ;;  %v2902_v15 = vpop.f32.mrf.mxu3  ;;  %v2878_v52 = vpop.f32.mrf.mxu1 }
 0x299   : > { %v2903_v33 = vadd.f32 %v2902_v15, %v2890_v48 }
 0x29b   : > { %v2907_v34 = vmax.f32 %v2903_v33, 0.0 }
 0x29d   : > { %v2910_v38 = vpack.c.bf16 %v2907_v34, %v2907_v34 }
 0x29e   : > { %v2891_v41 = vpop.f32.mrf.mxu2 }
 0x29f   : > { %v2904_v43 = vpop.f32.mrf.mxu3  ;;  %3060 = vmatmul.bf16.vlgmr.msra.gmra.mxu1 %v2910_v38 }
 0x2ae   : > { %v3048_v49 = vpop.f32.mrf.mxu0 }
 0x2b6   : > { %v3050_v51 = vpop.f32.mrf.mxu0 }
 0x31c   : > { %v3061_v54 = vpop.f32.mrf.mxu1 }
 0x31d   : > { %v3062_v57 = vadd.f32 %v3061_v54, %v3048_v49 }
 0x31f   : > { %v3065_v60 = vadd.f32 %v3062_v57, %v2908_v53 }
 0x320   : > { %3070 = sbr.rel (%p4364_p4) target bundleno = 810 (0x32a), region = 72 }
 0x321   : > { %3066 = vst [vmem:[#allocation3] sm:$0xff] %v3065_v60 }
 0x324   : > { %v3063_v62 = vpop.f32.mrf.mxu1 }
 0x328   : > { %v3071_v63 = vld [vmem:[#allocation3] sm:$0xff] }
 0x329   : > { %3072 = vst [vmem:[%s5196_s26] sm:$0xff] %v3071_v63 }
 0x32a PF: > { %s18_s28 = sadd.s32 1, %s4989_s28   ;;  %s5970_s27 = sld [smem:[#allocation14_spill]] }
 0x32b   : > { %p15_p5 = scmp.ge.s32.totalorder %s18_s28, 6   ;;  %s5971_s23 = sld [smem:[#allocation20_spill]] }
 0x32c   : > { %s5972_s24 = sld [smem:[#allocation16_spill]]  ;;  %s5976_s21 = smov %s4965_s22 }
 0x32d   : > { %s5973_s25 = sld [smem:[#allocation17_spill]] }
 0x32e   : > { %s5974_s26 = sld [smem:[#allocation18_spill]] }
 0x32f   : > { %s5975_s9 = sld [smem:[#allocation19_spill]] }
 0x330   : > { %s5977_s22 = smov %s5970_s27 }
 0x331   :  { %17 = sbr.rel (!%p15_p5) target bundleno = 9 (0x9), region = 136 }
 0x335   : > { %s5978_s27 = smov %s5975_s9 }
 0x336   :  { %3092 = vsyncpa [#allocation5], 1 }
 0x337   :  { %3094 = vsyncpa [#allocation5 + $0x1], 1 }
 0x338   :  { %3095 = vsyncpa [#allocation7], 1 }

</bundles_post_ra>
